<compile_context>
chip_gen: v7x
topology: tpu7x:2x2x1
jax: 0.10.0
libtpu: 0.0.40
codegen_flags: <defaults>
</compile_context>

<pallas_src>
import functools

import jax
import jax.numpy as jnp
from jax import lax
from jax.experimental import pallas as pl
from jax.experimental.pallas import tpu as pltpu


def _fused_bilstm_kernel(idx_ref, emb_ref, *refs, T, E, H, L):
    """Fused embedding lookup + L-layer bidirectional LSTM (batch folded away).

    idx_ref  : (T, 1)      int32, VMEM
    emb_ref  : (Vpad, E)   f32,   VMEM  (vocab padded to a multiple of 128)
    then per layer, per direction (fwd, bwd): w_ih^T (D,4H), w_hh^T (H,4H), b (1,4H)
    outputs  : out (T, 2H), h_n (2L, H), c_n (2L, H)
    scratch  : xw_f (T,4H), xw_b (T,4H)
    """
    w_refs = refs[:6 * L]
    out_ref, hn_ref, cn_ref = refs[6 * L:6 * L + 3]
    xwf_scr, xwb_scr = refs[6 * L + 3:]

    vpad = emb_ref.shape[0]

    # ---- embedding lookup as a one-hot MXU matmul (vectorized gather) ----
    idx_v = idx_ref[...]                                           # (T, 1) int32
    vocab_iota = lax.broadcasted_iota(jnp.int32, (T, vpad), 1)     # lane iota
    onehot = (vocab_iota == idx_v).astype(jnp.float32)             # (T, Vpad)
    x0 = jnp.dot(onehot, emb_ref[...],
                 preferred_element_type=jnp.float32)               # (T, E)

    for l in range(L):  # layers unrolled at trace time (static L)
        wihf, whhf, bf, wihb, whhb, bb = w_refs[6 * l:6 * l + 6]
        bfv = bf[...]
        bbv = bb[...]

        # ---- input projection for the whole sequence at once (MXU) ----
        # Layer 0 consumes the gathered embeddings; deeper layers consume the
        # previous layer's (T, 2H) output, which lives in out_ref (already the
        # [y_fwd | y_bwd] concatenation, so a single matmul suffices).
        xv = x0 if l == 0 else out_ref[...]
        xwf_scr[...] = jnp.dot(xv, wihf[...],
                               preferred_element_type=jnp.float32) + bfv
        xwb_scr[...] = jnp.dot(xv, wihb[...],
                               preferred_element_type=jnp.float32) + bbv

        # Hoist recurrent weights into vregs once per layer.
        whhf_v = whhf[...]  # (H, 4H)
        whhb_v = whhb[...]  # (H, 4H)

        def lstm_cell(gates, c_prev):
            # gates: (1, 4H) == one 128-lane row. Two full-vector EUP issues,
            # then cheap lane slices for the cell update. Gate order: i, f, g, o.
            s = jax.nn.sigmoid(gates)
            th = jnp.tanh(gates)
            i = s[:, 0 * H:1 * H]
            f = s[:, 1 * H:2 * H]
            g = th[:, 2 * H:3 * H]
            o = s[:, 3 * H:4 * H]
            c = f * c_prev + i * g
            h = o * jnp.tanh(c)
            return h, c

        def step(t, carry):
            h_f, c_f, h_b, c_b = carry
            tb = T - 1 - t
            # Two independent recurrence chains issued back-to-back each step;
            # their MXU/EUP latencies overlap.
            gf = xwf_scr[pl.ds(t, 1), :] + jnp.dot(
                h_f, whhf_v, preferred_element_type=jnp.float32)
            gb = xwb_scr[pl.ds(tb, 1), :] + jnp.dot(
                h_b, whhb_v, preferred_element_type=jnp.float32)
            h_f, c_f = lstm_cell(gf, c_f)
            h_b, c_b = lstm_cell(gb, c_b)
            # Write straight into the layer-output / final-output buffer.
            out_ref[pl.ds(t, 1), 0:H] = h_f
            out_ref[pl.ds(tb, 1), H:2 * H] = h_b
            return (h_f, c_f, h_b, c_b)

        z = jnp.zeros((1, H), jnp.float32)
        h_f, c_f, h_b, c_b = lax.fori_loop(0, T, step, (z, z, z, z), unroll=True)

        # Final states for this layer (fwd at row 2l, bwd at row 2l+1).
        hn_ref[pl.ds(2 * l, 1), :] = h_f
        hn_ref[pl.ds(2 * l + 1, 1), :] = h_b
        cn_ref[pl.ds(2 * l, 1), :] = c_f
        cn_ref[pl.ds(2 * l + 1, 1), :] = c_b


def prepare_params(params):
    """One-time hoisting: transpose weights, combine biases, cast, pad vocab."""
    emb = params["embedding"].astype(jnp.float32)
    V, E = emb.shape
    pad = (-V) % 128  # lane-friendly contraction dim for the one-hot gather matmul
    if pad:
        emb = jnp.pad(emb, ((0, pad), (0, 0)))
    layers = []
    for fwd_p, bwd_p in params["lstm_layers"]:
        prepped = []
        for (w_ih, w_hh, b_ih, b_hh) in (fwd_p, bwd_p):
            prepped.append((
                jnp.transpose(w_ih).astype(jnp.float32),            # (D, 4H)
                jnp.transpose(w_hh).astype(jnp.float32),            # (H, 4H)
                (b_ih + b_hh).reshape(1, -1).astype(jnp.float32),   # (1, 4H)
            ))
        layers.append(tuple(prepped))
    return {"embedding": emb, "layers": layers, "emb_dim": E}


def bilstm_word_embedding_lookup(word_idxs, prepared):
    """Forward pass. word_idxs: (T,) int32. Returns (lstm_out, (h_n, c_n))."""
    emb = prepared["embedding"]
    layers = prepared["layers"]
    E = prepared["emb_dim"]
    L = len(layers)
    H = layers[0][0][1].shape[0]       # w_hh^T is (H, 4H)
    T = word_idxs.shape[0]

    flat_w = []
    for fwd, bwd in layers:
        flat_w.extend(fwd)
        flat_w.extend(bwd)

    kernel = functools.partial(_fused_bilstm_kernel, T=T, E=E, H=H, L=L)
    out, h_n, c_n = pl.pallas_call(
        kernel,
        out_shape=(
            jax.ShapeDtypeStruct((T, 2 * H), jnp.float32),
            jax.ShapeDtypeStruct((2 * L, H), jnp.float32),
            jax.ShapeDtypeStruct((2 * L, H), jnp.float32),
        ),
        in_specs=[pl.BlockSpec(memory_space=pltpu.MemorySpace.VMEM)] * (2 + 6 * L),
        out_specs=(pl.BlockSpec(memory_space=pltpu.MemorySpace.VMEM),) * 3,
        scratch_shapes=[
            pltpu.VMEM((T, 4 * H), jnp.float32),   # x @ W_ih^T + b (forward)
            pltpu.VMEM((T, 4 * H), jnp.float32),   # x @ W_ih^T + b (backward)
        ],
    )(word_idxs.reshape(T, 1).astype(jnp.int32), emb, *flat_w)

    lstm_out = out.reshape(T, 1, 2 * H)
    return lstm_out, (h_n.reshape(2 * L, 1, H), c_n.reshape(2 * L, 1, H))


def init_params(key, vocab_size, embedding_dim, hidden_dim, num_layers):
    """Deterministic synthetic parameters with PyTorch nn.LSTM shapes."""
    H = hidden_dim // 2
    n_keys_per_layer = 8  # (w_ih, w_hh, b_ih, b_hh) x 2 directions
    keys = jax.random.split(key, 1 + num_layers * n_keys_per_layer)
    emb = jax.random.normal(keys[0], (vocab_size, embedding_dim),
                            dtype=jnp.float32) * 0.1

    scale = 1.0 / jnp.sqrt(jnp.float32(H))
    layers = []
    k_i = 1
    for layer in range(num_layers):
        in_dim = embedding_dim if layer == 0 else hidden_dim
        dir_params = []
        for _direction in range(2):
            w_ih = jax.random.uniform(keys[k_i + 0], (4 * H, in_dim),
                                      minval=-scale, maxval=scale)
            w_hh = jax.random.uniform(keys[k_i + 1], (4 * H, H),
                                      minval=-scale, maxval=scale)
            b_ih = jax.random.uniform(keys[k_i + 2], (4 * H,),
                                      minval=-scale, maxval=scale)
            b_hh = jax.random.uniform(keys[k_i + 3], (4 * H,),
                                      minval=-scale, maxval=scale)
            dir_params.append((w_ih, w_hh, b_ih, b_hh))
            k_i += 4
        layers.append(tuple(dir_params))
    return {"embedding": emb, "lstm_layers": layers}


def _reference_forward(word_idxs, params):
    """Pure-JAX reference (embedding lookup + PyTorch-semantics biLSTM)."""
    x = params["embedding"][word_idxs]            # (T, E)
    T = x.shape[0]
    hs, cs = [], []
    for (fwd_p, bwd_p) in params["lstm_layers"]:
        outs, finals = [], []
        for d, (w_ih, w_hh, b_ih, b_hh) in enumerate((fwd_p, bwd_p)):
            H = w_hh.shape[1]
            h = jnp.zeros((H,), jnp.float32)
            c = jnp.zeros((H,), jnp.float32)
            order = range(T) if d == 0 else range(T - 1, -1, -1)
            ys = [None] * T
            for t in order:
                gates = w_ih @ x[t] + b_ih + w_hh @ h + b_hh
                i = jax.nn.sigmoid(gates[0:H])
                f = jax.nn.sigmoid(gates[H:2 * H])
                g = jnp.tanh(gates[2 * H:3 * H])
                o = jax.nn.sigmoid(gates[3 * H:4 * H])
                c = f * c + i * g
                h = o * jnp.tanh(c)
                ys[t] = h
            outs.append(jnp.stack(ys))
            finals.append((h, c))
        x = jnp.concatenate(outs, axis=-1)        # (T, 2H) -> next layer input
        for (h, c) in finals:
            hs.append(h)
            cs.append(c)
    return x, jnp.stack(hs), jnp.stack(cs)


if __name__ == "__main__":
    # Small shapes consistent with the module's forward.
    VOCAB_SIZE = 50        # len(word_to_ix)
    EMBEDDING_DIM = 32     # word_embedding_dim
    HIDDEN_DIM = 64        # hidden_dim (output_dim); per-direction H = 32
    NUM_LAYERS = 2
    SEQ_LEN = 8

    key = jax.random.PRNGKey(0)
    k_params, k_sentence = jax.random.split(key)

    params = init_params(k_params, VOCAB_SIZE, EMBEDDING_DIM,
                         HIDDEN_DIM, NUM_LAYERS)
    prepared = prepare_params(params)   # hoisted: transposes / bias combine / pad

    # "sentence" after word_to_ix mapping: a sequence of word indices.
    sentence_idxs = jax.random.randint(k_sentence, (SEQ_LEN,), 0, VOCAB_SIZE,
                                       dtype=jnp.int32)

    lstm_out, (h_n, c_n) = bilstm_word_embedding_lookup(sentence_idxs, prepared)
    jax.block_until_ready(lstm_out)
    jax.block_until_ready(h_n)
    jax.block_until_ready(c_n)

    assert lstm_out.shape == (SEQ_LEN, 1, HIDDEN_DIM)
    assert h_n.shape == (NUM_LAYERS * 2, 1, HIDDEN_DIM // 2)
    assert c_n.shape == (NUM_LAYERS * 2, 1, HIDDEN_DIM // 2)
    assert bool(jnp.all(jnp.isfinite(lstm_out)))

    # Correctness check against a pure-JAX reference (loose tol: MXU precision).
    ref_out, ref_h, ref_c = _reference_forward(sentence_idxs, params)
    assert float(jnp.max(jnp.abs(lstm_out[:, 0, :] - ref_out))) < 3e-2
    assert float(jnp.max(jnp.abs(h_n[:, 0, :] - ref_h))) < 3e-2
    assert float(jnp.max(jnp.abs(c_n[:, 0, :] - ref_c))) < 3e-2

    print("KERNEL_OK")
</pallas_src>

<mosaic_0001>
module attributes {stable_mosaic.version = 11 : i64} {
  func.func @_fused_bilstm_kernel(%arg0: memref<8x1xi32, #tpu.memory_space<vmem>>, %arg1: memref<128x32xf32, #tpu.memory_space<vmem>>, %arg2: memref<32x128xf32, #tpu.memory_space<vmem>>, %arg3: memref<32x128xf32, #tpu.memory_space<vmem>>, %arg4: memref<1x128xf32, #tpu.memory_space<vmem>>, %arg5: memref<32x128xf32, #tpu.memory_space<vmem>>, %arg6: memref<32x128xf32, #tpu.memory_space<vmem>>, %arg7: memref<1x128xf32, #tpu.memory_space<vmem>>, %arg8: memref<64x128xf32, #tpu.memory_space<vmem>>, %arg9: memref<32x128xf32, #tpu.memory_space<vmem>>, %arg10: memref<1x128xf32, #tpu.memory_space<vmem>>, %arg11: memref<64x128xf32, #tpu.memory_space<vmem>>, %arg12: memref<32x128xf32, #tpu.memory_space<vmem>>, %arg13: memref<1x128xf32, #tpu.memory_space<vmem>>, %arg14: memref<8x64xf32, #tpu.memory_space<vmem>>, %arg15: memref<4x32xf32, #tpu.memory_space<vmem>>, %arg16: memref<4x32xf32, #tpu.memory_space<vmem>>, %arg17: memref<8x128xf32, #tpu.memory_space<vmem>>, %arg18: memref<8x128xf32, #tpu.memory_space<vmem>>) attributes {dimension_semantics = [], scalar_prefetch = 0 : i64, scratch_operands = 2 : i64, tpu.core_type = #tpu.core_type<tc>} {
    %c0 = arith.constant 0 : index
    %c0_0 = arith.constant 0 : index
    %0 = vector.load %arg0[%c0, %c0_0] : memref<8x1xi32, #tpu.memory_space<vmem>>, vector<8x1xi32>
    %1 = tpu.iota {dimensions = array<i32: 1>} : vector<8x128xi32>
    %2 = vector.broadcast %0 : vector<8x1xi32> to vector<8x128xi32>
    %3 = arith.cmpi eq, %1, %2 : vector<8x128xi32>
    %4 = arith.extui %3 : vector<8x128xi1> to vector<8x128xi32>
    %5 = arith.sitofp %4 : vector<8x128xi32> to vector<8x128xf32>
    %c0_1 = arith.constant 0 : index
    %c0_2 = arith.constant 0 : index
    %6 = vector.load %arg1[%c0_1, %c0_2] : memref<128x32xf32, #tpu.memory_space<vmem>>, vector<128x32xf32>
    %cst = arith.constant dense<0.000000e+00> : vector<8x32xf32>
    %7 = tpu.matmul %5, %6, %cst {dimension_numbers = #tpu.dot_dimension_numbers<[1], [0], [0], [1], [0, 0, 1, 1], [], []>} : vector<8x128xf32>, vector<128x32xf32>, vector<8x32xf32> -> vector<8x32xf32>
    %c0_3 = arith.constant 0 : index
    %c0_4 = arith.constant 0 : index
    %8 = vector.load %arg4[%c0_3, %c0_4] : memref<1x128xf32, #tpu.memory_space<vmem>>, vector<1x128xf32>
    %c0_5 = arith.constant 0 : index
    %c0_6 = arith.constant 0 : index
    %9 = vector.load %arg7[%c0_5, %c0_6] : memref<1x128xf32, #tpu.memory_space<vmem>>, vector<1x128xf32>
    %c0_7 = arith.constant 0 : index
    %c0_8 = arith.constant 0 : index
    %10 = vector.load %arg2[%c0_7, %c0_8] : memref<32x128xf32, #tpu.memory_space<vmem>>, vector<32x128xf32>
    %cst_9 = arith.constant dense<0.000000e+00> : vector<8x128xf32>
    %11 = tpu.matmul %7, %10, %cst_9 {dimension_numbers = #tpu.dot_dimension_numbers<[1], [0], [0], [1], [0, 0, 1, 1], [], []>} : vector<8x32xf32>, vector<32x128xf32>, vector<8x128xf32> -> vector<8x128xf32>
    %12 = vector.broadcast %8 : vector<1x128xf32> to vector<8x128xf32>
    %13 = arith.addf %11, %12 : vector<8x128xf32>
    %c0_10 = arith.constant 0 : index
    %c0_11 = arith.constant 0 : index
    %14 = vector.load %arg17[%c0_10, %c0_11] : memref<8x128xf32, #tpu.memory_space<vmem>>, vector<8x128xf32>
    tpu.vector_store %arg17[%c0_10, %c0_11], %13 {strides = array<i32>} : memref<8x128xf32, #tpu.memory_space<vmem>>, vector<8x128xf32>,
    %c0_12 = arith.constant 0 : index
    %c0_13 = arith.constant 0 : index
    %15 = vector.load %arg5[%c0_12, %c0_13] : memref<32x128xf32, #tpu.memory_space<vmem>>, vector<32x128xf32>
    %cst_14 = arith.constant dense<0.000000e+00> : vector<8x128xf32>
    %16 = tpu.matmul %7, %15, %cst_14 {dimension_numbers = #tpu.dot_dimension_numbers<[1], [0], [0], [1], [0, 0, 1, 1], [], []>} : vector<8x32xf32>, vector<32x128xf32>, vector<8x128xf32> -> vector<8x128xf32>
    %17 = vector.broadcast %9 : vector<1x128xf32> to vector<8x128xf32>
    %18 = arith.addf %16, %17 : vector<8x128xf32>
    %c0_15 = arith.constant 0 : index
    %c0_16 = arith.constant 0 : index
    %19 = vector.load %arg18[%c0_15, %c0_16] : memref<8x128xf32, #tpu.memory_space<vmem>>, vector<8x128xf32>
    tpu.vector_store %arg18[%c0_15, %c0_16], %18 {strides = array<i32>} : memref<8x128xf32, #tpu.memory_space<vmem>>, vector<8x128xf32>,
    %c0_17 = arith.constant 0 : index
    %c0_18 = arith.constant 0 : index
    %20 = vector.load %arg3[%c0_17, %c0_18] : memref<32x128xf32, #tpu.memory_space<vmem>>, vector<32x128xf32>
    %c0_19 = arith.constant 0 : index
    %c0_20 = arith.constant 0 : index
    %21 = vector.load %arg6[%c0_19, %c0_20] : memref<32x128xf32, #tpu.memory_space<vmem>>, vector<32x128xf32>
    %cst_21 = arith.constant 0.000000e+00 : f32
    %22 = vector.broadcast %cst_21 : f32 to vector<1x32xf32>
    %c0_i32 = arith.constant 0 : i32
    %c7_i32 = arith.constant 7 : i32
    %23 = arith.subi %c7_i32, %c0_i32 : i32
    %24 = arith.index_cast %c0_i32 : i32 to index
    %c0_22 = arith.constant 0 : index
    %25 = vector.load %arg17[%24, %c0_22] : memref<8x128xf32, #tpu.memory_space<vmem>>, vector<1x128xf32>
    %cst_23 = arith.constant dense<0.000000e+00> : vector<1x128xf32>
    %26 = tpu.matmul %22, %20, %cst_23 {dimension_numbers = #tpu.dot_dimension_numbers<[1], [0], [0], [1], [0, 0, 1, 1], [], []>} : vector<1x32xf32>, vector<32x128xf32>, vector<1x128xf32> -> vector<1x128xf32>
    %27 = arith.addf %25, %26 : vector<1x128xf32>
    %28 = arith.index_cast %23 : i32 to index
    %c0_24 = arith.constant 0 : index
    %29 = vector.load %arg18[%28, %c0_24] : memref<8x128xf32, #tpu.memory_space<vmem>>, vector<1x128xf32>
    %cst_25 = arith.constant dense<0.000000e+00> : vector<1x128xf32>
    %30 = tpu.matmul %22, %21, %cst_25 {dimension_numbers = #tpu.dot_dimension_numbers<[1], [0], [0], [1], [0, 0, 1, 1], [], []>} : vector<1x32xf32>, vector<32x128xf32>, vector<1x128xf32> -> vector<1x128xf32>
    %31 = arith.addf %29, %30 : vector<1x128xf32>
    %32 = arith.negf %27 : vector<1x128xf32>
    %33 = math.exp %32 : vector<1x128xf32>
    %cst_26 = arith.constant 1.000000e+00 : f32
    %34 = vector.broadcast %cst_26 : f32 to vector<1x128xf32>
    %35 = arith.addf %34, %33 : vector<1x128xf32>
    %36 = arith.divf %34, %35 : vector<1x128xf32>
    %37 = math.tanh %27 : vector<1x128xf32>
    %38 = vector.extract_strided_slice %36 {offsets = [0, 0], sizes = [1, 32], strides = [1, 1]} : vector<1x128xf32> to vector<1x32xf32>
    %39 = vector.extract_strided_slice %36 {offsets = [0, 32], sizes = [1, 32], strides = [1, 1]} : vector<1x128xf32> to vector<1x32xf32>
    %40 = vector.extract_strided_slice %37 {offsets = [0, 64], sizes = [1, 32], strides = [1, 1]} : vector<1x128xf32> to vector<1x32xf32>
    %41 = vector.extract_strided_slice %36 {offsets = [0, 96], sizes = [1, 32], strides = [1, 1]} : vector<1x128xf32> to vector<1x32xf32>
    %42 = arith.mulf %39, %22 : vector<1x32xf32>
    %43 = arith.mulf %38, %40 : vector<1x32xf32>
    %44 = arith.addf %42, %43 : vector<1x32xf32>
    %45 = math.tanh %44 : vector<1x32xf32>
    %46 = arith.mulf %41, %45 : vector<1x32xf32>
    %47 = arith.negf %31 : vector<1x128xf32>
    %48 = math.exp %47 : vector<1x128xf32>
    %cst_27 = arith.constant 1.000000e+00 : f32
    %49 = vector.broadcast %cst_27 : f32 to vector<1x128xf32>
    %50 = arith.addf %49, %48 : vector<1x128xf32>
    %51 = arith.divf %49, %50 : vector<1x128xf32>
    %52 = math.tanh %31 : vector<1x128xf32>
    %53 = vector.extract_strided_slice %51 {offsets = [0, 0], sizes = [1, 32], strides = [1, 1]} : vector<1x128xf32> to vector<1x32xf32>
    %54 = vector.extract_strided_slice %51 {offsets = [0, 32], sizes = [1, 32], strides = [1, 1]} : vector<1x128xf32> to vector<1x32xf32>
    %55 = vector.extract_strided_slice %52 {offsets = [0, 64], sizes = [1, 32], strides = [1, 1]} : vector<1x128xf32> to vector<1x32xf32>
    %56 = vector.extract_strided_slice %51 {offsets = [0, 96], sizes = [1, 32], strides = [1, 1]} : vector<1x128xf32> to vector<1x32xf32>
    %57 = arith.mulf %54, %22 : vector<1x32xf32>
    %58 = arith.mulf %53, %55 : vector<1x32xf32>
    %59 = arith.addf %57, %58 : vector<1x32xf32>
    %60 = math.tanh %59 : vector<1x32xf32>
    %61 = arith.mulf %56, %60 : vector<1x32xf32>
    %62 = arith.index_cast %c0_i32 : i32 to index
    %c0_28 = arith.constant 0 : index
    %63 = vector.load %arg14[%62, %c0_28] : memref<8x64xf32, #tpu.memory_space<vmem>>, vector<1x32xf32>
    tpu.vector_store %arg14[%62, %c0_28], %46 {strides = array<i32>} : memref<8x64xf32, #tpu.memory_space<vmem>>, vector<1x32xf32>,
    %64 = arith.index_cast %23 : i32 to index
    %c32 = arith.constant 32 : index
    %65 = vector.load %arg14[%64, %c32] : memref<8x64xf32, #tpu.memory_space<vmem>>, vector<1x32xf32>
    tpu.vector_store %arg14[%64, %c32], %61 {strides = array<i32>} : memref<8x64xf32, #tpu.memory_space<vmem>>, vector<1x32xf32>,
    %c1_i32 = arith.constant 1 : i32
    %c7_i32_29 = arith.constant 7 : i32
    %66 = arith.subi %c7_i32_29, %c1_i32 : i32
    %67 = arith.index_cast %c1_i32 : i32 to index
    %c0_30 = arith.constant 0 : index
    %68 = vector.load %arg17[%67, %c0_30] : memref<8x128xf32, #tpu.memory_space<vmem>>, vector<1x128xf32>
    %cst_31 = arith.constant dense<0.000000e+00> : vector<1x128xf32>
    %69 = tpu.matmul %46, %20, %cst_31 {dimension_numbers = #tpu.dot_dimension_numbers<[1], [0], [0], [1], [0, 0, 1, 1], [], []>} : vector<1x32xf32>, vector<32x128xf32>, vector<1x128xf32> -> vector<1x128xf32>
    %70 = arith.addf %68, %69 : vector<1x128xf32>
    %71 = arith.index_cast %66 : i32 to index
    %c0_32 = arith.constant 0 : index
    %72 = vector.load %arg18[%71, %c0_32] : memref<8x128xf32, #tpu.memory_space<vmem>>, vector<1x128xf32>
    %cst_33 = arith.constant dense<0.000000e+00> : vector<1x128xf32>
    %73 = tpu.matmul %61, %21, %cst_33 {dimension_numbers = #tpu.dot_dimension_numbers<[1], [0], [0], [1], [0, 0, 1, 1], [], []>} : vector<1x32xf32>, vector<32x128xf32>, vector<1x128xf32> -> vector<1x128xf32>
    %74 = arith.addf %72, %73 : vector<1x128xf32>
    %75 = arith.negf %70 : vector<1x128xf32>
    %76 = math.exp %75 : vector<1x128xf32>
    %cst_34 = arith.constant 1.000000e+00 : f32
    %77 = vector.broadcast %cst_34 : f32 to vector<1x128xf32>
    %78 = arith.addf %77, %76 : vector<1x128xf32>
    %79 = arith.divf %77, %78 : vector<1x128xf32>
    %80 = math.tanh %70 : vector<1x128xf32>
    %81 = vector.extract_strided_slice %79 {offsets = [0, 0], sizes = [1, 32], strides = [1, 1]} : vector<1x128xf32> to vector<1x32xf32>
    %82 = vector.extract_strided_slice %79 {offsets = [0, 32], sizes = [1, 32], strides = [1, 1]} : vector<1x128xf32> to vector<1x32xf32>
    %83 = vector.extract_strided_slice %80 {offsets = [0, 64], sizes = [1, 32], strides = [1, 1]} : vector<1x128xf32> to vector<1x32xf32>
    %84 = vector.extract_strided_slice %79 {offsets = [0, 96], sizes = [1, 32], strides = [1, 1]} : vector<1x128xf32> to vector<1x32xf32>
    %85 = arith.mulf %82, %44 : vector<1x32xf32>
    %86 = arith.mulf %81, %83 : vector<1x32xf32>
    %87 = arith.addf %85, %86 : vector<1x32xf32>
    %88 = math.tanh %87 : vector<1x32xf32>
    %89 = arith.mulf %84, %88 : vector<1x32xf32>
    %90 = arith.negf %74 : vector<1x128xf32>
    %91 = math.exp %90 : vector<1x128xf32>
    %cst_35 = arith.constant 1.000000e+00 : f32
    %92 = vector.broadcast %cst_35 : f32 to vector<1x128xf32>
    %93 = arith.addf %92, %91 : vector<1x128xf32>
    %94 = arith.divf %92, %93 : vector<1x128xf32>
    %95 = math.tanh %74 : vector<1x128xf32>
    %96 = vector.extract_strided_slice %94 {offsets = [0, 0], sizes = [1, 32], strides = [1, 1]} : vector<1x128xf32> to vector<1x32xf32>
    %97 = vector.extract_strided_slice %94 {offsets = [0, 32], sizes = [1, 32], strides = [1, 1]} : vector<1x128xf32> to vector<1x32xf32>
    %98 = vector.extract_strided_slice %95 {offsets = [0, 64], sizes = [1, 32], strides = [1, 1]} : vector<1x128xf32> to vector<1x32xf32>
    %99 = vector.extract_strided_slice %94 {offsets = [0, 96], sizes = [1, 32], strides = [1, 1]} : vector<1x128xf32> to vector<1x32xf32>
    %100 = arith.mulf %97, %59 : vector<1x32xf32>
    %101 = arith.mulf %96, %98 : vector<1x32xf32>
    %102 = arith.addf %100, %101 : vector<1x32xf32>
    %103 = math.tanh %102 : vector<1x32xf32>
    %104 = arith.mulf %99, %103 : vector<1x32xf32>
    %105 = arith.index_cast %c1_i32 : i32 to index
    %c0_36 = arith.constant 0 : index
    %106 = vector.load %arg14[%105, %c0_36] : memref<8x64xf32, #tpu.memory_space<vmem>>, vector<1x32xf32>
    tpu.vector_store %arg14[%105, %c0_36], %89 {strides = array<i32>} : memref<8x64xf32, #tpu.memory_space<vmem>>, vector<1x32xf32>,
    %107 = arith.index_cast %66 : i32 to index
    %c32_37 = arith.constant 32 : index
    %108 = vector.load %arg14[%107, %c32_37] : memref<8x64xf32, #tpu.memory_space<vmem>>, vector<1x32xf32>
    tpu.vector_store %arg14[%107, %c32_37], %104 {strides = array<i32>} : memref<8x64xf32, #tpu.memory_space<vmem>>, vector<1x32xf32>,
    %c2_i32 = arith.constant 2 : i32
    %c7_i32_38 = arith.constant 7 : i32
    %109 = arith.subi %c7_i32_38, %c2_i32 : i32
    %110 = arith.index_cast %c2_i32 : i32 to index
    %c0_39 = arith.constant 0 : index
    %111 = vector.load %arg17[%110, %c0_39] : memref<8x128xf32, #tpu.memory_space<vmem>>, vector<1x128xf32>
    %cst_40 = arith.constant dense<0.000000e+00> : vector<1x128xf32>
    %112 = tpu.matmul %89, %20, %cst_40 {dimension_numbers = #tpu.dot_dimension_numbers<[1], [0], [0], [1], [0, 0, 1, 1], [], []>} : vector<1x32xf32>, vector<32x128xf32>, vector<1x128xf32> -> vector<1x128xf32>
    %113 = arith.addf %111, %112 : vector<1x128xf32>
    %114 = arith.index_cast %109 : i32 to index
    %c0_41 = arith.constant 0 : index
    %115 = vector.load %arg18[%114, %c0_41] : memref<8x128xf32, #tpu.memory_space<vmem>>, vector<1x128xf32>
    %cst_42 = arith.constant dense<0.000000e+00> : vector<1x128xf32>
    %116 = tpu.matmul %104, %21, %cst_42 {dimension_numbers = #tpu.dot_dimension_numbers<[1], [0], [0], [1], [0, 0, 1, 1], [], []>} : vector<1x32xf32>, vector<32x128xf32>, vector<1x128xf32> -> vector<1x128xf32>
    %117 = arith.addf %115, %116 : vector<1x128xf32>
    %118 = arith.negf %113 : vector<1x128xf32>
    %119 = math.exp %118 : vector<1x128xf32>
    %cst_43 = arith.constant 1.000000e+00 : f32
    %120 = vector.broadcast %cst_43 : f32 to vector<1x128xf32>
    %121 = arith.addf %120, %119 : vector<1x128xf32>
    %122 = arith.divf %120, %121 : vector<1x128xf32>
    %123 = math.tanh %113 : vector<1x128xf32>
    %124 = vector.extract_strided_slice %122 {offsets = [0, 0], sizes = [1, 32], strides = [1, 1]} : vector<1x128xf32> to vector<1x32xf32>
    %125 = vector.extract_strided_slice %122 {offsets = [0, 32], sizes = [1, 32], strides = [1, 1]} : vector<1x128xf32> to vector<1x32xf32>
    %126 = vector.extract_strided_slice %123 {offsets = [0, 64], sizes = [1, 32], strides = [1, 1]} : vector<1x128xf32> to vector<1x32xf32>
    %127 = vector.extract_strided_slice %122 {offsets = [0, 96], sizes = [1, 32], strides = [1, 1]} : vector<1x128xf32> to vector<1x32xf32>
    %128 = arith.mulf %125, %87 : vector<1x32xf32>
    %129 = arith.mulf %124, %126 : vector<1x32xf32>
    %130 = arith.addf %128, %129 : vector<1x32xf32>
    %131 = math.tanh %130 : vector<1x32xf32>
    %132 = arith.mulf %127, %131 : vector<1x32xf32>
    %133 = arith.negf %117 : vector<1x128xf32>
    %134 = math.exp %133 : vector<1x128xf32>
    %cst_44 = arith.constant 1.000000e+00 : f32
    %135 = vector.broadcast %cst_44 : f32 to vector<1x128xf32>
    %136 = arith.addf %135, %134 : vector<1x128xf32>
    %137 = arith.divf %135, %136 : vector<1x128xf32>
    %138 = math.tanh %117 : vector<1x128xf32>
    %139 = vector.extract_strided_slice %137 {offsets = [0, 0], sizes = [1, 32], strides = [1, 1]} : vector<1x128xf32> to vector<1x32xf32>
    %140 = vector.extract_strided_slice %137 {offsets = [0, 32], sizes = [1, 32], strides = [1, 1]} : vector<1x128xf32> to vector<1x32xf32>
    %141 = vector.extract_strided_slice %138 {offsets = [0, 64], sizes = [1, 32], strides = [1, 1]} : vector<1x128xf32> to vector<1x32xf32>
    %142 = vector.extract_strided_slice %137 {offsets = [0, 96], sizes = [1, 32], strides = [1, 1]} : vector<1x128xf32> to vector<1x32xf32>
    %143 = arith.mulf %140, %102 : vector<1x32xf32>
    %144 = arith.mulf %139, %141 : vector<1x32xf32>
    %145 = arith.addf %143, %144 : vector<1x32xf32>
    %146 = math.tanh %145 : vector<1x32xf32>
    %147 = arith.mulf %142, %146 : vector<1x32xf32>
    %148 = arith.index_cast %c2_i32 : i32 to index
    %c0_45 = arith.constant 0 : index
    %149 = vector.load %arg14[%148, %c0_45] : memref<8x64xf32, #tpu.memory_space<vmem>>, vector<1x32xf32>
    tpu.vector_store %arg14[%148, %c0_45], %132 {strides = array<i32>} : memref<8x64xf32, #tpu.memory_space<vmem>>, vector<1x32xf32>,
    %150 = arith.index_cast %109 : i32 to index
    %c32_46 = arith.constant 32 : index
    %151 = vector.load %arg14[%150, %c32_46] : memref<8x64xf32, #tpu.memory_space<vmem>>, vector<1x32xf32>
    tpu.vector_store %arg14[%150, %c32_46], %147 {strides = array<i32>} : memref<8x64xf32, #tpu.memory_space<vmem>>, vector<1x32xf32>,
    %c3_i32 = arith.constant 3 : i32
    %c7_i32_47 = arith.constant 7 : i32
    %152 = arith.subi %c7_i32_47, %c3_i32 : i32
    %153 = arith.index_cast %c3_i32 : i32 to index
    %c0_48 = arith.constant 0 : index
    %154 = vector.load %arg17[%153, %c0_48] : memref<8x128xf32, #tpu.memory_space<vmem>>, vector<1x128xf32>
    %cst_49 = arith.constant dense<0.000000e+00> : vector<1x128xf32>
    %155 = tpu.matmul %132, %20, %cst_49 {dimension_numbers = #tpu.dot_dimension_numbers<[1], [0], [0], [1], [0, 0, 1, 1], [], []>} : vector<1x32xf32>, vector<32x128xf32>, vector<1x128xf32> -> vector<1x128xf32>
    %156 = arith.addf %154, %155 : vector<1x128xf32>
    %157 = arith.index_cast %152 : i32 to index
    %c0_50 = arith.constant 0 : index
    %158 = vector.load %arg18[%157, %c0_50] : memref<8x128xf32, #tpu.memory_space<vmem>>, vector<1x128xf32>
    %cst_51 = arith.constant dense<0.000000e+00> : vector<1x128xf32>
    %159 = tpu.matmul %147, %21, %cst_51 {dimension_numbers = #tpu.dot_dimension_numbers<[1], [0], [0], [1], [0, 0, 1, 1], [], []>} : vector<1x32xf32>, vector<32x128xf32>, vector<1x128xf32> -> vector<1x128xf32>
    %160 = arith.addf %158, %159 : vector<1x128xf32>
    %161 = arith.negf %156 : vector<1x128xf32>
    %162 = math.exp %161 : vector<1x128xf32>
    %cst_52 = arith.constant 1.000000e+00 : f32
    %163 = vector.broadcast %cst_52 : f32 to vector<1x128xf32>
    %164 = arith.addf %163, %162 : vector<1x128xf32>
    %165 = arith.divf %163, %164 : vector<1x128xf32>
    %166 = math.tanh %156 : vector<1x128xf32>
    %167 = vector.extract_strided_slice %165 {offsets = [0, 0], sizes = [1, 32], strides = [1, 1]} : vector<1x128xf32> to vector<1x32xf32>
    %168 = vector.extract_strided_slice %165 {offsets = [0, 32], sizes = [1, 32], strides = [1, 1]} : vector<1x128xf32> to vector<1x32xf32>
    %169 = vector.extract_strided_slice %166 {offsets = [0, 64], sizes = [1, 32], strides = [1, 1]} : vector<1x128xf32> to vector<1x32xf32>
    %170 = vector.extract_strided_slice %165 {offsets = [0, 96], sizes = [1, 32], strides = [1, 1]} : vector<1x128xf32> to vector<1x32xf32>
    %171 = arith.mulf %168, %130 : vector<1x32xf32>
    %172 = arith.mulf %167, %169 : vector<1x32xf32>
    %173 = arith.addf %171, %172 : vector<1x32xf32>
    %174 = math.tanh %173 : vector<1x32xf32>
    %175 = arith.mulf %170, %174 : vector<1x32xf32>
    %176 = arith.negf %160 : vector<1x128xf32>
    %177 = math.exp %176 : vector<1x128xf32>
    %cst_53 = arith.constant 1.000000e+00 : f32
    %178 = vector.broadcast %cst_53 : f32 to vector<1x128xf32>
    %179 = arith.addf %178, %177 : vector<1x128xf32>
    %180 = arith.divf %178, %179 : vector<1x128xf32>
    %181 = math.tanh %160 : vector<1x128xf32>
    %182 = vector.extract_strided_slice %180 {offsets = [0, 0], sizes = [1, 32], strides = [1, 1]} : vector<1x128xf32> to vector<1x32xf32>
    %183 = vector.extract_strided_slice %180 {offsets = [0, 32], sizes = [1, 32], strides = [1, 1]} : vector<1x128xf32> to vector<1x32xf32>
    %184 = vector.extract_strided_slice %181 {offsets = [0, 64], sizes = [1, 32], strides = [1, 1]} : vector<1x128xf32> to vector<1x32xf32>
    %185 = vector.extract_strided_slice %180 {offsets = [0, 96], sizes = [1, 32], strides = [1, 1]} : vector<1x128xf32> to vector<1x32xf32>
    %186 = arith.mulf %183, %145 : vector<1x32xf32>
    %187 = arith.mulf %182, %184 : vector<1x32xf32>
    %188 = arith.addf %186, %187 : vector<1x32xf32>
    %189 = math.tanh %188 : vector<1x32xf32>
    %190 = arith.mulf %185, %189 : vector<1x32xf32>
    %191 = arith.index_cast %c3_i32 : i32 to index
    %c0_54 = arith.constant 0 : index
    %192 = vector.load %arg14[%191, %c0_54] : memref<8x64xf32, #tpu.memory_space<vmem>>, vector<1x32xf32>
    tpu.vector_store %arg14[%191, %c0_54], %175 {strides = array<i32>} : memref<8x64xf32, #tpu.memory_space<vmem>>, vector<1x32xf32>,
    %193 = arith.index_cast %152 : i32 to index
    %c32_55 = arith.constant 32 : index
    %194 = vector.load %arg14[%193, %c32_55] : memref<8x64xf32, #tpu.memory_space<vmem>>, vector<1x32xf32>
    tpu.vector_store %arg14[%193, %c32_55], %190 {strides = array<i32>} : memref<8x64xf32, #tpu.memory_space<vmem>>, vector<1x32xf32>,
    %c4_i32 = arith.constant 4 : i32
    %c7_i32_56 = arith.constant 7 : i32
    %195 = arith.subi %c7_i32_56, %c4_i32 : i32
    %196 = arith.index_cast %c4_i32 : i32 to index
    %c0_57 = arith.constant 0 : index
    %197 = vector.load %arg17[%196, %c0_57] : memref<8x128xf32, #tpu.memory_space<vmem>>, vector<1x128xf32>
    %cst_58 = arith.constant dense<0.000000e+00> : vector<1x128xf32>
    %198 = tpu.matmul %175, %20, %cst_58 {dimension_numbers = #tpu.dot_dimension_numbers<[1], [0], [0], [1], [0, 0, 1, 1], [], []>} : vector<1x32xf32>, vector<32x128xf32>, vector<1x128xf32> -> vector<1x128xf32>
    %199 = arith.addf %197, %198 : vector<1x128xf32>
    %200 = arith.index_cast %195 : i32 to index
    %c0_59 = arith.constant 0 : index
    %201 = vector.load %arg18[%200, %c0_59] : memref<8x128xf32, #tpu.memory_space<vmem>>, vector<1x128xf32>
    %cst_60 = arith.constant dense<0.000000e+00> : vector<1x128xf32>
    %202 = tpu.matmul %190, %21, %cst_60 {dimension_numbers = #tpu.dot_dimension_numbers<[1], [0], [0], [1], [0, 0, 1, 1], [], []>} : vector<1x32xf32>, vector<32x128xf32>, vector<1x128xf32> -> vector<1x128xf32>
    %203 = arith.addf %201, %202 : vector<1x128xf32>
    %204 = arith.negf %199 : vector<1x128xf32>
    %205 = math.exp %204 : vector<1x128xf32>
    %cst_61 = arith.constant 1.000000e+00 : f32
    %206 = vector.broadcast %cst_61 : f32 to vector<1x128xf32>
    %207 = arith.addf %206, %205 : vector<1x128xf32>
    %208 = arith.divf %206, %207 : vector<1x128xf32>
    %209 = math.tanh %199 : vector<1x128xf32>
    %210 = vector.extract_strided_slice %208 {offsets = [0, 0], sizes = [1, 32], strides = [1, 1]} : vector<1x128xf32> to vector<1x32xf32>
    %211 = vector.extract_strided_slice %208 {offsets = [0, 32], sizes = [1, 32], strides = [1, 1]} : vector<1x128xf32> to vector<1x32xf32>
    %212 = vector.extract_strided_slice %209 {offsets = [0, 64], sizes = [1, 32], strides = [1, 1]} : vector<1x128xf32> to vector<1x32xf32>
    %213 = vector.extract_strided_slice %208 {offsets = [0, 96], sizes = [1, 32], strides = [1, 1]} : vector<1x128xf32> to vector<1x32xf32>
    %214 = arith.mulf %211, %173 : vector<1x32xf32>
    %215 = arith.mulf %210, %212 : vector<1x32xf32>
    %216 = arith.addf %214, %215 : vector<1x32xf32>
    %217 = math.tanh %216 : vector<1x32xf32>
    %218 = arith.mulf %213, %217 : vector<1x32xf32>
    %219 = arith.negf %203 : vector<1x128xf32>
    %220 = math.exp %219 : vector<1x128xf32>
    %cst_62 = arith.constant 1.000000e+00 : f32
    %221 = vector.broadcast %cst_62 : f32 to vector<1x128xf32>
    %222 = arith.addf %221, %220 : vector<1x128xf32>
    %223 = arith.divf %221, %222 : vector<1x128xf32>
    %224 = math.tanh %203 : vector<1x128xf32>
    %225 = vector.extract_strided_slice %223 {offsets = [0, 0], sizes = [1, 32], strides = [1, 1]} : vector<1x128xf32> to vector<1x32xf32>
    %226 = vector.extract_strided_slice %223 {offsets = [0, 32], sizes = [1, 32], strides = [1, 1]} : vector<1x128xf32> to vector<1x32xf32>
    %227 = vector.extract_strided_slice %224 {offsets = [0, 64], sizes = [1, 32], strides = [1, 1]} : vector<1x128xf32> to vector<1x32xf32>
    %228 = vector.extract_strided_slice %223 {offsets = [0, 96], sizes = [1, 32], strides = [1, 1]} : vector<1x128xf32> to vector<1x32xf32>
    %229 = arith.mulf %226, %188 : vector<1x32xf32>
    %230 = arith.mulf %225, %227 : vector<1x32xf32>
    %231 = arith.addf %229, %230 : vector<1x32xf32>
    %232 = math.tanh %231 : vector<1x32xf32>
    %233 = arith.mulf %228, %232 : vector<1x32xf32>
    %234 = arith.index_cast %c4_i32 : i32 to index
    %c0_63 = arith.constant 0 : index
    %235 = vector.load %arg14[%234, %c0_63] : memref<8x64xf32, #tpu.memory_space<vmem>>, vector<1x32xf32>
    tpu.vector_store %arg14[%234, %c0_63], %218 {strides = array<i32>} : memref<8x64xf32, #tpu.memory_space<vmem>>, vector<1x32xf32>,
    %236 = arith.index_cast %195 : i32 to index
    %c32_64 = arith.constant 32 : index
    %237 = vector.load %arg14[%236, %c32_64] : memref<8x64xf32, #tpu.memory_space<vmem>>, vector<1x32xf32>
    tpu.vector_store %arg14[%236, %c32_64], %233 {strides = array<i32>} : memref<8x64xf32, #tpu.memory_space<vmem>>, vector<1x32xf32>,
    %c5_i32 = arith.constant 5 : i32
    %c7_i32_65 = arith.constant 7 : i32
    %238 = arith.subi %c7_i32_65, %c5_i32 : i32
    %239 = arith.index_cast %c5_i32 : i32 to index
    %c0_66 = arith.constant 0 : index
    %240 = vector.load %arg17[%239, %c0_66] : memref<8x128xf32, #tpu.memory_space<vmem>>, vector<1x128xf32>
    %cst_67 = arith.constant dense<0.000000e+00> : vector<1x128xf32>
    %241 = tpu.matmul %218, %20, %cst_67 {dimension_numbers = #tpu.dot_dimension_numbers<[1], [0], [0], [1], [0, 0, 1, 1], [], []>} : vector<1x32xf32>, vector<32x128xf32>, vector<1x128xf32> -> vector<1x128xf32>
    %242 = arith.addf %240, %241 : vector<1x128xf32>
    %243 = arith.index_cast %238 : i32 to index
    %c0_68 = arith.constant 0 : index
    %244 = vector.load %arg18[%243, %c0_68] : memref<8x128xf32, #tpu.memory_space<vmem>>, vector<1x128xf32>
    %cst_69 = arith.constant dense<0.000000e+00> : vector<1x128xf32>
    %245 = tpu.matmul %233, %21, %cst_69 {dimension_numbers = #tpu.dot_dimension_numbers<[1], [0], [0], [1], [0, 0, 1, 1], [], []>} : vector<1x32xf32>, vector<32x128xf32>, vector<1x128xf32> -> vector<1x128xf32>
    %246 = arith.addf %244, %245 : vector<1x128xf32>
    %247 = arith.negf %242 : vector<1x128xf32>
    %248 = math.exp %247 : vector<1x128xf32>
    %cst_70 = arith.constant 1.000000e+00 : f32
    %249 = vector.broadcast %cst_70 : f32 to vector<1x128xf32>
    %250 = arith.addf %249, %248 : vector<1x128xf32>
    %251 = arith.divf %249, %250 : vector<1x128xf32>
    %252 = math.tanh %242 : vector<1x128xf32>
    %253 = vector.extract_strided_slice %251 {offsets = [0, 0], sizes = [1, 32], strides = [1, 1]} : vector<1x128xf32> to vector<1x32xf32>
    %254 = vector.extract_strided_slice %251 {offsets = [0, 32], sizes = [1, 32], strides = [1, 1]} : vector<1x128xf32> to vector<1x32xf32>
    %255 = vector.extract_strided_slice %252 {offsets = [0, 64], sizes = [1, 32], strides = [1, 1]} : vector<1x128xf32> to vector<1x32xf32>
    %256 = vector.extract_strided_slice %251 {offsets = [0, 96], sizes = [1, 32], strides = [1, 1]} : vector<1x128xf32> to vector<1x32xf32>
    %257 = arith.mulf %254, %216 : vector<1x32xf32>
    %258 = arith.mulf %253, %255 : vector<1x32xf32>
    %259 = arith.addf %257, %258 : vector<1x32xf32>
    %260 = math.tanh %259 : vector<1x32xf32>
    %261 = arith.mulf %256, %260 : vector<1x32xf32>
    %262 = arith.negf %246 : vector<1x128xf32>
    %263 = math.exp %262 : vector<1x128xf32>
    %cst_71 = arith.constant 1.000000e+00 : f32
    %264 = vector.broadcast %cst_71 : f32 to vector<1x128xf32>
    %265 = arith.addf %264, %263 : vector<1x128xf32>
    %266 = arith.divf %264, %265 : vector<1x128xf32>
    %267 = math.tanh %246 : vector<1x128xf32>
    %268 = vector.extract_strided_slice %266 {offsets = [0, 0], sizes = [1, 32], strides = [1, 1]} : vector<1x128xf32> to vector<1x32xf32>
    %269 = vector.extract_strided_slice %266 {offsets = [0, 32], sizes = [1, 32], strides = [1, 1]} : vector<1x128xf32> to vector<1x32xf32>
    %270 = vector.extract_strided_slice %267 {offsets = [0, 64], sizes = [1, 32], strides = [1, 1]} : vector<1x128xf32> to vector<1x32xf32>
    %271 = vector.extract_strided_slice %266 {offsets = [0, 96], sizes = [1, 32], strides = [1, 1]} : vector<1x128xf32> to vector<1x32xf32>
    %272 = arith.mulf %269, %231 : vector<1x32xf32>
    %273 = arith.mulf %268, %270 : vector<1x32xf32>
    %274 = arith.addf %272, %273 : vector<1x32xf32>
    %275 = math.tanh %274 : vector<1x32xf32>
    %276 = arith.mulf %271, %275 : vector<1x32xf32>
    %277 = arith.index_cast %c5_i32 : i32 to index
    %c0_72 = arith.constant 0 : index
    %278 = vector.load %arg14[%277, %c0_72] : memref<8x64xf32, #tpu.memory_space<vmem>>, vector<1x32xf32>
    tpu.vector_store %arg14[%277, %c0_72], %261 {strides = array<i32>} : memref<8x64xf32, #tpu.memory_space<vmem>>, vector<1x32xf32>,
    %279 = arith.index_cast %238 : i32 to index
    %c32_73 = arith.constant 32 : index
    %280 = vector.load %arg14[%279, %c32_73] : memref<8x64xf32, #tpu.memory_space<vmem>>, vector<1x32xf32>
    tpu.vector_store %arg14[%279, %c32_73], %276 {strides = array<i32>} : memref<8x64xf32, #tpu.memory_space<vmem>>, vector<1x32xf32>,
    %c6_i32 = arith.constant 6 : i32
    %c7_i32_74 = arith.constant 7 : i32
    %281 = arith.subi %c7_i32_74, %c6_i32 : i32
    %282 = arith.index_cast %c6_i32 : i32 to index
    %c0_75 = arith.constant 0 : index
    %283 = vector.load %arg17[%282, %c0_75] : memref<8x128xf32, #tpu.memory_space<vmem>>, vector<1x128xf32>
    %cst_76 = arith.constant dense<0.000000e+00> : vector<1x128xf32>
    %284 = tpu.matmul %261, %20, %cst_76 {dimension_numbers = #tpu.dot_dimension_numbers<[1], [0], [0], [1], [0, 0, 1, 1], [], []>} : vector<1x32xf32>, vector<32x128xf32>, vector<1x128xf32> -> vector<1x128xf32>
    %285 = arith.addf %283, %284 : vector<1x128xf32>
    %286 = arith.index_cast %281 : i32 to index
    %c0_77 = arith.constant 0 : index
    %287 = vector.load %arg18[%286, %c0_77] : memref<8x128xf32, #tpu.memory_space<vmem>>, vector<1x128xf32>
    %cst_78 = arith.constant dense<0.000000e+00> : vector<1x128xf32>
    %288 = tpu.matmul %276, %21, %cst_78 {dimension_numbers = #tpu.dot_dimension_numbers<[1], [0], [0], [1], [0, 0, 1, 1], [], []>} : vector<1x32xf32>, vector<32x128xf32>, vector<1x128xf32> -> vector<1x128xf32>
    %289 = arith.addf %287, %288 : vector<1x128xf32>
    %290 = arith.negf %285 : vector<1x128xf32>
    %291 = math.exp %290 : vector<1x128xf32>
    %cst_79 = arith.constant 1.000000e+00 : f32
    %292 = vector.broadcast %cst_79 : f32 to vector<1x128xf32>
    %293 = arith.addf %292, %291 : vector<1x128xf32>
    %294 = arith.divf %292, %293 : vector<1x128xf32>
    %295 = math.tanh %285 : vector<1x128xf32>
    %296 = vector.extract_strided_slice %294 {offsets = [0, 0], sizes = [1, 32], strides = [1, 1]} : vector<1x128xf32> to vector<1x32xf32>
    %297 = vector.extract_strided_slice %294 {offsets = [0, 32], sizes = [1, 32], strides = [1, 1]} : vector<1x128xf32> to vector<1x32xf32>
    %298 = vector.extract_strided_slice %295 {offsets = [0, 64], sizes = [1, 32], strides = [1, 1]} : vector<1x128xf32> to vector<1x32xf32>
    %299 = vector.extract_strided_slice %294 {offsets = [0, 96], sizes = [1, 32], strides = [1, 1]} : vector<1x128xf32> to vector<1x32xf32>
    %300 = arith.mulf %297, %259 : vector<1x32xf32>
    %301 = arith.mulf %296, %298 : vector<1x32xf32>
    %302 = arith.addf %300, %301 : vector<1x32xf32>
    %303 = math.tanh %302 : vector<1x32xf32>
    %304 = arith.mulf %299, %303 : vector<1x32xf32>
    %305 = arith.negf %289 : vector<1x128xf32>
    %306 = math.exp %305 : vector<1x128xf32>
    %cst_80 = arith.constant 1.000000e+00 : f32
    %307 = vector.broadcast %cst_80 : f32 to vector<1x128xf32>
    %308 = arith.addf %307, %306 : vector<1x128xf32>
    %309 = arith.divf %307, %308 : vector<1x128xf32>
    %310 = math.tanh %289 : vector<1x128xf32>
    %311 = vector.extract_strided_slice %309 {offsets = [0, 0], sizes = [1, 32], strides = [1, 1]} : vector<1x128xf32> to vector<1x32xf32>
    %312 = vector.extract_strided_slice %309 {offsets = [0, 32], sizes = [1, 32], strides = [1, 1]} : vector<1x128xf32> to vector<1x32xf32>
    %313 = vector.extract_strided_slice %310 {offsets = [0, 64], sizes = [1, 32], strides = [1, 1]} : vector<1x128xf32> to vector<1x32xf32>
    %314 = vector.extract_strided_slice %309 {offsets = [0, 96], sizes = [1, 32], strides = [1, 1]} : vector<1x128xf32> to vector<1x32xf32>
    %315 = arith.mulf %312, %274 : vector<1x32xf32>
    %316 = arith.mulf %311, %313 : vector<1x32xf32>
    %317 = arith.addf %315, %316 : vector<1x32xf32>
    %318 = math.tanh %317 : vector<1x32xf32>
    %319 = arith.mulf %314, %318 : vector<1x32xf32>
    %320 = arith.index_cast %c6_i32 : i32 to index
    %c0_81 = arith.constant 0 : index
    %321 = vector.load %arg14[%320, %c0_81] : memref<8x64xf32, #tpu.memory_space<vmem>>, vector<1x32xf32>
    tpu.vector_store %arg14[%320, %c0_81], %304 {strides = array<i32>} : memref<8x64xf32, #tpu.memory_space<vmem>>, vector<1x32xf32>,
    %322 = arith.index_cast %281 : i32 to index
    %c32_82 = arith.constant 32 : index
    %323 = vector.load %arg14[%322, %c32_82] : memref<8x64xf32, #tpu.memory_space<vmem>>, vector<1x32xf32>
    tpu.vector_store %arg14[%322, %c32_82], %319 {strides = array<i32>} : memref<8x64xf32, #tpu.memory_space<vmem>>, vector<1x32xf32>,
    %c7_i32_83 = arith.constant 7 : i32
    %c7_i32_84 = arith.constant 7 : i32
    %324 = arith.subi %c7_i32_84, %c7_i32_83 : i32
    %325 = arith.index_cast %c7_i32_83 : i32 to index
    %c0_85 = arith.constant 0 : index
    %326 = vector.load %arg17[%325, %c0_85] : memref<8x128xf32, #tpu.memory_space<vmem>>, vector<1x128xf32>
    %cst_86 = arith.constant dense<0.000000e+00> : vector<1x128xf32>
    %327 = tpu.matmul %304, %20, %cst_86 {dimension_numbers = #tpu.dot_dimension_numbers<[1], [0], [0], [1], [0, 0, 1, 1], [], []>} : vector<1x32xf32>, vector<32x128xf32>, vector<1x128xf32> -> vector<1x128xf32>
    %328 = arith.addf %326, %327 : vector<1x128xf32>
    %329 = arith.index_cast %324 : i32 to index
    %c0_87 = arith.constant 0 : index
    %330 = vector.load %arg18[%329, %c0_87] : memref<8x128xf32, #tpu.memory_space<vmem>>, vector<1x128xf32>
    %cst_88 = arith.constant dense<0.000000e+00> : vector<1x128xf32>
    %331 = tpu.matmul %319, %21, %cst_88 {dimension_numbers = #tpu.dot_dimension_numbers<[1], [0], [0], [1], [0, 0, 1, 1], [], []>} : vector<1x32xf32>, vector<32x128xf32>, vector<1x128xf32> -> vector<1x128xf32>
    %332 = arith.addf %330, %331 : vector<1x128xf32>
    %333 = arith.negf %328 : vector<1x128xf32>
    %334 = math.exp %333 : vector<1x128xf32>
    %cst_89 = arith.constant 1.000000e+00 : f32
    %335 = vector.broadcast %cst_89 : f32 to vector<1x128xf32>
    %336 = arith.addf %335, %334 : vector<1x128xf32>
    %337 = arith.divf %335, %336 : vector<1x128xf32>
    %338 = math.tanh %328 : vector<1x128xf32>
    %339 = vector.extract_strided_slice %337 {offsets = [0, 0], sizes = [1, 32], strides = [1, 1]} : vector<1x128xf32> to vector<1x32xf32>
    %340 = vector.extract_strided_slice %337 {offsets = [0, 32], sizes = [1, 32], strides = [1, 1]} : vector<1x128xf32> to vector<1x32xf32>
    %341 = vector.extract_strided_slice %338 {offsets = [0, 64], sizes = [1, 32], strides = [1, 1]} : vector<1x128xf32> to vector<1x32xf32>
    %342 = vector.extract_strided_slice %337 {offsets = [0, 96], sizes = [1, 32], strides = [1, 1]} : vector<1x128xf32> to vector<1x32xf32>
    %343 = arith.mulf %340, %302 : vector<1x32xf32>
    %344 = arith.mulf %339, %341 : vector<1x32xf32>
    %345 = arith.addf %343, %344 : vector<1x32xf32>
    %346 = math.tanh %345 : vector<1x32xf32>
    %347 = arith.mulf %342, %346 : vector<1x32xf32>
    %348 = arith.negf %332 : vector<1x128xf32>
    %349 = math.exp %348 : vector<1x128xf32>
    %cst_90 = arith.constant 1.000000e+00 : f32
    %350 = vector.broadcast %cst_90 : f32 to vector<1x128xf32>
    %351 = arith.addf %350, %349 : vector<1x128xf32>
    %352 = arith.divf %350, %351 : vector<1x128xf32>
    %353 = math.tanh %332 : vector<1x128xf32>
    %354 = vector.extract_strided_slice %352 {offsets = [0, 0], sizes = [1, 32], strides = [1, 1]} : vector<1x128xf32> to vector<1x32xf32>
    %355 = vector.extract_strided_slice %352 {offsets = [0, 32], sizes = [1, 32], strides = [1, 1]} : vector<1x128xf32> to vector<1x32xf32>
    %356 = vector.extract_strided_slice %353 {offsets = [0, 64], sizes = [1, 32], strides = [1, 1]} : vector<1x128xf32> to vector<1x32xf32>
    %357 = vector.extract_strided_slice %352 {offsets = [0, 96], sizes = [1, 32], strides = [1, 1]} : vector<1x128xf32> to vector<1x32xf32>
    %358 = arith.mulf %355, %317 : vector<1x32xf32>
    %359 = arith.mulf %354, %356 : vector<1x32xf32>
    %360 = arith.addf %358, %359 : vector<1x32xf32>
    %361 = math.tanh %360 : vector<1x32xf32>
    %362 = arith.mulf %357, %361 : vector<1x32xf32>
    %363 = arith.index_cast %c7_i32_83 : i32 to index
    %c0_91 = arith.constant 0 : index
    %364 = vector.load %arg14[%363, %c0_91] : memref<8x64xf32, #tpu.memory_space<vmem>>, vector<1x32xf32>
    tpu.vector_store %arg14[%363, %c0_91], %347 {strides = array<i32>} : memref<8x64xf32, #tpu.memory_space<vmem>>, vector<1x32xf32>,
    %365 = arith.index_cast %324 : i32 to index
    %c32_92 = arith.constant 32 : index
    %366 = vector.load %arg14[%365, %c32_92] : memref<8x64xf32, #tpu.memory_space<vmem>>, vector<1x32xf32>
    tpu.vector_store %arg14[%365, %c32_92], %362 {strides = array<i32>} : memref<8x64xf32, #tpu.memory_space<vmem>>, vector<1x32xf32>,
    %c8_i32 = arith.constant 8 : i32
    %c0_93 = arith.constant 0 : index
    %c0_94 = arith.constant 0 : index
    %367 = vector.load %arg15[%c0_93, %c0_94] : memref<4x32xf32, #tpu.memory_space<vmem>>, vector<1x32xf32>
    tpu.vector_store %arg15[%c0_93, %c0_94], %347 {strides = array<i32>} : memref<4x32xf32, #tpu.memory_space<vmem>>, vector<1x32xf32>,
    %c1 = arith.constant 1 : index
    %c0_95 = arith.constant 0 : index
    %368 = vector.load %arg15[%c1, %c0_95] : memref<4x32xf32, #tpu.memory_space<vmem>>, vector<1x32xf32>
    tpu.vector_store %arg15[%c1, %c0_95], %362 {strides = array<i32>} : memref<4x32xf32, #tpu.memory_space<vmem>>, vector<1x32xf32>,
    %c0_96 = arith.constant 0 : index
    %c0_97 = arith.constant 0 : index
    %369 = vector.load %arg16[%c0_96, %c0_97] : memref<4x32xf32, #tpu.memory_space<vmem>>, vector<1x32xf32>
    tpu.vector_store %arg16[%c0_96, %c0_97], %345 {strides = array<i32>} : memref<4x32xf32, #tpu.memory_space<vmem>>, vector<1x32xf32>,
    %c1_98 = arith.constant 1 : index
    %c0_99 = arith.constant 0 : index
    %370 = vector.load %arg16[%c1_98, %c0_99] : memref<4x32xf32, #tpu.memory_space<vmem>>, vector<1x32xf32>
    tpu.vector_store %arg16[%c1_98, %c0_99], %360 {strides = array<i32>} : memref<4x32xf32, #tpu.memory_space<vmem>>, vector<1x32xf32>,
    %c0_100 = arith.constant 0 : index
    %c0_101 = arith.constant 0 : index
    %371 = vector.load %arg10[%c0_100, %c0_101] : memref<1x128xf32, #tpu.memory_space<vmem>>, vector<1x128xf32>
    %c0_102 = arith.constant 0 : index
    %c0_103 = arith.constant 0 : index
    %372 = vector.load %arg13[%c0_102, %c0_103] : memref<1x128xf32, #tpu.memory_space<vmem>>, vector<1x128xf32>
    %c0_104 = arith.constant 0 : index
    %c0_105 = arith.constant 0 : index
    %373 = vector.load %arg14[%c0_104, %c0_105] : memref<8x64xf32, #tpu.memory_space<vmem>>, vector<8x64xf32>
    %c0_106 = arith.constant 0 : index
    %c0_107 = arith.constant 0 : index
    %374 = vector.load %arg8[%c0_106, %c0_107] : memref<64x128xf32, #tpu.memory_space<vmem>>, vector<64x128xf32>
    %cst_108 = arith.constant dense<0.000000e+00> : vector<8x128xf32>
    %375 = tpu.matmul %373, %374, %cst_108 {dimension_numbers = #tpu.dot_dimension_numbers<[1], [0], [0], [1], [0, 0, 1, 1], [], []>} : vector<8x64xf32>, vector<64x128xf32>, vector<8x128xf32> -> vector<8x128xf32>
    %376 = vector.broadcast %371 : vector<1x128xf32> to vector<8x128xf32>
    %377 = arith.addf %375, %376 : vector<8x128xf32>
    %c0_109 = arith.constant 0 : index
    %c0_110 = arith.constant 0 : index
    %378 = vector.load %arg17[%c0_109, %c0_110] : memref<8x128xf32, #tpu.memory_space<vmem>>, vector<8x128xf32>
    tpu.vector_store %arg17[%c0_109, %c0_110], %377 {strides = array<i32>} : memref<8x128xf32, #tpu.memory_space<vmem>>, vector<8x128xf32>,
    %c0_111 = arith.constant 0 : index
    %c0_112 = arith.constant 0 : index
    %379 = vector.load %arg11[%c0_111, %c0_112] : memref<64x128xf32, #tpu.memory_space<vmem>>, vector<64x128xf32>
    %cst_113 = arith.constant dense<0.000000e+00> : vector<8x128xf32>
    %380 = tpu.matmul %373, %379, %cst_113 {dimension_numbers = #tpu.dot_dimension_numbers<[1], [0], [0], [1], [0, 0, 1, 1], [], []>} : vector<8x64xf32>, vector<64x128xf32>, vector<8x128xf32> -> vector<8x128xf32>
    %381 = vector.broadcast %372 : vector<1x128xf32> to vector<8x128xf32>
    %382 = arith.addf %380, %381 : vector<8x128xf32>
    %c0_114 = arith.constant 0 : index
    %c0_115 = arith.constant 0 : index
    %383 = vector.load %arg18[%c0_114, %c0_115] : memref<8x128xf32, #tpu.memory_space<vmem>>, vector<8x128xf32>
    tpu.vector_store %arg18[%c0_114, %c0_115], %382 {strides = array<i32>} : memref<8x128xf32, #tpu.memory_space<vmem>>, vector<8x128xf32>,
    %c0_116 = arith.constant 0 : index
    %c0_117 = arith.constant 0 : index
    %384 = vector.load %arg9[%c0_116, %c0_117] : memref<32x128xf32, #tpu.memory_space<vmem>>, vector<32x128xf32>
    %c0_118 = arith.constant 0 : index
    %c0_119 = arith.constant 0 : index
    %385 = vector.load %arg12[%c0_118, %c0_119] : memref<32x128xf32, #tpu.memory_space<vmem>>, vector<32x128xf32>
    %cst_120 = arith.constant 0.000000e+00 : f32
    %386 = vector.broadcast %cst_120 : f32 to vector<1x32xf32>
    %c0_i32_121 = arith.constant 0 : i32
    %c7_i32_122 = arith.constant 7 : i32
    %387 = arith.subi %c7_i32_122, %c0_i32_121 : i32
    %388 = arith.index_cast %c0_i32_121 : i32 to index
    %c0_123 = arith.constant 0 : index
    %389 = vector.load %arg17[%388, %c0_123] : memref<8x128xf32, #tpu.memory_space<vmem>>, vector<1x128xf32>
    %cst_124 = arith.constant dense<0.000000e+00> : vector<1x128xf32>
    %390 = tpu.matmul %386, %384, %cst_124 {dimension_numbers = #tpu.dot_dimension_numbers<[1], [0], [0], [1], [0, 0, 1, 1], [], []>} : vector<1x32xf32>, vector<32x128xf32>, vector<1x128xf32> -> vector<1x128xf32>
    %391 = arith.addf %389, %390 : vector<1x128xf32>
    %392 = arith.index_cast %387 : i32 to index
    %c0_125 = arith.constant 0 : index
    %393 = vector.load %arg18[%392, %c0_125] : memref<8x128xf32, #tpu.memory_space<vmem>>, vector<1x128xf32>
    %cst_126 = arith.constant dense<0.000000e+00> : vector<1x128xf32>
    %394 = tpu.matmul %386, %385, %cst_126 {dimension_numbers = #tpu.dot_dimension_numbers<[1], [0], [0], [1], [0, 0, 1, 1], [], []>} : vector<1x32xf32>, vector<32x128xf32>, vector<1x128xf32> -> vector<1x128xf32>
    %395 = arith.addf %393, %394 : vector<1x128xf32>
    %396 = arith.negf %391 : vector<1x128xf32>
    %397 = math.exp %396 : vector<1x128xf32>
    %cst_127 = arith.constant 1.000000e+00 : f32
    %398 = vector.broadcast %cst_127 : f32 to vector<1x128xf32>
    %399 = arith.addf %398, %397 : vector<1x128xf32>
    %400 = arith.divf %398, %399 : vector<1x128xf32>
    %401 = math.tanh %391 : vector<1x128xf32>
    %402 = vector.extract_strided_slice %400 {offsets = [0, 0], sizes = [1, 32], strides = [1, 1]} : vector<1x128xf32> to vector<1x32xf32>
    %403 = vector.extract_strided_slice %400 {offsets = [0, 32], sizes = [1, 32], strides = [1, 1]} : vector<1x128xf32> to vector<1x32xf32>
    %404 = vector.extract_strided_slice %401 {offsets = [0, 64], sizes = [1, 32], strides = [1, 1]} : vector<1x128xf32> to vector<1x32xf32>
    %405 = vector.extract_strided_slice %400 {offsets = [0, 96], sizes = [1, 32], strides = [1, 1]} : vector<1x128xf32> to vector<1x32xf32>
    %406 = arith.mulf %403, %386 : vector<1x32xf32>
    %407 = arith.mulf %402, %404 : vector<1x32xf32>
    %408 = arith.addf %406, %407 : vector<1x32xf32>
    %409 = math.tanh %408 : vector<1x32xf32>
    %410 = arith.mulf %405, %409 : vector<1x32xf32>
    %411 = arith.negf %395 : vector<1x128xf32>
    %412 = math.exp %411 : vector<1x128xf32>
    %cst_128 = arith.constant 1.000000e+00 : f32
    %413 = vector.broadcast %cst_128 : f32 to vector<1x128xf32>
    %414 = arith.addf %413, %412 : vector<1x128xf32>
    %415 = arith.divf %413, %414 : vector<1x128xf32>
    %416 = math.tanh %395 : vector<1x128xf32>
    %417 = vector.extract_strided_slice %415 {offsets = [0, 0], sizes = [1, 32], strides = [1, 1]} : vector<1x128xf32> to vector<1x32xf32>
    %418 = vector.extract_strided_slice %415 {offsets = [0, 32], sizes = [1, 32], strides = [1, 1]} : vector<1x128xf32> to vector<1x32xf32>
    %419 = vector.extract_strided_slice %416 {offsets = [0, 64], sizes = [1, 32], strides = [1, 1]} : vector<1x128xf32> to vector<1x32xf32>
    %420 = vector.extract_strided_slice %415 {offsets = [0, 96], sizes = [1, 32], strides = [1, 1]} : vector<1x128xf32> to vector<1x32xf32>
    %421 = arith.mulf %418, %386 : vector<1x32xf32>
    %422 = arith.mulf %417, %419 : vector<1x32xf32>
    %423 = arith.addf %421, %422 : vector<1x32xf32>
    %424 = math.tanh %423 : vector<1x32xf32>
    %425 = arith.mulf %420, %424 : vector<1x32xf32>
    %426 = arith.index_cast %c0_i32_121 : i32 to index
    %c0_129 = arith.constant 0 : index
    %427 = vector.load %arg14[%426, %c0_129] : memref<8x64xf32, #tpu.memory_space<vmem>>, vector<1x32xf32>
    tpu.vector_store %arg14[%426, %c0_129], %410 {strides = array<i32>} : memref<8x64xf32, #tpu.memory_space<vmem>>, vector<1x32xf32>,
    %428 = arith.index_cast %387 : i32 to index
    %c32_130 = arith.constant 32 : index
    %429 = vector.load %arg14[%428, %c32_130] : memref<8x64xf32, #tpu.memory_space<vmem>>, vector<1x32xf32>
    tpu.vector_store %arg14[%428, %c32_130], %425 {strides = array<i32>} : memref<8x64xf32, #tpu.memory_space<vmem>>, vector<1x32xf32>,
    %c1_i32_131 = arith.constant 1 : i32
    %c7_i32_132 = arith.constant 7 : i32
    %430 = arith.subi %c7_i32_132, %c1_i32_131 : i32
    %431 = arith.index_cast %c1_i32_131 : i32 to index
    %c0_133 = arith.constant 0 : index
    %432 = vector.load %arg17[%431, %c0_133] : memref<8x128xf32, #tpu.memory_space<vmem>>, vector<1x128xf32>
    %cst_134 = arith.constant dense<0.000000e+00> : vector<1x128xf32>
    %433 = tpu.matmul %410, %384, %cst_134 {dimension_numbers = #tpu.dot_dimension_numbers<[1], [0], [0], [1], [0, 0, 1, 1], [], []>} : vector<1x32xf32>, vector<32x128xf32>, vector<1x128xf32> -> vector<1x128xf32>
    %434 = arith.addf %432, %433 : vector<1x128xf32>
    %435 = arith.index_cast %430 : i32 to index
    %c0_135 = arith.constant 0 : index
    %436 = vector.load %arg18[%435, %c0_135] : memref<8x128xf32, #tpu.memory_space<vmem>>, vector<1x128xf32>
    %cst_136 = arith.constant dense<0.000000e+00> : vector<1x128xf32>
    %437 = tpu.matmul %425, %385, %cst_136 {dimension_numbers = #tpu.dot_dimension_numbers<[1], [0], [0], [1], [0, 0, 1, 1], [], []>} : vector<1x32xf32>, vector<32x128xf32>, vector<1x128xf32> -> vector<1x128xf32>
    %438 = arith.addf %436, %437 : vector<1x128xf32>
    %439 = arith.negf %434 : vector<1x128xf32>
    %440 = math.exp %439 : vector<1x128xf32>
    %cst_137 = arith.constant 1.000000e+00 : f32
    %441 = vector.broadcast %cst_137 : f32 to vector<1x128xf32>
    %442 = arith.addf %441, %440 : vector<1x128xf32>
    %443 = arith.divf %441, %442 : vector<1x128xf32>
    %444 = math.tanh %434 : vector<1x128xf32>
    %445 = vector.extract_strided_slice %443 {offsets = [0, 0], sizes = [1, 32], strides = [1, 1]} : vector<1x128xf32> to vector<1x32xf32>
    %446 = vector.extract_strided_slice %443 {offsets = [0, 32], sizes = [1, 32], strides = [1, 1]} : vector<1x128xf32> to vector<1x32xf32>
    %447 = vector.extract_strided_slice %444 {offsets = [0, 64], sizes = [1, 32], strides = [1, 1]} : vector<1x128xf32> to vector<1x32xf32>
    %448 = vector.extract_strided_slice %443 {offsets = [0, 96], sizes = [1, 32], strides = [1, 1]} : vector<1x128xf32> to vector<1x32xf32>
    %449 = arith.mulf %446, %408 : vector<1x32xf32>
    %450 = arith.mulf %445, %447 : vector<1x32xf32>
    %451 = arith.addf %449, %450 : vector<1x32xf32>
    %452 = math.tanh %451 : vector<1x32xf32>
    %453 = arith.mulf %448, %452 : vector<1x32xf32>
    %454 = arith.negf %438 : vector<1x128xf32>
    %455 = math.exp %454 : vector<1x128xf32>
    %cst_138 = arith.constant 1.000000e+00 : f32
    %456 = vector.broadcast %cst_138 : f32 to vector<1x128xf32>
    %457 = arith.addf %456, %455 : vector<1x128xf32>
    %458 = arith.divf %456, %457 : vector<1x128xf32>
    %459 = math.tanh %438 : vector<1x128xf32>
    %460 = vector.extract_strided_slice %458 {offsets = [0, 0], sizes = [1, 32], strides = [1, 1]} : vector<1x128xf32> to vector<1x32xf32>
    %461 = vector.extract_strided_slice %458 {offsets = [0, 32], sizes = [1, 32], strides = [1, 1]} : vector<1x128xf32> to vector<1x32xf32>
    %462 = vector.extract_strided_slice %459 {offsets = [0, 64], sizes = [1, 32], strides = [1, 1]} : vector<1x128xf32> to vector<1x32xf32>
    %463 = vector.extract_strided_slice %458 {offsets = [0, 96], sizes = [1, 32], strides = [1, 1]} : vector<1x128xf32> to vector<1x32xf32>
    %464 = arith.mulf %461, %423 : vector<1x32xf32>
    %465 = arith.mulf %460, %462 : vector<1x32xf32>
    %466 = arith.addf %464, %465 : vector<1x32xf32>
    %467 = math.tanh %466 : vector<1x32xf32>
    %468 = arith.mulf %463, %467 : vector<1x32xf32>
    %469 = arith.index_cast %c1_i32_131 : i32 to index
    %c0_139 = arith.constant 0 : index
    %470 = vector.load %arg14[%469, %c0_139] : memref<8x64xf32, #tpu.memory_space<vmem>>, vector<1x32xf32>
    tpu.vector_store %arg14[%469, %c0_139], %453 {strides = array<i32>} : memref<8x64xf32, #tpu.memory_space<vmem>>, vector<1x32xf32>,
    %471 = arith.index_cast %430 : i32 to index
    %c32_140 = arith.constant 32 : index
    %472 = vector.load %arg14[%471, %c32_140] : memref<8x64xf32, #tpu.memory_space<vmem>>, vector<1x32xf32>
    tpu.vector_store %arg14[%471, %c32_140], %468 {strides = array<i32>} : memref<8x64xf32, #tpu.memory_space<vmem>>, vector<1x32xf32>,
    %c2_i32_141 = arith.constant 2 : i32
    %c7_i32_142 = arith.constant 7 : i32
    %473 = arith.subi %c7_i32_142, %c2_i32_141 : i32
    %474 = arith.index_cast %c2_i32_141 : i32 to index
    %c0_143 = arith.constant 0 : index
    %475 = vector.load %arg17[%474, %c0_143] : memref<8x128xf32, #tpu.memory_space<vmem>>, vector<1x128xf32>
    %cst_144 = arith.constant dense<0.000000e+00> : vector<1x128xf32>
    %476 = tpu.matmul %453, %384, %cst_144 {dimension_numbers = #tpu.dot_dimension_numbers<[1], [0], [0], [1], [0, 0, 1, 1], [], []>} : vector<1x32xf32>, vector<32x128xf32>, vector<1x128xf32> -> vector<1x128xf32>
    %477 = arith.addf %475, %476 : vector<1x128xf32>
    %478 = arith.index_cast %473 : i32 to index
    %c0_145 = arith.constant 0 : index
    %479 = vector.load %arg18[%478, %c0_145] : memref<8x128xf32, #tpu.memory_space<vmem>>, vector<1x128xf32>
    %cst_146 = arith.constant dense<0.000000e+00> : vector<1x128xf32>
    %480 = tpu.matmul %468, %385, %cst_146 {dimension_numbers = #tpu.dot_dimension_numbers<[1], [0], [0], [1], [0, 0, 1, 1], [], []>} : vector<1x32xf32>, vector<32x128xf32>, vector<1x128xf32> -> vector<1x128xf32>
    %481 = arith.addf %479, %480 : vector<1x128xf32>
    %482 = arith.negf %477 : vector<1x128xf32>
    %483 = math.exp %482 : vector<1x128xf32>
    %cst_147 = arith.constant 1.000000e+00 : f32
    %484 = vector.broadcast %cst_147 : f32 to vector<1x128xf32>
    %485 = arith.addf %484, %483 : vector<1x128xf32>
    %486 = arith.divf %484, %485 : vector<1x128xf32>
    %487 = math.tanh %477 : vector<1x128xf32>
    %488 = vector.extract_strided_slice %486 {offsets = [0, 0], sizes = [1, 32], strides = [1, 1]} : vector<1x128xf32> to vector<1x32xf32>
    %489 = vector.extract_strided_slice %486 {offsets = [0, 32], sizes = [1, 32], strides = [1, 1]} : vector<1x128xf32> to vector<1x32xf32>
    %490 = vector.extract_strided_slice %487 {offsets = [0, 64], sizes = [1, 32], strides = [1, 1]} : vector<1x128xf32> to vector<1x32xf32>
    %491 = vector.extract_strided_slice %486 {offsets = [0, 96], sizes = [1, 32], strides = [1, 1]} : vector<1x128xf32> to vector<1x32xf32>
    %492 = arith.mulf %489, %451 : vector<1x32xf32>
    %493 = arith.mulf %488, %490 : vector<1x32xf32>
    %494 = arith.addf %492, %493 : vector<1x32xf32>
    %495 = math.tanh %494 : vector<1x32xf32>
    %496 = arith.mulf %491, %495 : vector<1x32xf32>
    %497 = arith.negf %481 : vector<1x128xf32>
    %498 = math.exp %497 : vector<1x128xf32>
    %cst_148 = arith.constant 1.000000e+00 : f32
    %499 = vector.broadcast %cst_148 : f32 to vector<1x128xf32>
    %500 = arith.addf %499, %498 : vector<1x128xf32>
    %501 = arith.divf %499, %500 : vector<1x128xf32>
    %502 = math.tanh %481 : vector<1x128xf32>
    %503 = vector.extract_strided_slice %501 {offsets = [0, 0], sizes = [1, 32], strides = [1, 1]} : vector<1x128xf32> to vector<1x32xf32>
    %504 = vector.extract_strided_slice %501 {offsets = [0, 32], sizes = [1, 32], strides = [1, 1]} : vector<1x128xf32> to vector<1x32xf32>
    %505 = vector.extract_strided_slice %502 {offsets = [0, 64], sizes = [1, 32], strides = [1, 1]} : vector<1x128xf32> to vector<1x32xf32>
    %506 = vector.extract_strided_slice %501 {offsets = [0, 96], sizes = [1, 32], strides = [1, 1]} : vector<1x128xf32> to vector<1x32xf32>
    %507 = arith.mulf %504, %466 : vector<1x32xf32>
    %508 = arith.mulf %503, %505 : vector<1x32xf32>
    %509 = arith.addf %507, %508 : vector<1x32xf32>
    %510 = math.tanh %509 : vector<1x32xf32>
    %511 = arith.mulf %506, %510 : vector<1x32xf32>
    %512 = arith.index_cast %c2_i32_141 : i32 to index
    %c0_149 = arith.constant 0 : index
    %513 = vector.load %arg14[%512, %c0_149] : memref<8x64xf32, #tpu.memory_space<vmem>>, vector<1x32xf32>
    tpu.vector_store %arg14[%512, %c0_149], %496 {strides = array<i32>} : memref<8x64xf32, #tpu.memory_space<vmem>>, vector<1x32xf32>,
    %514 = arith.index_cast %473 : i32 to index
    %c32_150 = arith.constant 32 : index
    %515 = vector.load %arg14[%514, %c32_150] : memref<8x64xf32, #tpu.memory_space<vmem>>, vector<1x32xf32>
    tpu.vector_store %arg14[%514, %c32_150], %511 {strides = array<i32>} : memref<8x64xf32, #tpu.memory_space<vmem>>, vector<1x32xf32>,
    %c3_i32_151 = arith.constant 3 : i32
    %c7_i32_152 = arith.constant 7 : i32
    %516 = arith.subi %c7_i32_152, %c3_i32_151 : i32
    %517 = arith.index_cast %c3_i32_151 : i32 to index
    %c0_153 = arith.constant 0 : index
    %518 = vector.load %arg17[%517, %c0_153] : memref<8x128xf32, #tpu.memory_space<vmem>>, vector<1x128xf32>
    %cst_154 = arith.constant dense<0.000000e+00> : vector<1x128xf32>
    %519 = tpu.matmul %496, %384, %cst_154 {dimension_numbers = #tpu.dot_dimension_numbers<[1], [0], [0], [1], [0, 0, 1, 1], [], []>} : vector<1x32xf32>, vector<32x128xf32>, vector<1x128xf32> -> vector<1x128xf32>
    %520 = arith.addf %518, %519 : vector<1x128xf32>
    %521 = arith.index_cast %516 : i32 to index
    %c0_155 = arith.constant 0 : index
    %522 = vector.load %arg18[%521, %c0_155] : memref<8x128xf32, #tpu.memory_space<vmem>>, vector<1x128xf32>
    %cst_156 = arith.constant dense<0.000000e+00> : vector<1x128xf32>
    %523 = tpu.matmul %511, %385, %cst_156 {dimension_numbers = #tpu.dot_dimension_numbers<[1], [0], [0], [1], [0, 0, 1, 1], [], []>} : vector<1x32xf32>, vector<32x128xf32>, vector<1x128xf32> -> vector<1x128xf32>
    %524 = arith.addf %522, %523 : vector<1x128xf32>
    %525 = arith.negf %520 : vector<1x128xf32>
    %526 = math.exp %525 : vector<1x128xf32>
    %cst_157 = arith.constant 1.000000e+00 : f32
    %527 = vector.broadcast %cst_157 : f32 to vector<1x128xf32>
    %528 = arith.addf %527, %526 : vector<1x128xf32>
    %529 = arith.divf %527, %528 : vector<1x128xf32>
    %530 = math.tanh %520 : vector<1x128xf32>
    %531 = vector.extract_strided_slice %529 {offsets = [0, 0], sizes = [1, 32], strides = [1, 1]} : vector<1x128xf32> to vector<1x32xf32>
    %532 = vector.extract_strided_slice %529 {offsets = [0, 32], sizes = [1, 32], strides = [1, 1]} : vector<1x128xf32> to vector<1x32xf32>
    %533 = vector.extract_strided_slice %530 {offsets = [0, 64], sizes = [1, 32], strides = [1, 1]} : vector<1x128xf32> to vector<1x32xf32>
    %534 = vector.extract_strided_slice %529 {offsets = [0, 96], sizes = [1, 32], strides = [1, 1]} : vector<1x128xf32> to vector<1x32xf32>
    %535 = arith.mulf %532, %494 : vector<1x32xf32>
    %536 = arith.mulf %531, %533 : vector<1x32xf32>
    %537 = arith.addf %535, %536 : vector<1x32xf32>
    %538 = math.tanh %537 : vector<1x32xf32>
    %539 = arith.mulf %534, %538 : vector<1x32xf32>
    %540 = arith.negf %524 : vector<1x128xf32>
    %541 = math.exp %540 : vector<1x128xf32>
    %cst_158 = arith.constant 1.000000e+00 : f32
    %542 = vector.broadcast %cst_158 : f32 to vector<1x128xf32>
    %543 = arith.addf %542, %541 : vector<1x128xf32>
    %544 = arith.divf %542, %543 : vector<1x128xf32>
    %545 = math.tanh %524 : vector<1x128xf32>
    %546 = vector.extract_strided_slice %544 {offsets = [0, 0], sizes = [1, 32], strides = [1, 1]} : vector<1x128xf32> to vector<1x32xf32>
    %547 = vector.extract_strided_slice %544 {offsets = [0, 32], sizes = [1, 32], strides = [1, 1]} : vector<1x128xf32> to vector<1x32xf32>
    %548 = vector.extract_strided_slice %545 {offsets = [0, 64], sizes = [1, 32], strides = [1, 1]} : vector<1x128xf32> to vector<1x32xf32>
    %549 = vector.extract_strided_slice %544 {offsets = [0, 96], sizes = [1, 32], strides = [1, 1]} : vector<1x128xf32> to vector<1x32xf32>
    %550 = arith.mulf %547, %509 : vector<1x32xf32>
    %551 = arith.mulf %546, %548 : vector<1x32xf32>
    %552 = arith.addf %550, %551 : vector<1x32xf32>
    %553 = math.tanh %552 : vector<1x32xf32>
    %554 = arith.mulf %549, %553 : vector<1x32xf32>
    %555 = arith.index_cast %c3_i32_151 : i32 to index
    %c0_159 = arith.constant 0 : index
    %556 = vector.load %arg14[%555, %c0_159] : memref<8x64xf32, #tpu.memory_space<vmem>>, vector<1x32xf32>
    tpu.vector_store %arg14[%555, %c0_159], %539 {strides = array<i32>} : memref<8x64xf32, #tpu.memory_space<vmem>>, vector<1x32xf32>,
    %557 = arith.index_cast %516 : i32 to index
    %c32_160 = arith.constant 32 : index
    %558 = vector.load %arg14[%557, %c32_160] : memref<8x64xf32, #tpu.memory_space<vmem>>, vector<1x32xf32>
    tpu.vector_store %arg14[%557, %c32_160], %554 {strides = array<i32>} : memref<8x64xf32, #tpu.memory_space<vmem>>, vector<1x32xf32>,
    %c4_i32_161 = arith.constant 4 : i32
    %c7_i32_162 = arith.constant 7 : i32
    %559 = arith.subi %c7_i32_162, %c4_i32_161 : i32
    %560 = arith.index_cast %c4_i32_161 : i32 to index
    %c0_163 = arith.constant 0 : index
    %561 = vector.load %arg17[%560, %c0_163] : memref<8x128xf32, #tpu.memory_space<vmem>>, vector<1x128xf32>
    %cst_164 = arith.constant dense<0.000000e+00> : vector<1x128xf32>
    %562 = tpu.matmul %539, %384, %cst_164 {dimension_numbers = #tpu.dot_dimension_numbers<[1], [0], [0], [1], [0, 0, 1, 1], [], []>} : vector<1x32xf32>, vector<32x128xf32>, vector<1x128xf32> -> vector<1x128xf32>
    %563 = arith.addf %561, %562 : vector<1x128xf32>
    %564 = arith.index_cast %559 : i32 to index
    %c0_165 = arith.constant 0 : index
    %565 = vector.load %arg18[%564, %c0_165] : memref<8x128xf32, #tpu.memory_space<vmem>>, vector<1x128xf32>
    %cst_166 = arith.constant dense<0.000000e+00> : vector<1x128xf32>
    %566 = tpu.matmul %554, %385, %cst_166 {dimension_numbers = #tpu.dot_dimension_numbers<[1], [0], [0], [1], [0, 0, 1, 1], [], []>} : vector<1x32xf32>, vector<32x128xf32>, vector<1x128xf32> -> vector<1x128xf32>
    %567 = arith.addf %565, %566 : vector<1x128xf32>
    %568 = arith.negf %563 : vector<1x128xf32>
    %569 = math.exp %568 : vector<1x128xf32>
    %cst_167 = arith.constant 1.000000e+00 : f32
    %570 = vector.broadcast %cst_167 : f32 to vector<1x128xf32>
    %571 = arith.addf %570, %569 : vector<1x128xf32>
    %572 = arith.divf %570, %571 : vector<1x128xf32>
    %573 = math.tanh %563 : vector<1x128xf32>
    %574 = vector.extract_strided_slice %572 {offsets = [0, 0], sizes = [1, 32], strides = [1, 1]} : vector<1x128xf32> to vector<1x32xf32>
    %575 = vector.extract_strided_slice %572 {offsets = [0, 32], sizes = [1, 32], strides = [1, 1]} : vector<1x128xf32> to vector<1x32xf32>
    %576 = vector.extract_strided_slice %573 {offsets = [0, 64], sizes = [1, 32], strides = [1, 1]} : vector<1x128xf32> to vector<1x32xf32>
    %577 = vector.extract_strided_slice %572 {offsets = [0, 96], sizes = [1, 32], strides = [1, 1]} : vector<1x128xf32> to vector<1x32xf32>
    %578 = arith.mulf %575, %537 : vector<1x32xf32>
    %579 = arith.mulf %574, %576 : vector<1x32xf32>
    %580 = arith.addf %578, %579 : vector<1x32xf32>
    %581 = math.tanh %580 : vector<1x32xf32>
    %582 = arith.mulf %577, %581 : vector<1x32xf32>
    %583 = arith.negf %567 : vector<1x128xf32>
    %584 = math.exp %583 : vector<1x128xf32>
    %cst_168 = arith.constant 1.000000e+00 : f32
    %585 = vector.broadcast %cst_168 : f32 to vector<1x128xf32>
    %586 = arith.addf %585, %584 : vector<1x128xf32>
    %587 = arith.divf %585, %586 : vector<1x128xf32>
    %588 = math.tanh %567 : vector<1x128xf32>
    %589 = vector.extract_strided_slice %587 {offsets = [0, 0], sizes = [1, 32], strides = [1, 1]} : vector<1x128xf32> to vector<1x32xf32>
    %590 = vector.extract_strided_slice %587 {offsets = [0, 32], sizes = [1, 32], strides = [1, 1]} : vector<1x128xf32> to vector<1x32xf32>
    %591 = vector.extract_strided_slice %588 {offsets = [0, 64], sizes = [1, 32], strides = [1, 1]} : vector<1x128xf32> to vector<1x32xf32>
    %592 = vector.extract_strided_slice %587 {offsets = [0, 96], sizes = [1, 32], strides = [1, 1]} : vector<1x128xf32> to vector<1x32xf32>
    %593 = arith.mulf %590, %552 : vector<1x32xf32>
    %594 = arith.mulf %589, %591 : vector<1x32xf32>
    %595 = arith.addf %593, %594 : vector<1x32xf32>
    %596 = math.tanh %595 : vector<1x32xf32>
    %597 = arith.mulf %592, %596 : vector<1x32xf32>
    %598 = arith.index_cast %c4_i32_161 : i32 to index
    %c0_169 = arith.constant 0 : index
    %599 = vector.load %arg14[%598, %c0_169] : memref<8x64xf32, #tpu.memory_space<vmem>>, vector<1x32xf32>
    tpu.vector_store %arg14[%598, %c0_169], %582 {strides = array<i32>} : memref<8x64xf32, #tpu.memory_space<vmem>>, vector<1x32xf32>,
    %600 = arith.index_cast %559 : i32 to index
    %c32_170 = arith.constant 32 : index
    %601 = vector.load %arg14[%600, %c32_170] : memref<8x64xf32, #tpu.memory_space<vmem>>, vector<1x32xf32>
    tpu.vector_store %arg14[%600, %c32_170], %597 {strides = array<i32>} : memref<8x64xf32, #tpu.memory_space<vmem>>, vector<1x32xf32>,
    %c5_i32_171 = arith.constant 5 : i32
    %c7_i32_172 = arith.constant 7 : i32
    %602 = arith.subi %c7_i32_172, %c5_i32_171 : i32
    %603 = arith.index_cast %c5_i32_171 : i32 to index
    %c0_173 = arith.constant 0 : index
    %604 = vector.load %arg17[%603, %c0_173] : memref<8x128xf32, #tpu.memory_space<vmem>>, vector<1x128xf32>
    %cst_174 = arith.constant dense<0.000000e+00> : vector<1x128xf32>
    %605 = tpu.matmul %582, %384, %cst_174 {dimension_numbers = #tpu.dot_dimension_numbers<[1], [0], [0], [1], [0, 0, 1, 1], [], []>} : vector<1x32xf32>, vector<32x128xf32>, vector<1x128xf32> -> vector<1x128xf32>
    %606 = arith.addf %604, %605 : vector<1x128xf32>
    %607 = arith.index_cast %602 : i32 to index
    %c0_175 = arith.constant 0 : index
    %608 = vector.load %arg18[%607, %c0_175] : memref<8x128xf32, #tpu.memory_space<vmem>>, vector<1x128xf32>
    %cst_176 = arith.constant dense<0.000000e+00> : vector<1x128xf32>
    %609 = tpu.matmul %597, %385, %cst_176 {dimension_numbers = #tpu.dot_dimension_numbers<[1], [0], [0], [1], [0, 0, 1, 1], [], []>} : vector<1x32xf32>, vector<32x128xf32>, vector<1x128xf32> -> vector<1x128xf32>
    %610 = arith.addf %608, %609 : vector<1x128xf32>
    %611 = arith.negf %606 : vector<1x128xf32>
    %612 = math.exp %611 : vector<1x128xf32>
    %cst_177 = arith.constant 1.000000e+00 : f32
    %613 = vector.broadcast %cst_177 : f32 to vector<1x128xf32>
    %614 = arith.addf %613, %612 : vector<1x128xf32>
    %615 = arith.divf %613, %614 : vector<1x128xf32>
    %616 = math.tanh %606 : vector<1x128xf32>
    %617 = vector.extract_strided_slice %615 {offsets = [0, 0], sizes = [1, 32], strides = [1, 1]} : vector<1x128xf32> to vector<1x32xf32>
    %618 = vector.extract_strided_slice %615 {offsets = [0, 32], sizes = [1, 32], strides = [1, 1]} : vector<1x128xf32> to vector<1x32xf32>
    %619 = vector.extract_strided_slice %616 {offsets = [0, 64], sizes = [1, 32], strides = [1, 1]} : vector<1x128xf32> to vector<1x32xf32>
    %620 = vector.extract_strided_slice %615 {offsets = [0, 96], sizes = [1, 32], strides = [1, 1]} : vector<1x128xf32> to vector<1x32xf32>
    %621 = arith.mulf %618, %580 : vector<1x32xf32>
    %622 = arith.mulf %617, %619 : vector<1x32xf32>
    %623 = arith.addf %621, %622 : vector<1x32xf32>
    %624 = math.tanh %623 : vector<1x32xf32>
    %625 = arith.mulf %620, %624 : vector<1x32xf32>
    %626 = arith.negf %610 : vector<1x128xf32>
    %627 = math.exp %626 : vector<1x128xf32>
    %cst_178 = arith.constant 1.000000e+00 : f32
    %628 = vector.broadcast %cst_178 : f32 to vector<1x128xf32>
    %629 = arith.addf %628, %627 : vector<1x128xf32>
    %630 = arith.divf %628, %629 : vector<1x128xf32>
    %631 = math.tanh %610 : vector<1x128xf32>
    %632 = vector.extract_strided_slice %630 {offsets = [0, 0], sizes = [1, 32], strides = [1, 1]} : vector<1x128xf32> to vector<1x32xf32>
    %633 = vector.extract_strided_slice %630 {offsets = [0, 32], sizes = [1, 32], strides = [1, 1]} : vector<1x128xf32> to vector<1x32xf32>
    %634 = vector.extract_strided_slice %631 {offsets = [0, 64], sizes = [1, 32], strides = [1, 1]} : vector<1x128xf32> to vector<1x32xf32>
    %635 = vector.extract_strided_slice %630 {offsets = [0, 96], sizes = [1, 32], strides = [1, 1]} : vector<1x128xf32> to vector<1x32xf32>
    %636 = arith.mulf %633, %595 : vector<1x32xf32>
    %637 = arith.mulf %632, %634 : vector<1x32xf32>
    %638 = arith.addf %636, %637 : vector<1x32xf32>
    %639 = math.tanh %638 : vector<1x32xf32>
    %640 = arith.mulf %635, %639 : vector<1x32xf32>
    %641 = arith.index_cast %c5_i32_171 : i32 to index
    %c0_179 = arith.constant 0 : index
    %642 = vector.load %arg14[%641, %c0_179] : memref<8x64xf32, #tpu.memory_space<vmem>>, vector<1x32xf32>
    tpu.vector_store %arg14[%641, %c0_179], %625 {strides = array<i32>} : memref<8x64xf32, #tpu.memory_space<vmem>>, vector<1x32xf32>,
    %643 = arith.index_cast %602 : i32 to index
    %c32_180 = arith.constant 32 : index
    %644 = vector.load %arg14[%643, %c32_180] : memref<8x64xf32, #tpu.memory_space<vmem>>, vector<1x32xf32>
    tpu.vector_store %arg14[%643, %c32_180], %640 {strides = array<i32>} : memref<8x64xf32, #tpu.memory_space<vmem>>, vector<1x32xf32>,
    %c6_i32_181 = arith.constant 6 : i32
    %c7_i32_182 = arith.constant 7 : i32
    %645 = arith.subi %c7_i32_182, %c6_i32_181 : i32
    %646 = arith.index_cast %c6_i32_181 : i32 to index
    %c0_183 = arith.constant 0 : index
    %647 = vector.load %arg17[%646, %c0_183] : memref<8x128xf32, #tpu.memory_space<vmem>>, vector<1x128xf32>
    %cst_184 = arith.constant dense<0.000000e+00> : vector<1x128xf32>
    %648 = tpu.matmul %625, %384, %cst_184 {dimension_numbers = #tpu.dot_dimension_numbers<[1], [0], [0], [1], [0, 0, 1, 1], [], []>} : vector<1x32xf32>, vector<32x128xf32>, vector<1x128xf32> -> vector<1x128xf32>
    %649 = arith.addf %647, %648 : vector<1x128xf32>
    %650 = arith.index_cast %645 : i32 to index
    %c0_185 = arith.constant 0 : index
    %651 = vector.load %arg18[%650, %c0_185] : memref<8x128xf32, #tpu.memory_space<vmem>>, vector<1x128xf32>
    %cst_186 = arith.constant dense<0.000000e+00> : vector<1x128xf32>
    %652 = tpu.matmul %640, %385, %cst_186 {dimension_numbers = #tpu.dot_dimension_numbers<[1], [0], [0], [1], [0, 0, 1, 1], [], []>} : vector<1x32xf32>, vector<32x128xf32>, vector<1x128xf32> -> vector<1x128xf32>
    %653 = arith.addf %651, %652 : vector<1x128xf32>
    %654 = arith.negf %649 : vector<1x128xf32>
    %655 = math.exp %654 : vector<1x128xf32>
    %cst_187 = arith.constant 1.000000e+00 : f32
    %656 = vector.broadcast %cst_187 : f32 to vector<1x128xf32>
    %657 = arith.addf %656, %655 : vector<1x128xf32>
    %658 = arith.divf %656, %657 : vector<1x128xf32>
    %659 = math.tanh %649 : vector<1x128xf32>
    %660 = vector.extract_strided_slice %658 {offsets = [0, 0], sizes = [1, 32], strides = [1, 1]} : vector<1x128xf32> to vector<1x32xf32>
    %661 = vector.extract_strided_slice %658 {offsets = [0, 32], sizes = [1, 32], strides = [1, 1]} : vector<1x128xf32> to vector<1x32xf32>
    %662 = vector.extract_strided_slice %659 {offsets = [0, 64], sizes = [1, 32], strides = [1, 1]} : vector<1x128xf32> to vector<1x32xf32>
    %663 = vector.extract_strided_slice %658 {offsets = [0, 96], sizes = [1, 32], strides = [1, 1]} : vector<1x128xf32> to vector<1x32xf32>
    %664 = arith.mulf %661, %623 : vector<1x32xf32>
    %665 = arith.mulf %660, %662 : vector<1x32xf32>
    %666 = arith.addf %664, %665 : vector<1x32xf32>
    %667 = math.tanh %666 : vector<1x32xf32>
    %668 = arith.mulf %663, %667 : vector<1x32xf32>
    %669 = arith.negf %653 : vector<1x128xf32>
    %670 = math.exp %669 : vector<1x128xf32>
    %cst_188 = arith.constant 1.000000e+00 : f32
    %671 = vector.broadcast %cst_188 : f32 to vector<1x128xf32>
    %672 = arith.addf %671, %670 : vector<1x128xf32>
    %673 = arith.divf %671, %672 : vector<1x128xf32>
    %674 = math.tanh %653 : vector<1x128xf32>
    %675 = vector.extract_strided_slice %673 {offsets = [0, 0], sizes = [1, 32], strides = [1, 1]} : vector<1x128xf32> to vector<1x32xf32>
    %676 = vector.extract_strided_slice %673 {offsets = [0, 32], sizes = [1, 32], strides = [1, 1]} : vector<1x128xf32> to vector<1x32xf32>
    %677 = vector.extract_strided_slice %674 {offsets = [0, 64], sizes = [1, 32], strides = [1, 1]} : vector<1x128xf32> to vector<1x32xf32>
    %678 = vector.extract_strided_slice %673 {offsets = [0, 96], sizes = [1, 32], strides = [1, 1]} : vector<1x128xf32> to vector<1x32xf32>
    %679 = arith.mulf %676, %638 : vector<1x32xf32>
    %680 = arith.mulf %675, %677 : vector<1x32xf32>
    %681 = arith.addf %679, %680 : vector<1x32xf32>
    %682 = math.tanh %681 : vector<1x32xf32>
    %683 = arith.mulf %678, %682 : vector<1x32xf32>
    %684 = arith.index_cast %c6_i32_181 : i32 to index
    %c0_189 = arith.constant 0 : index
    %685 = vector.load %arg14[%684, %c0_189] : memref<8x64xf32, #tpu.memory_space<vmem>>, vector<1x32xf32>
    tpu.vector_store %arg14[%684, %c0_189], %668 {strides = array<i32>} : memref<8x64xf32, #tpu.memory_space<vmem>>, vector<1x32xf32>,
    %686 = arith.index_cast %645 : i32 to index
    %c32_190 = arith.constant 32 : index
    %687 = vector.load %arg14[%686, %c32_190] : memref<8x64xf32, #tpu.memory_space<vmem>>, vector<1x32xf32>
    tpu.vector_store %arg14[%686, %c32_190], %683 {strides = array<i32>} : memref<8x64xf32, #tpu.memory_space<vmem>>, vector<1x32xf32>,
    %c7_i32_191 = arith.constant 7 : i32
    %c7_i32_192 = arith.constant 7 : i32
    %688 = arith.subi %c7_i32_192, %c7_i32_191 : i32
    %689 = arith.index_cast %c7_i32_191 : i32 to index
    %c0_193 = arith.constant 0 : index
    %690 = vector.load %arg17[%689, %c0_193] : memref<8x128xf32, #tpu.memory_space<vmem>>, vector<1x128xf32>
    %cst_194 = arith.constant dense<0.000000e+00> : vector<1x128xf32>
    %691 = tpu.matmul %668, %384, %cst_194 {dimension_numbers = #tpu.dot_dimension_numbers<[1], [0], [0], [1], [0, 0, 1, 1], [], []>} : vector<1x32xf32>, vector<32x128xf32>, vector<1x128xf32> -> vector<1x128xf32>
    %692 = arith.addf %690, %691 : vector<1x128xf32>
    %693 = arith.index_cast %688 : i32 to index
    %c0_195 = arith.constant 0 : index
    %694 = vector.load %arg18[%693, %c0_195] : memref<8x128xf32, #tpu.memory_space<vmem>>, vector<1x128xf32>
    %cst_196 = arith.constant dense<0.000000e+00> : vector<1x128xf32>
    %695 = tpu.matmul %683, %385, %cst_196 {dimension_numbers = #tpu.dot_dimension_numbers<[1], [0], [0], [1], [0, 0, 1, 1], [], []>} : vector<1x32xf32>, vector<32x128xf32>, vector<1x128xf32> -> vector<1x128xf32>
    %696 = arith.addf %694, %695 : vector<1x128xf32>
    %697 = arith.negf %692 : vector<1x128xf32>
    %698 = math.exp %697 : vector<1x128xf32>
    %cst_197 = arith.constant 1.000000e+00 : f32
    %699 = vector.broadcast %cst_197 : f32 to vector<1x128xf32>
    %700 = arith.addf %699, %698 : vector<1x128xf32>
    %701 = arith.divf %699, %700 : vector<1x128xf32>
    %702 = math.tanh %692 : vector<1x128xf32>
    %703 = vector.extract_strided_slice %701 {offsets = [0, 0], sizes = [1, 32], strides = [1, 1]} : vector<1x128xf32> to vector<1x32xf32>
    %704 = vector.extract_strided_slice %701 {offsets = [0, 32], sizes = [1, 32], strides = [1, 1]} : vector<1x128xf32> to vector<1x32xf32>
    %705 = vector.extract_strided_slice %702 {offsets = [0, 64], sizes = [1, 32], strides = [1, 1]} : vector<1x128xf32> to vector<1x32xf32>
    %706 = vector.extract_strided_slice %701 {offsets = [0, 96], sizes = [1, 32], strides = [1, 1]} : vector<1x128xf32> to vector<1x32xf32>
    %707 = arith.mulf %704, %666 : vector<1x32xf32>
    %708 = arith.mulf %703, %705 : vector<1x32xf32>
    %709 = arith.addf %707, %708 : vector<1x32xf32>
    %710 = math.tanh %709 : vector<1x32xf32>
    %711 = arith.mulf %706, %710 : vector<1x32xf32>
    %712 = arith.negf %696 : vector<1x128xf32>
    %713 = math.exp %712 : vector<1x128xf32>
    %cst_198 = arith.constant 1.000000e+00 : f32
    %714 = vector.broadcast %cst_198 : f32 to vector<1x128xf32>
    %715 = arith.addf %714, %713 : vector<1x128xf32>
    %716 = arith.divf %714, %715 : vector<1x128xf32>
    %717 = math.tanh %696 : vector<1x128xf32>
    %718 = vector.extract_strided_slice %716 {offsets = [0, 0], sizes = [1, 32], strides = [1, 1]} : vector<1x128xf32> to vector<1x32xf32>
    %719 = vector.extract_strided_slice %716 {offsets = [0, 32], sizes = [1, 32], strides = [1, 1]} : vector<1x128xf32> to vector<1x32xf32>
    %720 = vector.extract_strided_slice %717 {offsets = [0, 64], sizes = [1, 32], strides = [1, 1]} : vector<1x128xf32> to vector<1x32xf32>
    %721 = vector.extract_strided_slice %716 {offsets = [0, 96], sizes = [1, 32], strides = [1, 1]} : vector<1x128xf32> to vector<1x32xf32>
    %722 = arith.mulf %719, %681 : vector<1x32xf32>
    %723 = arith.mulf %718, %720 : vector<1x32xf32>
    %724 = arith.addf %722, %723 : vector<1x32xf32>
    %725 = math.tanh %724 : vector<1x32xf32>
    %726 = arith.mulf %721, %725 : vector<1x32xf32>
    %727 = arith.index_cast %c7_i32_191 : i32 to index
    %c0_199 = arith.constant 0 : index
    %728 = vector.load %arg14[%727, %c0_199] : memref<8x64xf32, #tpu.memory_space<vmem>>, vector<1x32xf32>
    tpu.vector_store %arg14[%727, %c0_199], %711 {strides = array<i32>} : memref<8x64xf32, #tpu.memory_space<vmem>>, vector<1x32xf32>,
    %729 = arith.index_cast %688 : i32 to index
    %c32_200 = arith.constant 32 : index
    %730 = vector.load %arg14[%729, %c32_200] : memref<8x64xf32, #tpu.memory_space<vmem>>, vector<1x32xf32>
    tpu.vector_store %arg14[%729, %c32_200], %726 {strides = array<i32>} : memref<8x64xf32, #tpu.memory_space<vmem>>, vector<1x32xf32>,
    %c8_i32_201 = arith.constant 8 : i32
    %c2 = arith.constant 2 : index
    %c0_202 = arith.constant 0 : index
    %731 = vector.load %arg15[%c2, %c0_202] : memref<4x32xf32, #tpu.memory_space<vmem>>, vector<1x32xf32>
    tpu.vector_store %arg15[%c2, %c0_202], %711 {strides = array<i32>} : memref<4x32xf32, #tpu.memory_space<vmem>>, vector<1x32xf32>,
    %c3 = arith.constant 3 : index
    %c0_203 = arith.constant 0 : index
    %732 = vector.load %arg15[%c3, %c0_203] : memref<4x32xf32, #tpu.memory_space<vmem>>, vector<1x32xf32>
    tpu.vector_store %arg15[%c3, %c0_203], %726 {strides = array<i32>} : memref<4x32xf32, #tpu.memory_space<vmem>>, vector<1x32xf32>,
    %c2_204 = arith.constant 2 : index
    %c0_205 = arith.constant 0 : index
    %733 = vector.load %arg16[%c2_204, %c0_205] : memref<4x32xf32, #tpu.memory_space<vmem>>, vector<1x32xf32>
    tpu.vector_store %arg16[%c2_204, %c0_205], %709 {strides = array<i32>} : memref<4x32xf32, #tpu.memory_space<vmem>>, vector<1x32xf32>,
    %c3_206 = arith.constant 3 : index
    %c0_207 = arith.constant 0 : index
    %734 = vector.load %arg16[%c3_206, %c0_207] : memref<4x32xf32, #tpu.memory_space<vmem>>, vector<1x32xf32>
    tpu.vector_store %arg16[%c3_206, %c0_207], %724 {strides = array<i32>} : memref<4x32xf32, #tpu.memory_space<vmem>>, vector<1x32xf32>,
    return
  }
}

</mosaic_0001>

<bundles_post_ra>
// kernel: tpu_custom_call.1
= control target key start
LH: loop header
LB: loop body
LE: loop exit
PB: predicated region body
PF: predicated region fallthrough
CT: control target
= control target key end

     0   :  { %s6301_s0 = inlined_call_operand.vmem [shape: s32[8,1], index: 0, kind: input, shape index: {}]   ;;  %s6302_s1 = inlined_call_operand.vmem [shape: f32[128,32], index: 1, kind: input, shape index: {}]   ;;  %s6303_s2 = inlined_call_operand.vmem [shape: f32[32,128], index: 2, kind: input, shape index: {}]   ;;  %s6304_s3 = inlined_call_operand.hbm [shape: f32[32,128], index: 3, kind: input, shape index: {}]   ;;  %s6305_s4 = inlined_call_operand.vmem [shape: f32[1,128], index: 4, kind: input, shape index: {}]   ;;  %s6306_s5 = inlined_call_operand.hbm [shape: f32[32,128], index: 5, kind: input, shape index: {}]   ;;  %s6307_s6 = inlined_call_operand.hbm [shape: f32[32,128], index: 6, kind: input, shape index: {}]   ;;  %s6308_s7 = inlined_call_operand.vmem [shape: f32[1,128], index: 7, kind: input, shape index: {}]   ;;  %s6309_s8 = inlined_call_operand.vmem [shape: f32[64,128], index: 8, kind: input, shape index: {}]   ;;  %s6310_s9 = inlined_call_operand.vmem [shape: f32[32,128], index: 9, kind: input, shape index: {}]   ;;  %s6311_s10 = inlined_call_operand.vmem [shape: f32[1,128], index: 10, kind: input, shape index: {}]   ;;  %s6312_s11 = inlined_call_operand.vmem [shape: f32[64,128], index: 11, kind: input, shape index: {}]   ;;  %s6313_s12 = inlined_call_operand.hbm [shape: f32[32,128], index: 12, kind: input, shape index: {}]   ;;  %s6314_s13 = inlined_call_operand.vmem [shape: f32[1,128], index: 13, kind: input, shape index: {}]   ;;  %s6315_s14 = inlined_call_operand.hbm [shape: f32[8,64], index: 14, kind: output, shape index: {0}]   ;;  %s6316_s15 = inlined_call_operand.hbm [shape: f32[4,32], index: 15, kind: output, shape index: {1}]   ;;  %s6317_s16 = inlined_call_operand.hbm [shape: f32[4,32], index: 16, kind: output, shape index: {2}]  }
   0x1   :  { %6318 = sst [smem:[#allocation21_spill]] %s6301_s0 }
   0x2   :  { %22 = vsyncpa [#allocation5], 0 }
   0x3   :  { %23 = vsyncpa [#allocation8], 0 }
   0x4   :  { %24 = vsyncpa [#allocation11], 0 }
   0x5   :  { %25 = vsyncpa [#allocation6], 0 }
   0x6   :  { %26 = vsyncpa [#allocation14], 0  ;;  %s5370_s21 = smov [#allocation7]   ;;  %s5371_s23 = smov [#allocation4]  }
   0x7   :  { %s52_s22 = sshll.u32 %s5370_s21, 4  ;;  %s38_s24 = sshll.u32 %s5371_s23, 4  ;;  %s53_s22 = int_to_ptr.vmem [resolvable:$true] %s52_s22  ;;  %s5472_s24 = int_to_ptr.vmem [resolvable:$true] %s38_s24 }
   0x8   :  { %s5206_s27 = scalar_lea.hbm %s6306_s5, 512 }
   0x9   :  { %p5207_p0 = scmp.ne.s32.totalorder %s6306_s5, %s5206_s27  ;;  %p5210_p1 = scmp.lt.u32.totalorder %s5206_s27, %s6306_s5 }
   0xb   :  { %p5212_p2 = pnand %p5210_p1, %p5207_p0 }
   0xd   :  { %5215 = shalt.err (!%p5212_p2)
}
   0xe   :  { %s5216_s17 = scalar_lea.vmem %s53_s22, 512  ;;  %p5221_p4 = scmp.lt.s32.totalorder %s53_s22, %s53_s22 }
   0xf   :  { %p5217_p3 = scmp.ne.s32.totalorder %s53_s22, %s5216_s17  ;;  %p5222_p5 = scmp.lt.s32.totalorder %s5216_s17, %s5216_s17 }
  0x11   :  { %p5223_p6 = por %p5222_p5, %p5221_p4 }
  0x13   :  { %p5224_p7 = pnand %p5223_p6, %p5217_p3 }
  0x15   :  { %5227 = shalt.err (!%p5224_p7)
}
  0x16   :  { %s5372_s18 = smov 128   ;;  %s5373_s19 = smov 8  }
  0x17   :  { %58 = dma.hbm_to_vmem [thread:$0]  %s6306_s5, 512, %s53_s22, [#allocation8], %s5372_s18, %s5372_s18, %s5373_s19  }
  0x18   :  { %s5228_s26 = scalar_lea.hbm %s6304_s3, 512 }
  0x19   :  { %p5229_p8 = scmp.ne.s32.totalorder %s6304_s3, %s5228_s26  ;;  %p5232_p9 = scmp.lt.u32.totalorder %s5228_s26, %s6304_s3 }
  0x1b   :  { %p5234_p10 = pnand %p5232_p9, %p5229_p8 }
  0x1d   :  { %5237 = shalt.err (!%p5234_p10)
}
  0x1e   :  { %s5238_s0 = scalar_lea.vmem %s5472_s24, 512  ;;  %p5243_p12 = scmp.lt.s32.totalorder %s5472_s24, %s5472_s24 }
  0x1f   :  { %p5239_p11 = scmp.ne.s32.totalorder %s5472_s24, %s5238_s0  ;;  %p5244_p13 = scmp.lt.s32.totalorder %s5238_s0, %s5238_s0 }
  0x21   :  { %p5245_p0 = por %p5244_p13, %p5243_p12 }
  0x23   :  { %p5246_p1 = pnand %p5245_p0, %p5239_p11 }
  0x25   :  { %5249 = shalt.err (!%p5246_p1)
}
  0x26   :  { %44 = dma.hbm_to_vmem [thread:$0]  %s6304_s3, 512, %s5472_s24, [#allocation5], %s5372_s18, %s5372_s18, %s5373_s19  }
  0x27   :  { %s5374_s17 = smov [#allocation9]   ;;  %s5375_s21 = smov [#allocation10]  }
  0x28   :  { %s64_s20 = sshll.u32 %s5374_s17, 4  ;;  %s86_s23 = sshll.u32 %s5375_s21, 4  ;;  %s65_s20 = int_to_ptr.vmem [resolvable:$true] %s64_s20  ;;  %s5509_s23 = int_to_ptr.vmem [resolvable:$true] %s86_s23 }
  0x29   :  { %s5250_s27 = scalar_lea.hbm %s6307_s6, 512 }
  0x2a   :  { %p5251_p2 = scmp.ne.s32.totalorder %s6307_s6, %s5250_s27  ;;  %p5254_p3 = scmp.lt.u32.totalorder %s5250_s27, %s6307_s6 }
  0x2c   :  { %p5256_p4 = pnand %p5254_p3, %p5251_p2 }
  0x2e   :  { %5259 = shalt.err (!%p5256_p4)
}
  0x2f   :  { %s5260_s3 = scalar_lea.vmem %s65_s20, 512  ;;  %p5265_p6 = scmp.lt.s32.totalorder %s65_s20, %s65_s20 }
  0x30   :  { %p5261_p5 = scmp.ne.s32.totalorder %s65_s20, %s5260_s3  ;;  %p5266_p7 = scmp.lt.s32.totalorder %s5260_s3, %s5260_s3 }
  0x32   :  { %p5267_p8 = por %p5266_p7, %p5265_p6 }
  0x34   :  { %p5268_p9 = pnand %p5267_p8, %p5261_p5 }
  0x36   :  { %5271 = shalt.err (!%p5268_p9)
}
  0x37   :  { %70 = dma.hbm_to_vmem [thread:$0]  %s6307_s6, 512, %s65_s20, [#allocation8], %s5372_s18, %s5372_s18, %s5373_s19  }
  0x38   :  { %s5272_s21 = scalar_lea.hbm %s6313_s12, 512 }
  0x39   :  { %p5273_p10 = scmp.ne.s32.totalorder %s6313_s12, %s5272_s21  ;;  %p5276_p11 = scmp.lt.u32.totalorder %s5272_s21, %s6313_s12 }
  0x3b   :  { %p5278_p12 = pnand %p5276_p11, %p5273_p10 }
  0x3d   :  { %5281 = shalt.err (!%p5278_p12)
}
  0x3e   :  { %s5282_s29 = scalar_lea.vmem %s5509_s23, 512  ;;  %p5287_p0 = scmp.lt.s32.totalorder %s5509_s23, %s5509_s23 }
  0x3f   :  { %p5283_p13 = scmp.ne.s32.totalorder %s5509_s23, %s5282_s29  ;;  %p5288_p1 = scmp.lt.s32.totalorder %s5282_s29, %s5282_s29 }
  0x41   :  { %p5289_p2 = por %p5288_p1, %p5287_p0 }
  0x43   :  { %p5290_p3 = pnand %p5289_p2, %p5283_p13 }
  0x45   :  { %5293 = shalt.err (!%p5290_p3)
}
  0x46   :  { %92 = dma.hbm_to_vmem [thread:$0]  %s6313_s12, 512, %s5509_s23, [#allocation11], %s5372_s18, %s5372_s18, %s5373_s19  }
  0x47   :  { %5360 = dma.done.wait [#allocation5], 512  }
  0x48   :  { %5361 = vsyncadd [#allocation5], 4294966784 }
  0x49   :  { %5362 = dma.done.wait [#allocation8], 1024  }
  0x4a   :  { %5363 = vsyncadd [#allocation8], 4294966272 }
  0x4b   :  { %5364 = dma.done.wait [#allocation11], 512  }
  0x4c   :  { %5365 = vsyncadd [#allocation11], 4294966784  ;;  %v5376_v0 = vmov 0   ;;  %v5377_v1 = vmov 0.0|0.0   ;;  %s6319_s3 = sld [smem:[#allocation21_spill]]  ;;  %v116_v3 = vld [vmem:[%s6302_s1] sm:$0xff]  ;;  %v108_v34 = vlaneseq }
  0x4d   :  { %4949 = vset.pattern.permute.xlu0 %v5376_v0  ;;  %4680 = vmatprep.subr.bf16.mxu0 %v5377_v1  ;;  %v117_v4 = vld [vmem:[%s6302_s1 + $0x8] sm:$0xff]  ;;  %v118_v6 = vld [vmem:[%s6302_s1 + $0x10] sm:$0xff]  ;;  %v119_v7 = vld [vmem:[%s6302_s1 + $0x18] sm:$0xff]  ;;  %vm5378_vm0 = vmmov 0   ;;  %v5379_v8 = vmov 0.0   ;;  %v5380_v37 = vmov 1.0  }
  0x4e   :  { %4704 = vmatprep.subr.bf16.mxu1 %v5377_v1  ;;  %v4681_v5 = vpack.c.bf16 %v117_v4, %v116_v3  ;;  %4265 = vmatprep.mubr.msk.f32.mxu0 %vm5378_vm0, %v5379_v8  ;;  %v4684_v9 = vpack.c.bf16 %v119_v7, %v118_v6  ;;  %v120_v10 = vld [vmem:[%s6302_s1 + $0x20] sm:$0xff]  ;;  %v121_v11 = vld [vmem:[%s6302_s1 + $0x28] sm:$0xff]  ;;  %v206_v14 = vld [vmem:[%s6303_s2 + $0x10] sm:$0xff]  ;;  %v109_v35 = vand.u32 127, %v108_v34  ;;  %vm214_vm2 = vcmask 261120  }
  0x4f   :  { %4276 = vmatprep.mubr.msk.f32.mxu1 %vm5378_vm0, %v5379_v8  ;;  %v204_v12 = vld [vmem:[%s6303_s2] sm:$0xff]  ;;  %v205_v13 = vld [vmem:[%s6303_s2 + $0x8] sm:$0xff]  ;;  %v207_v15 = vld [vmem:[%s6303_s2 + $0x18] sm:$0xff]  ;;  %v4687_v16 = vpack.c.bf16 %v121_v11, %v120_v10  ;;  %vm577_vm3 = vcmask 253952   ;;  %vm583_vm4 = vcmask 516352   ;;  %vm2073_vm5 = vcmask 523264  }
  0x50   :  { %4682 = vmatpush3.bf16.msra.mxu0 %v4681_v5  ;;  %v4705_v17 = vpack.c.bf16 %v205_v13, %v204_v12  ;;  %v122_v18 = vld [vmem:[%s6302_s1 + $0x30] sm:$0xff]  ;;  %v123_v19 = vld [vmem:[%s6302_s1 + $0x38] sm:$0xff]  ;;  %v4708_v20 = vpack.c.bf16 %v207_v15, %v206_v14  ;;  %v124_v22 = vld [vmem:[%s6302_s1 + $0x40] sm:$0xff] }
  0x51   :  { %4683 = vmatprep.subr.bf16.mxu0 %v5377_v1  ;;  %v4690_v21 = vpack.c.bf16 %v123_v19, %v122_v18  ;;  %v125_v23 = vld [vmem:[%s6302_s1 + $0x48] sm:$0xff]  ;;  %v126_v25 = vld [vmem:[%s6302_s1 + $0x50] sm:$0xff]  ;;  %v127_v26 = vld [vmem:[%s6302_s1 + $0x58] sm:$0xff] }
  0x52   :  { %v107_v2 = vld [vmem:[%s6319_s3] sm:$0xff]  ;;  %4706 = vmatpush3.bf16.msra.mxu1 %v4705_v17  ;;  %v4693_v24 = vpack.c.bf16 %v125_v23, %v124_v22  ;;  %v4696_v27 = vpack.c.bf16 %v127_v26, %v126_v25  ;;  %v129_v29 = vld [vmem:[%s6302_s1 + $0x68] sm:$0xff]  ;;  %v130_v31 = vld [vmem:[%s6302_s1 + $0x70] sm:$0xff] }
  0x53   :  { %111 = vperm.xlu0 %4949, %v107_v2   ;;  %4707 = vmatprep.subr.bf16.mxu1 %v5377_v1  ;;  %v128_v28 = vld [vmem:[%s6302_s1 + $0x60] sm:$0xff]  ;;  %v131_v32 = vld [vmem:[%s6302_s1 + $0x78] sm:$0xff]  ;;  %v372_v41 = vld [vmem:[#allocation4 + $0x10] sm:$0xff] }
  0x54   :  { %4685 = vmatpush3.bf16.msra.mxu0 %v4684_v9  ;;  %v4699_v30 = vpack.c.bf16 %v129_v29, %v128_v28  ;;  %v4702_v33 = vpack.c.bf16 %v131_v32, %v130_v31  ;;  %v370_v38 = vld [vmem:[#allocation4] sm:$0xff]  ;;  %v371_v39 = vld [vmem:[#allocation4 + $0x8] sm:$0xff]  ;;  %v373_v42 = vld [vmem:[#allocation4 + $0x18] sm:$0xff] }
  0x55   :  { %4686 = vmatprep.subr.bf16.mxu0 %v5377_v1  ;;  %v5627_v40 = vpack.c.bf16 %v371_v39, %v370_v38  ;;  %v5631_v43 = vpack.c.bf16 %v373_v42, %v372_v41  ;;  %v289_v44 = vld [vmem:[#allocation7] sm:$0xff]  ;;  %v290_v45 = vld [vmem:[#allocation7 + $0x8] sm:$0xff]  ;;  %v291_v47 = vld [vmem:[#allocation7 + $0x10] sm:$0xff] }
  0x56   :  { %4709 = vmatpush3.bf16.msra.mxu1 %v4708_v20  ;;  %v4711_v46 = vpack.c.bf16 %v290_v45, %v289_v44  ;;  %v292_v48 = vld [vmem:[#allocation7 + $0x18] sm:$0xff]  ;;  %v374_v52 = vld [vmem:[#allocation9] sm:$0xff]  ;;  %v375_v53 = vld [vmem:[#allocation9 + $0x8] sm:$0xff] }
  0x57   :  { %4710 = vmatprep.subr.bf16.mxu1 %v5377_v1  ;;  %v4714_v51 = vpack.c.bf16 %v292_v48, %v291_v47  ;;  %v5646_v54 = vpack.c.bf16 %v375_v53, %v374_v52  ;;  %v376_v55 = vld [vmem:[#allocation9 + $0x10] sm:$0xff]  ;;  %v377_v56 = vld [vmem:[#allocation9 + $0x18] sm:$0xff]  ;;  %v3960_v58 = vld [vmem:[%s6305_s4] ss:$0 sm:$0xff]  ;;  %s5381_s4 = smov 64  }
  0x58   :  { %4688 = vmatpush3.bf16.msra.mxu0 %v4687_v16  ;;  %v5651_v57 = vpack.c.bf16 %v377_v56, %v376_v55  ;;  %v3962_v62 = vld [vmem:[%s6308_s7] ss:$0 sm:$0xff]  ;;  %s5382_s7 = smov 32  }
  0x59   :  { %4689 = vmatprep.subr.bf16.mxu0 %v5377_v1 }
  0x5c   :  { %4691 = vmatpush3.bf16.msra.mxu0 %v4690_v21 }
  0x5d   :  { %4692 = vmatprep.subr.bf16.mxu0 %v5377_v1 }
  0x60   :  { %4694 = vmatpush3.bf16.msra.mxu0 %v4693_v24 }
  0x61   :  { %4695 = vmatprep.subr.bf16.mxu0 %v5377_v1 }
  0x64   :  { %4697 = vmatpush3.bf16.msra.mxu0 %v4696_v27 }
  0x65   :  { %4698 = vmatprep.subr.bf16.mxu0 %v5377_v1 }
  0x68   :  { %4700 = vmatpush3.bf16.msra.mxu0 %v4699_v30 }
  0x69   :  { %4701 = vmatprep.subr.bf16.mxu0 %v5377_v1 }
  0x6c   :  { %4703 = vmatpush3.bf16.msra.mxu0 %v4702_v33 }
  0x6d   :  { %4728 = vmatprep.subr.bf16.mxu0 %v5377_v1 }
  0xd2   :  { %v112_v36 = vpop.permute.xlu0 %111 }
  0xd3   :  { %vm113_vm1 = vcmp.eq.s32.totalorder %v109_v35, %v112_v36 }
  0xd4   :  { %4266 = vmatmul.mubr.msk.f32.vlgmr.msra.gmra.mrb[0].mxu0 %vm113_vm1, %v5380_v37 }
  0xd5   :  { %4320 = vmatprep.mubr.msk.f32.mxu0 %vm5378_vm0, %v5379_v8  ;;  %4730 = vmatpush3.bf16.msra.mxu0 %v5627_v40 }
  0xd6   :  { %4731 = vmatprep.subr.bf16.mxu0 %v5377_v1 }
  0xd9   :  { %4733 = vmatpush3.bf16.msra.mxu0 %v5631_v43 }
  0xda   :  { %4740 = vmatprep.subr.bf16.mxu0 %v5377_v1 }
 0x1a7   :  { %v198_v49 = vpop.f32.mrb[0].mxu0 }
 0x1a8   :  { %v4267_v50 = vpop.f32.mrb[1].mxu0  ;;  %4277 = vmatmul.mubr.msk.f32.vlgmr.msra.gmra.mrb[0].mxu1 %vm214_vm2, %v198_v49 }
 0x1a9   :  { %4712 = vmatpush3.bf16.msra.mxu1 %v4711_v46  ;;  %4287 = vmatprep.mubr.msk.f32.mxu1 %vm5378_vm0, %v5379_v8 }
 0x1aa   :  { %4713 = vmatprep.subr.bf16.mxu1 %v5377_v1 }
 0x1ad   :  { %4715 = vmatpush3.bf16.msra.mxu1 %v4714_v51 }
 0x1ae   :  { %4716 = vmatprep.subr.bf16.mxu1 %v5377_v1 }
 0x1b0   :  { %4288 = vmatmul.mubr.msk.f32.vlgmr.msra.gmra.mrb[2].mxu1 %vm214_vm2, %v198_v49 }
 0x1b1   :  { %4718 = vmatpush3.bf16.msra.mxu1 %v5627_v40  ;;  %4298 = vmatprep.mubr.msk.f32.mxu1 %vm5378_vm0, %v5379_v8 }
 0x1b2   :  { %4719 = vmatprep.subr.bf16.mxu1 %v5377_v1 }
 0x1b5   :  { %4721 = vmatpush3.bf16.msra.mxu1 %v5631_v43 }
 0x1b6   :  { %4722 = vmatprep.subr.bf16.mxu1 %v5377_v1 }
 0x1b8   :  { %4299 = vmatmul.mubr.f32.vlgmr.msra.gmra.mrb[4].mxu1 %v5379_v8 }
 0x1b9   :  { %4724 = vmatpush3.bf16.msra.mxu1 %v5646_v54  ;;  %4309 = vmatprep.mubr.msk.f32.mxu1 %vm5378_vm0, %v5379_v8 }
 0x1ba   :  { %4725 = vmatprep.subr.bf16.mxu1 %v5377_v1 }
 0x1bd   :  { %4727 = vmatpush3.bf16.msra.mxu1 %v5651_v57 }
 0x1be   :  { %4734 = vmatprep.subr.bf16.mxu1 %v5377_v1 }
 0x1c0   :  { %4310 = vmatmul.mubr.f32.vlgmr.msra.gmra.mrb[6].mxu1 %v5379_v8 }
 0x1c1   :  { %4736 = vmatpush3.bf16.msra.mxu1 %v5646_v54  ;;  %4331 = vmatprep.mubr.msk.f32.mxu1 %vm5378_vm0, %v5379_v8 }
 0x1c2   :  { %4737 = vmatprep.subr.bf16.mxu1 %v5377_v1 }
 0x1c5   :  { %4739 = vmatpush3.bf16.msra.mxu1 %v5651_v57 }
 0x1c6   :  { %4746 = vmatprep.subr.bf16.mxu1 %v5377_v1 }
 0x27b   :  { %v284_v59 = vpop.f32.mrb[0].mxu1 }
 0x27c   :  { %v285_v60 = vadd.f32 %v3960_v58, %v284_v59  ;;  %v4278_v61 = vpop.f32.mrb[1].mxu1 }
 0x27e   :  { %288 = vst [vmem:[#allocation2] sm:$0xff] %v285_v60 }
 0x283   :  { %v365_v63 = vpop.f32.mrb[2].mxu1 }
 0x284   :  { %v366_v0 = vadd.f32 %v3962_v62, %v365_v63  ;;  %v4289_v2 = vpop.f32.mrb[3].mxu1 }
 0x285   :  { %v378_v3 = vld [vmem:[#allocation2] sm:$0x1]  ;;  %v585_v41 = vld [vmem:[#allocation2 + $0x1] sm:$0x1] }
 0x286   :  { %369 = vst [vmem:[#allocation3] sm:$0xff] %v366_v0 }
 0x28b   :  { %v448_v4 = vpop.f32.mrb[4].mxu1 }
 0x28c   :  { %v452_v5 = vadd.f32 %v448_v4, %v378_v3  ;;  %v4300_v6 = vpop.f32.mrb[5].mxu1 }
 0x28d   :  { %v453_v7 = vld [vmem:[#allocation3 + $0x7] sm:$0x1]  ;;  %v659_v46 = vld [vmem:[#allocation3 + $0x6] sm:$0x1] }
 0x28e   :  { %4950 = vtanh.f32 %v452_v5  ;;  %v3964_v14 = vmul.f32 -1.442695, %v452_v5 }
 0x293   :  { %v520_v9 = vpop.f32.mrb[6].mxu1 }
 0x294   :  { %v524_v10 = vadd.f32 %v520_v9, %v453_v7  ;;  %v4311_v11 = vpop.f32.mrb[7].mxu1 }
 0x296   :  { %4952 = vtanh.f32 %v524_v10  ;;  %v3965_v15 = vmul.f32 -1.442695, %v524_v10 }
 0x297   :  { %4954 = vpow2.f32 %v3964_v14 }
 0x298   :  { %v4951_v12 = vpop.eup %4950  ;;  %4956 = vpow2.f32 %v3965_v15 }
 0x299   :  { %534 = vrot.lane.b32.xlu0 %v4951_v12, %s5381_s4 }
 0x2a0   :  { %v4953_v13 = vpop.eup %4952 }
 0x2a1   :  { %558 = vrot.lane.b32.xlu1 %v4953_v13, %s5381_s4  ;;  %v4955_v16 = vpop.eup %4954 }
 0x2a2   :  { %v528_v17 = vadd.f32 1.0, %v4955_v16  ;;  %v4957_v18 = vpop.eup %4956 }
 0x2a3   :  { %v552_v19 = vadd.f32 1.0, %v4957_v18  ;;  %v793_v18 = vld [vmem:[#allocation2 + $0x2] sm:$0x1] }
 0x2a4   :  { %4958 = vrcp.f32 %v528_v17 }
 0x2a5   :  { %4960 = vrcp.f32 %v552_v19 }
 0x2ae   :  { %v4959_v20 = vpop.eup %4958 }
 0x2af   :  { %v4961_v23 = vpop.eup %4960  ;;  %v532_v26 = vmul.f32 0.0, %v4959_v20 }
 0x2b0   :  { %v556_v29 = vmul.f32 0.0, %v4961_v23 }
 0x30b   :  { %v535_v21 = vpop.permute.xlu0 %534 }
 0x30c   :  { %v537_v22 = vmul.f32 %v4959_v20, %v535_v21 }
 0x30e   :  { %539 = vrot.lane.b32.xlu1 %v537_v22, %s5382_s7  ;;  %v867_v22 = vld [vmem:[#allocation3 + $0x5] sm:$0x1] }
 0x313   :  { %v559_v24 = vpop.permute.xlu1 %558 }
 0x314   :  { %v561_v25 = vmul.f32 %v4961_v23, %v559_v24 }
 0x316   :  { %563 = vrot.lane.b32.xlu0 %v561_v25, %s5382_s7 }
 0x380   :  { %v540_v27 = vpop.permute.xlu1 %539 }
 0x381   :  { %v5675_v28 = vadd.f32 %v540_v27, %v532_v26 }
 0x383   :  { %4962 = vtanh.f32 %v5675_v28 }
 0x388   :  { %v564_v30 = vpop.permute.xlu0 %563 }
 0x389   :  { %v5678_v31 = vadd.f32 %v564_v30, %v556_v29 }
 0x38b   :  { %4964 = vtanh.f32 %v5678_v31 }
 0x38d   :  { %v4963_v32 = vpop.eup %4962 }
 0x38e   :  { %545 = vrot.lane.b32.xlu1 %v4963_v32, %s5381_s4 }
 0x395   :  { %v4965_v33 = vpop.eup %4964 }
 0x396   :  { %569 = vrot.lane.b32.xlu0 %v4965_v33, %s5381_s4 }
 0x400   :  { %v546_v34 = vpop.permute.xlu1 %545 }
 0x401   :  { %v548_v35 = vmul.f32 %v4959_v20, %v546_v34 }
 0x403   :  { %574 = vrot.lane.b32.xlu1 %v548_v35, %s5382_s7 }
 0x408   :  { %v570_v36 = vpop.permute.xlu0 %569 }
 0x409   :  { %v5684_v37 = vmul.f32 %v4961_v23, %v570_v36 }
 0x40b   :  { %660 = vrot.lane.b32.xlu0 %v5684_v37, %s5382_s7 }
 0x475   :  { %v575_v38 = vpop.permute.xlu1 %574 }
 0x476   :  { %578 = vst.msk [vmem:[#allocation12] sm:$0x1] %vm577_vm3, %v575_v38  ;;  %4321 = vmatmul.mubr.msk.f32.vlgmr.msra.gmra.mrb[2].mxu0 %vm214_vm2, %v575_v38 }
 0x477   :  { %4742 = vmatpush3.bf16.msra.mxu0 %v5627_v40  ;;  %4342 = vmatprep.mubr.msk.f32.mxu0 %vm5378_vm0, %v5379_v8 }
 0x478   :  { %4743 = vmatprep.subr.bf16.mxu0 %v5377_v1 }
 0x47b   :  { %4745 = vmatpush3.bf16.msra.mxu0 %v5631_v43 }
 0x47c   :  { %4752 = vmatprep.subr.bf16.mxu0 %v5377_v1 }
 0x47d   :  { %v661_v39 = vpop.permute.xlu0 %660 }
 0x47e   :  { %4332 = vmatmul.mubr.msk.f32.vlgmr.msra.gmra.mrb[8].mxu1 %vm214_vm2, %v661_v39 }
 0x47f   :  { %4748 = vmatpush3.bf16.msra.mxu1 %v5646_v54  ;;  %4353 = vmatprep.mubr.msk.f32.mxu1 %vm5378_vm0, %v5379_v8 }
 0x480   :  { %4749 = vmatprep.subr.bf16.mxu1 %v5377_v1 }
 0x483   :  { %4751 = vmatpush3.bf16.msra.mxu1 %v5651_v57 }
 0x484   :  { %4758 = vmatprep.subr.bf16.mxu1 %v5377_v1 }
 0x549   :  { %v654_v42 = vpop.f32.mrb[2].mxu0 }
 0x54a   :  { %v658_v44 = vadd.f32 %v654_v42, %v585_v41  ;;  %v4322_v45 = vpop.f32.mrb[3].mxu0 }
 0x54c   :  { %4966 = vtanh.f32 %v658_v44  ;;  %v3968_v52 = vmul.f32 -1.442695, %v658_v44 }
 0x551   :  { %v730_v47 = vpop.f32.mrb[8].mxu1 }
 0x552   :  { %v734_v48 = vadd.f32 %v730_v47, %v659_v46  ;;  %v4333_v49 = vpop.f32.mrb[9].mxu1 }
 0x554   :  { %4968 = vtanh.f32 %v734_v48  ;;  %v3969_v53 = vmul.f32 -1.442695, %v734_v48 }
 0x555   :  { %4970 = vpow2.f32 %v3968_v52 }
 0x556   :  { %v4967_v50 = vpop.eup %4966  ;;  %4972 = vpow2.f32 %v3969_v53 }
 0x557   :  { %744 = vrot.lane.b32.xlu1 %v4967_v50, %s5381_s4 }
 0x55e   :  { %v4969_v51 = vpop.eup %4968 }
 0x55f   :  { %768 = vrot.lane.b32.xlu0 %v4969_v51, %s5381_s4  ;;  %v4971_v55 = vpop.eup %4970 }
 0x560   :  { %v738_v56 = vadd.f32 1.0, %v4971_v55  ;;  %v4973_v58 = vpop.eup %4972 }
 0x561   :  { %v762_v59 = vadd.f32 1.0, %v4973_v58 }
 0x562   :  { %4974 = vrcp.f32 %v738_v56 }
 0x563   :  { %4976 = vrcp.f32 %v762_v59  ;;  %v1001_v59 = vld [vmem:[#allocation2 + $0x3] sm:$0x1] }
 0x56c   :  { %v4975_v60 = vpop.eup %4974 }
 0x56d   :  { %v4977_v63 = vpop.eup %4976  ;;  %v742_v3 = vmul.f32 %v4975_v60, %v5675_v28 }
 0x56e   :  { %v766_v6 = vmul.f32 %v4977_v63, %v5678_v31 }
 0x5c9   :  { %v745_v61 = vpop.permute.xlu1 %744 }
 0x5ca   :  { %v747_v62 = vmul.f32 %v4975_v60, %v745_v61 }
 0x5cc   :  { %749 = vrot.lane.b32.xlu1 %v747_v62, %s5382_s7 }
 0x5d1   :  { %v769_v0 = vpop.permute.xlu0 %768 }
 0x5d2   :  { %v771_v2 = vmul.f32 %v4977_v63, %v769_v0 }
 0x5d4   :  { %773 = vrot.lane.b32.xlu0 %v771_v2, %s5382_s7 }
 0x63e   :  { %v750_v4 = vpop.permute.xlu1 %749 }
 0x63f   :  { %v5708_v5 = vadd.f32 %v750_v4, %v742_v3 }
 0x641   :  { %4978 = vtanh.f32 %v5708_v5 }
 0x646   :  { %v774_v7 = vpop.permute.xlu0 %773 }
 0x647   :  { %v5712_v9 = vadd.f32 %v774_v7, %v766_v6 }
 0x649   :  { %4980 = vtanh.f32 %v5712_v9 }
 0x64b   :  { %v4979_v10 = vpop.eup %4978 }
 0x64c   :  { %755 = vrot.lane.b32.xlu1 %v4979_v10, %s5381_s4 }
 0x653   :  { %v4981_v11 = vpop.eup %4980 }
 0x654   :  { %779 = vrot.lane.b32.xlu0 %v4981_v11, %s5381_s4 }
 0x6be   :  { %v756_v12 = vpop.permute.xlu1 %755 }
 0x6bf   :  { %v758_v13 = vmul.f32 %v4975_v60, %v756_v12 }
 0x6c1   :  { %784 = vrot.lane.b32.xlu1 %v758_v13, %s5382_s7 }
 0x6c6   :  { %v780_v14 = vpop.permute.xlu0 %779 }
 0x6c7   :  { %v5718_v15 = vmul.f32 %v4977_v63, %v780_v14  ;;  %v1075_v63 = vld [vmem:[#allocation3 + $0x4] sm:$0x1] }
 0x6c9   :  { %868 = vrot.lane.b32.xlu0 %v5718_v15, %s5382_s7 }
 0x733   :  { %v785_v16 = vpop.permute.xlu1 %784 }
 0x734   :  { %787 = vst.msk [vmem:[#allocation12 + $0x1] sm:$0x1] %vm577_vm3, %v785_v16  ;;  %4343 = vmatmul.mubr.msk.f32.vlgmr.msra.gmra.mrb[4].mxu0 %vm214_vm2, %v785_v16 }
 0x735   :  { %4754 = vmatpush3.bf16.msra.mxu0 %v5627_v40  ;;  %4364 = vmatprep.mubr.msk.f32.mxu0 %vm5378_vm0, %v5379_v8 }
 0x736   :  { %4755 = vmatprep.subr.bf16.mxu0 %v5377_v1 }
 0x739   :  { %4757 = vmatpush3.bf16.msra.mxu0 %v5631_v43 }
 0x73a   :  { %4764 = vmatprep.subr.bf16.mxu0 %v5377_v1 }
 0x73b   :  { %v869_v17 = vpop.permute.xlu0 %868 }
 0x73c   :  { %4354 = vmatmul.mubr.msk.f32.vlgmr.msra.gmra.mrb[10].mxu1 %vm214_vm2, %v869_v17 }
 0x73d   :  { %4760 = vmatpush3.bf16.msra.mxu1 %v5646_v54  ;;  %4375 = vmatprep.mubr.msk.f32.mxu1 %vm5378_vm0, %v5379_v8 }
 0x73e   :  { %4761 = vmatprep.subr.bf16.mxu1 %v5377_v1 }
 0x741   :  { %4763 = vmatpush3.bf16.msra.mxu1 %v5651_v57 }
 0x742   :  { %4770 = vmatprep.subr.bf16.mxu1 %v5377_v1 }
 0x807   :  { %v862_v19 = vpop.f32.mrb[4].mxu0 }
 0x808   :  { %v866_v20 = vadd.f32 %v862_v19, %v793_v18  ;;  %v4344_v21 = vpop.f32.mrb[5].mxu0 }
 0x80a   :  { %4982 = vtanh.f32 %v866_v20  ;;  %v3972_v28 = vmul.f32 -1.442695, %v866_v20 }
 0x80f   :  { %v938_v23 = vpop.f32.mrb[10].mxu1 }
 0x810   :  { %v942_v24 = vadd.f32 %v938_v23, %v867_v22  ;;  %v4355_v25 = vpop.f32.mrb[11].mxu1 }
 0x812   :  { %4984 = vtanh.f32 %v942_v24  ;;  %v3973_v29 = vmul.f32 -1.442695, %v942_v24 }
 0x813   :  { %4986 = vpow2.f32 %v3972_v28 }
 0x814   :  { %v4983_v26 = vpop.eup %4982  ;;  %4988 = vpow2.f32 %v3973_v29 }
 0x815   :  { %952 = vrot.lane.b32.xlu1 %v4983_v26, %s5381_s4 }
 0x81c   :  { %v4985_v27 = vpop.eup %4984 }
 0x81d   :  { %976 = vrot.lane.b32.xlu0 %v4985_v27, %s5381_s4  ;;  %v4987_v30 = vpop.eup %4986 }
 0x81e   :  { %v946_v31 = vadd.f32 1.0, %v4987_v30  ;;  %v4989_v32 = vpop.eup %4988 }
 0x81f   :  { %v970_v33 = vadd.f32 1.0, %v4989_v32 }
 0x820   :  { %4990 = vrcp.f32 %v946_v31 }
 0x821   :  { %4992 = vrcp.f32 %v970_v33 }
 0x82a   :  { %v4991_v34 = vpop.eup %4990 }
 0x82b   :  { %v4993_v38 = vpop.eup %4992  ;;  %v950_v42 = vmul.f32 %v4991_v34, %v5708_v5 }
 0x82c   :  { %v974_v46 = vmul.f32 %v4993_v38, %v5712_v9 }
 0x887   :  { %v953_v35 = vpop.permute.xlu1 %952 }
 0x888   :  { %v955_v36 = vmul.f32 %v4991_v34, %v953_v35 }
 0x88a   :  { %957 = vrot.lane.b32.xlu1 %v955_v36, %s5382_s7 }
 0x88f   :  { %v977_v39 = vpop.permute.xlu0 %976 }
 0x890   :  { %v979_v41 = vmul.f32 %v4993_v38, %v977_v39  ;;  %v1283_v39 = vld [vmem:[#allocation3 + $0x3] sm:$0x1] }
 0x892   :  { %981 = vrot.lane.b32.xlu0 %v979_v41, %s5382_s7 }
 0x8fc   :  { %v958_v44 = vpop.permute.xlu1 %957 }
 0x8fd   :  { %v5742_v45 = vadd.f32 %v958_v44, %v950_v42 }
 0x8ff   :  { %4994 = vtanh.f32 %v5742_v45 }
 0x904   :  { %v982_v47 = vpop.permute.xlu0 %981 }
 0x905   :  { %v5746_v48 = vadd.f32 %v982_v47, %v974_v46 }
 0x907   :  { %4996 = vtanh.f32 %v5746_v48 }
 0x909   :  { %v4995_v49 = vpop.eup %4994 }
 0x90a   :  { %963 = vrot.lane.b32.xlu1 %v4995_v49, %s5381_s4 }
 0x911   :  { %v4997_v50 = vpop.eup %4996 }
 0x912   :  { %987 = vrot.lane.b32.xlu0 %v4997_v50, %s5381_s4 }
 0x97c   :  { %v964_v51 = vpop.permute.xlu1 %963 }
 0x97d   :  { %v966_v52 = vmul.f32 %v4991_v34, %v964_v51  ;;  %v1209_v34 = vld [vmem:[#allocation2 + $0x4] sm:$0x1] }
 0x97f   :  { %992 = vrot.lane.b32.xlu1 %v966_v52, %s5382_s7 }
 0x984   :  { %v988_v53 = vpop.permute.xlu0 %987 }
 0x985   :  { %v5752_v55 = vmul.f32 %v4993_v38, %v988_v53 }
 0x987   :  { %1076 = vrot.lane.b32.xlu0 %v5752_v55, %s5382_s7 }
 0x9f1   :  { %v993_v56 = vpop.permute.xlu1 %992 }
 0x9f2   :  { %995 = vst.msk [vmem:[#allocation12 + $0x2] sm:$0x1] %vm577_vm3, %v993_v56  ;;  %4365 = vmatmul.mubr.msk.f32.vlgmr.msra.gmra.mrb[6].mxu0 %vm214_vm2, %v993_v56 }
 0x9f3   :  { %4766 = vmatpush3.bf16.msra.mxu0 %v5627_v40  ;;  %4386 = vmatprep.mubr.msk.f32.mxu0 %vm5378_vm0, %v5379_v8 }
 0x9f4   :  { %4767 = vmatprep.subr.bf16.mxu0 %v5377_v1 }
 0x9f7   :  { %4769 = vmatpush3.bf16.msra.mxu0 %v5631_v43 }
 0x9f8   :  { %4776 = vmatprep.subr.bf16.mxu0 %v5377_v1 }
 0x9f9   :  { %v1077_v58 = vpop.permute.xlu0 %1076 }
 0x9fa   :  { %4376 = vmatmul.mubr.msk.f32.vlgmr.msra.gmra.mrb[12].mxu1 %vm214_vm2, %v1077_v58 }
 0x9fb   :  { %4772 = vmatpush3.bf16.msra.mxu1 %v5646_v54  ;;  %4397 = vmatprep.mubr.msk.f32.mxu1 %vm5378_vm0, %v5379_v8 }
 0x9fc   :  { %4773 = vmatprep.subr.bf16.mxu1 %v5377_v1 }
 0x9ff   :  { %4775 = vmatpush3.bf16.msra.mxu1 %v5651_v57 }
 0xa00   :  { %4782 = vmatprep.subr.bf16.mxu1 %v5377_v1 }
 0xac5   :  { %v1070_v60 = vpop.f32.mrb[6].mxu0 }
 0xac6   :  { %v1074_v61 = vadd.f32 %v1070_v60, %v1001_v59  ;;  %v4366_v62 = vpop.f32.mrb[7].mxu0 }
 0xac8   :  { %4998 = vtanh.f32 %v1074_v61  ;;  %v3976_v6 = vmul.f32 -1.442695, %v1074_v61 }
 0xacd   :  { %v1146_v0 = vpop.f32.mrb[12].mxu1 }
 0xace   :  { %v1150_v2 = vadd.f32 %v1146_v0, %v1075_v63  ;;  %v4377_v3 = vpop.f32.mrb[13].mxu1 }
 0xad0   :  { %5000 = vtanh.f32 %v1150_v2  ;;  %v3977_v7 = vmul.f32 -1.442695, %v1150_v2 }
 0xad1   :  { %5002 = vpow2.f32 %v3976_v6 }
 0xad2   :  { %v4999_v4 = vpop.eup %4998  ;;  %5004 = vpow2.f32 %v3977_v7 }
 0xad3   :  { %1160 = vrot.lane.b32.xlu1 %v4999_v4, %s5381_s4 }
 0xada   :  { %v5001_v5 = vpop.eup %5000 }
 0xadb   :  { %1184 = vrot.lane.b32.xlu0 %v5001_v5, %s5381_s4  ;;  %v5003_v9 = vpop.eup %5002 }
 0xadc   :  { %v1154_v10 = vadd.f32 1.0, %v5003_v9  ;;  %v5005_v11 = vpop.eup %5004 }
 0xadd   :  { %v1178_v12 = vadd.f32 1.0, %v5005_v11 }
 0xade   :  { %5006 = vrcp.f32 %v1154_v10 }
 0xadf   :  { %5008 = vrcp.f32 %v1178_v12 }
 0xae8   :  { %v5007_v13 = vpop.eup %5006 }
 0xae9   :  { %v5009_v17 = vpop.eup %5008  ;;  %v1158_v20 = vmul.f32 %v5007_v13, %v5742_v45 }
 0xaea   :  { %v1182_v23 = vmul.f32 %v5009_v17, %v5746_v48 }
 0xb45   :  { %v1161_v14 = vpop.permute.xlu1 %1160 }
 0xb46   :  { %v1163_v16 = vmul.f32 %v5007_v13, %v1161_v14  ;;  %v1417_v14 = vld [vmem:[#allocation2 + $0x5] sm:$0x1] }
 0xb48   :  { %1165 = vrot.lane.b32.xlu1 %v1163_v16, %s5382_s7 }
 0xb4d   :  { %v1185_v18 = vpop.permute.xlu0 %1184 }
 0xb4e   :  { %v1187_v19 = vmul.f32 %v5009_v17, %v1185_v18 }
 0xb50   :  { %1189 = vrot.lane.b32.xlu0 %v1187_v19, %s5382_s7  ;;  %v1491_v19 = vld [vmem:[#allocation3 + $0x2] sm:$0x1] }
 0xbba   :  { %v1166_v21 = vpop.permute.xlu1 %1165 }
 0xbbb   :  { %v5776_v22 = vadd.f32 %v1166_v21, %v1158_v20 }
 0xbbd   :  { %5010 = vtanh.f32 %v5776_v22 }
 0xbc2   :  { %v1190_v24 = vpop.permute.xlu0 %1189 }
 0xbc3   :  { %v5780_v25 = vadd.f32 %v1190_v24, %v1182_v23 }
 0xbc5   :  { %5012 = vtanh.f32 %v5780_v25 }
 0xbc7   :  { %v5011_v26 = vpop.eup %5010 }
 0xbc8   :  { %1171 = vrot.lane.b32.xlu1 %v5011_v26, %s5381_s4 }
 0xbcf   :  { %v5013_v27 = vpop.eup %5012 }
 0xbd0   :  { %1195 = vrot.lane.b32.xlu0 %v5013_v27, %s5381_s4 }
 0xc3a   :  { %v1172_v28 = vpop.permute.xlu1 %1171 }
 0xc3b   :  { %v1174_v29 = vmul.f32 %v5007_v13, %v1172_v28 }
 0xc3d   :  { %1200 = vrot.lane.b32.xlu1 %v1174_v29, %s5382_s7 }
 0xc42   :  { %v1196_v30 = vpop.permute.xlu0 %1195 }
 0xc43   :  { %v5786_v31 = vmul.f32 %v5009_v17, %v1196_v30 }
 0xc45   :  { %1284 = vrot.lane.b32.xlu0 %v5786_v31, %s5382_s7 }
 0xcaf   :  { %v1201_v32 = vpop.permute.xlu1 %1200 }
 0xcb0   :  { %1203 = vst.msk [vmem:[#allocation12 + $0x3] sm:$0x1] %vm577_vm3, %v1201_v32  ;;  %4387 = vmatmul.mubr.msk.f32.vlgmr.msra.gmra.mrb[8].mxu0 %vm214_vm2, %v1201_v32 }
 0xcb1   :  { %4778 = vmatpush3.bf16.msra.mxu0 %v5627_v40  ;;  %4408 = vmatprep.mubr.msk.f32.mxu0 %vm5378_vm0, %v5379_v8 }
 0xcb2   :  { %4779 = vmatprep.subr.bf16.mxu0 %v5377_v1 }
 0xcb5   :  { %4781 = vmatpush3.bf16.msra.mxu0 %v5631_v43 }
 0xcb6   :  { %4788 = vmatprep.subr.bf16.mxu0 %v5377_v1 }
 0xcb7   :  { %v1285_v33 = vpop.permute.xlu0 %1284 }
 0xcb8   :  { %4398 = vmatmul.mubr.msk.f32.vlgmr.msra.gmra.mrb[14].mxu1 %vm214_vm2, %v1285_v33 }
 0xcb9   :  { %4784 = vmatpush3.bf16.msra.mxu1 %v5646_v54  ;;  %4419 = vmatprep.mubr.msk.f32.mxu1 %vm5378_vm0, %v5379_v8 }
 0xcba   :  { %4785 = vmatprep.subr.bf16.mxu1 %v5377_v1 }
 0xcbd   :  { %4787 = vmatpush3.bf16.msra.mxu1 %v5651_v57 }
 0xcbe   :  { %4794 = vmatprep.subr.bf16.mxu1 %v5377_v1 }
 0xd83   :  { %v1278_v35 = vpop.f32.mrb[8].mxu0 }
 0xd84   :  { %v1282_v36 = vadd.f32 %v1278_v35, %v1209_v34  ;;  %v4388_v38 = vpop.f32.mrb[9].mxu0 }
 0xd86   :  { %5014 = vtanh.f32 %v1282_v36  ;;  %v3980_v47 = vmul.f32 -1.442695, %v1282_v36 }
 0xd8b   :  { %v1354_v41 = vpop.f32.mrb[14].mxu1 }
 0xd8c   :  { %v1358_v42 = vadd.f32 %v1354_v41, %v1283_v39  ;;  %v4399_v44 = vpop.f32.mrb[15].mxu1 }
 0xd8e   :  { %5016 = vtanh.f32 %v1358_v42  ;;  %v3981_v48 = vmul.f32 -1.442695, %v1358_v42 }
 0xd8f   :  { %5018 = vpow2.f32 %v3980_v47 }
 0xd90   :  { %v5015_v45 = vpop.eup %5014  ;;  %5020 = vpow2.f32 %v3981_v48 }
 0xd91   :  { %1368 = vrot.lane.b32.xlu1 %v5015_v45, %s5381_s4 }
 0xd98   :  { %v5017_v46 = vpop.eup %5016 }
 0xd99   :  { %1392 = vrot.lane.b32.xlu0 %v5017_v46, %s5381_s4  ;;  %v5019_v49 = vpop.eup %5018 }
 0xd9a   :  { %v1362_v50 = vadd.f32 1.0, %v5019_v49  ;;  %v5021_v51 = vpop.eup %5020 }
 0xd9b   :  { %v1386_v52 = vadd.f32 1.0, %v5021_v51 }
 0xd9c   :  { %5022 = vrcp.f32 %v1362_v50 }
 0xd9d   :  { %5024 = vrcp.f32 %v1386_v52 }
 0xda6   :  { %v5023_v53 = vpop.eup %5022 }
 0xda7   :  { %v5025_v59 = vpop.eup %5024  ;;  %v1366_v62 = vmul.f32 %v5023_v53, %v5776_v22 }
 0xda8   :  { %v1390_v2 = vmul.f32 %v5025_v59, %v5780_v25 }
 0xe03   :  { %v1369_v56 = vpop.permute.xlu1 %1368 }
 0xe04   :  { %v1371_v58 = vmul.f32 %v5023_v53, %v1369_v56 }
 0xe06   :  { %1373 = vrot.lane.b32.xlu1 %v1371_v58, %s5382_s7 }
 0xe0b   :  { %v1393_v60 = vpop.permute.xlu0 %1392 }
 0xe0c   :  { %v1395_v61 = vmul.f32 %v5025_v59, %v1393_v60  ;;  %v1699_v60 = vld [vmem:[#allocation3 + $0x1] sm:$0x1] }
 0xe0e   :  { %1397 = vrot.lane.b32.xlu0 %v1395_v61, %s5382_s7 }
 0xe78   :  { %v1374_v63 = vpop.permute.xlu1 %1373 }
 0xe79   :  { %v1376_v0 = vadd.f32 %v1374_v63, %v1366_v62 }
 0xe7b   :  { %5026 = vtanh.f32 %v1376_v0 }
 0xe80   :  { %v1398_v3 = vpop.permute.xlu0 %1397 }
 0xe81   :  { %v1400_v4 = vadd.f32 %v1398_v3, %v1390_v2 }
 0xe83   :  { %5028 = vtanh.f32 %v1400_v4 }
 0xe85   :  { %v5027_v5 = vpop.eup %5026 }
 0xe86   :  { %1379 = vrot.lane.b32.xlu1 %v5027_v5, %s5381_s4 }
 0xe8d   :  { %v5029_v6 = vpop.eup %5028 }
 0xe8e   :  { %1403 = vrot.lane.b32.xlu0 %v5029_v6, %s5381_s4 }
 0xef8   :  { %v1380_v7 = vpop.permute.xlu1 %1379 }
 0xef9   :  { %v1382_v9 = vmul.f32 %v5023_v53, %v1380_v7 }
 0xefb   :  { %1408 = vrot.lane.b32.xlu1 %v1382_v9, %s5382_s7 }
 0xf00   :  { %v1404_v10 = vpop.permute.xlu0 %1403 }
 0xf01   :  { %v5814_v11 = vmul.f32 %v5025_v59, %v1404_v10 }
 0xf03   :  { %1492 = vrot.lane.b32.xlu0 %v5814_v11, %s5382_s7 }
 0xf6d   :  { %v5818_v12 = vpop.permute.xlu1 %1408 }
 0xf6e   :  { %4409 = vmatmul.mubr.msk.f32.vlgmr.msra.gmra.mrb[10].mxu0 %vm214_vm2, %v5818_v12 }
 0xf6f   :  { %4790 = vmatpush3.bf16.msra.mxu0 %v5627_v40  ;;  %4430 = vmatprep.mubr.msk.f32.mxu0 %vm5378_vm0, %v5379_v8 }
 0xf70   :  { %4791 = vmatprep.subr.bf16.mxu0 %v5377_v1 }
 0xf73   :  { %4793 = vmatpush3.bf16.msra.mxu0 %v5631_v43 }
 0xf74   :  { %4800 = vmatprep.subr.bf16.mxu0 %v5377_v1 }
 0xf75   :  { %v1493_v13 = vpop.permute.xlu0 %1492 }
 0xf76   :  { %4420 = vmatmul.mubr.msk.f32.vlgmr.msra.gmra.mrb[16].mxu1 %vm214_vm2, %v1493_v13 }
 0xf77   :  { %4796 = vmatpush3.bf16.msra.mxu1 %v5646_v54  ;;  %4441 = vmatprep.mubr.msk.f32.mxu1 %vm5378_vm0, %v5379_v8 }
 0xf78   :  { %4797 = vmatprep.subr.bf16.mxu1 %v5377_v1 }
 0xf7b   :  { %4799 = vmatpush3.bf16.msra.mxu1 %v5651_v57 }
 0xf7c   :  { %4806 = vmatprep.subr.bf16.mxu1 %v5377_v1 }
0x1041   :  { %v1486_v16 = vpop.f32.mrb[10].mxu0 }
0x1042   :  { %v1490_v17 = vadd.f32 %v1486_v16, %v1417_v14  ;;  %v4410_v18 = vpop.f32.mrb[11].mxu0 }
0x1044   :  { %5030 = vtanh.f32 %v1490_v17  ;;  %v3984_v25 = vmul.f32 -1.442695, %v1490_v17 }
0x1049   :  { %v1562_v20 = vpop.f32.mrb[16].mxu1 }
0x104a   :  { %v1566_v21 = vadd.f32 %v1562_v20, %v1491_v19  ;;  %v4421_v22 = vpop.f32.mrb[17].mxu1 }
0x104c   :  { %5032 = vtanh.f32 %v1566_v21  ;;  %v3985_v26 = vmul.f32 -1.442695, %v1566_v21 }
0x104d   :  { %5034 = vpow2.f32 %v3984_v25 }
0x104e   :  { %v5031_v23 = vpop.eup %5030  ;;  %5036 = vpow2.f32 %v3985_v26 }
0x104f   :  { %1576 = vrot.lane.b32.xlu1 %v5031_v23, %s5381_s4 }
0x1056   :  { %v5033_v24 = vpop.eup %5032 }
0x1057   :  { %1600 = vrot.lane.b32.xlu0 %v5033_v24, %s5381_s4  ;;  %v5035_v27 = vpop.eup %5034 }
0x1058   :  { %v1570_v28 = vadd.f32 1.0, %v5035_v27  ;;  %v5037_v29 = vpop.eup %5036 }
0x1059   :  { %v1594_v30 = vadd.f32 1.0, %v5037_v29 }
0x105a   :  { %5038 = vrcp.f32 %v1570_v28 }
0x105b   :  { %5040 = vrcp.f32 %v1594_v30 }
0x1064   :  { %v5039_v32 = vpop.eup %5038 }
0x1065   :  { %v5041_v35 = vpop.eup %5040  ;;  %v1574_v39 = vmul.f32 %v5039_v32, %v1376_v0 }
0x1066   :  { %v1598_v44 = vmul.f32 %v5041_v35, %v1400_v4 }
0x10c1   :  { %v1577_v33 = vpop.permute.xlu1 %1576 }
0x10c2   :  { %v1579_v34 = vmul.f32 %v5039_v32, %v1577_v33 }
0x10c4   :  { %1581 = vrot.lane.b32.xlu1 %v1579_v34, %s5382_s7 }
0x10c9   :  { %v1601_v36 = vpop.permute.xlu0 %1600 }
0x10ca   :  { %v1603_v38 = vmul.f32 %v5041_v35, %v1601_v36  ;;  %v1907_v36 = vld [vmem:[#allocation3] sm:$0x1] }
0x10cc   :  { %1605 = vrot.lane.b32.xlu0 %v1603_v38, %s5382_s7 }
0x1136   :  { %v1582_v41 = vpop.permute.xlu1 %1581 }
0x1137   :  { %v1584_v42 = vadd.f32 %v1582_v41, %v1574_v39 }
0x1139   :  { %5042 = vtanh.f32 %v1584_v42 }
0x113e   :  { %v1606_v45 = vpop.permute.xlu0 %1605 }
0x113f   :  { %v1608_v46 = vadd.f32 %v1606_v45, %v1598_v44 }
0x1141   :  { %5044 = vtanh.f32 %v1608_v46 }
0x1143   :  { %v5043_v47 = vpop.eup %5042 }
0x1144   :  { %1587 = vrot.lane.b32.xlu1 %v5043_v47, %s5381_s4 }
0x114b   :  { %v5045_v48 = vpop.eup %5044 }
0x114c   :  { %1611 = vrot.lane.b32.xlu0 %v5045_v48, %s5381_s4 }
0x11b6   :  { %v1588_v49 = vpop.permute.xlu1 %1587 }
0x11b7   :  { %v1590_v50 = vmul.f32 %v5039_v32, %v1588_v49  ;;  %v1833_v32 = vld [vmem:[#allocation2 + $0x7] sm:$0x1] }
0x11b9   :  { %1616 = vrot.lane.b32.xlu1 %v1590_v50, %s5382_s7 }
0x11be   :  { %v1612_v51 = vpop.permute.xlu0 %1611 }
0x11bf   :  { %v5842_v52 = vmul.f32 %v5041_v35, %v1612_v51 }
0x11c1   :  { %1700 = vrot.lane.b32.xlu0 %v5842_v52, %s5382_s7 }
0x122b   :  { %v5846_v53 = vpop.permute.xlu1 %1616 }
0x122c   :  { %4431 = vmatmul.mubr.msk.f32.vlgmr.msra.gmra.mrb[12].mxu0 %vm214_vm2, %v5846_v53 }
0x122d   :  { %4802 = vmatpush3.bf16.msra.mxu0 %v5627_v40  ;;  %4452 = vmatprep.mubr.msk.f32.mxu0 %vm5378_vm0, %v5379_v8  ;;  %v1625_v40 = vld [vmem:[#allocation2 + $0x6] sm:$0x1] }
0x122e   :  { %4803 = vmatprep.subr.bf16.mxu0 %v5377_v1 }
0x1231   :  { %4805 = vmatpush3.bf16.msra.mxu0 %v5631_v43 }
0x1232   :  { %4812 = vmatprep.subr.bf16.mxu0 %v5377_v1 }
0x1233   :  { %v1701_v56 = vpop.permute.xlu0 %1700 }
0x1234   :  { %4442 = vmatmul.mubr.msk.f32.vlgmr.msra.gmra.mrb[18].mxu1 %vm214_vm2, %v1701_v56 }
0x1235   :  { %4808 = vmatpush3.bf16.msra.mxu1 %v5646_v54  ;;  %4463 = vmatprep.mubr.msk.f32.mxu1 %vm5378_vm0, %v5379_v8 }
0x1236   :  { %4809 = vmatprep.subr.bf16.mxu1 %v5377_v1 }
0x1239   :  { %4811 = vmatpush3.bf16.msra.mxu1 %v5651_v57 }
0x123a   :  { %4824 = vmatprep.subr.bf16.mxu1 %v5377_v1 }
0x12ff   :  { %v1694_v58 = vpop.f32.mrb[12].mxu0 }
0x1300   :  { %v1698_v59 = vadd.f32 %v1694_v58, %v1625_v40  ;;  %v4432_v43 = vpop.f32.mrb[13].mxu0 }
0x1302   :  { %5046 = vtanh.f32 %v1698_v59  ;;  %v3988_v2 = vmul.f32 -1.442695, %v1698_v59 }
0x1307   :  { %v1770_v61 = vpop.f32.mrb[18].mxu1 }
0x1308   :  { %v1774_v62 = vadd.f32 %v1770_v61, %v1699_v60  ;;  %v4443_v63 = vpop.f32.mrb[19].mxu1 }
0x130a   :  { %5048 = vtanh.f32 %v1774_v62  ;;  %v3989_v57 = vmul.f32 -1.442695, %v1774_v62 }
0x130b   :  { %5050 = vpow2.f32 %v3988_v2 }
0x130c   :  { %v5047_v54 = vpop.eup %5046  ;;  %5052 = vpow2.f32 %v3989_v57 }
0x130d   :  { %1784 = vrot.lane.b32.xlu1 %v5047_v54, %s5381_s4 }
0x1314   :  { %v5049_v0 = vpop.eup %5048 }
0x1315   :  { %1808 = vrot.lane.b32.xlu0 %v5049_v0, %s5381_s4  ;;  %v5051_v3 = vpop.eup %5050 }
0x1316   :  { %v1778_v4 = vadd.f32 1.0, %v5051_v3  ;;  %v5053_v5 = vpop.eup %5052  ;;  %v2062_v3 = vld [vmem:[%s6309_s8 + $0x18] sm:$0xff] }
0x1317   :  { %v1802_v6 = vadd.f32 1.0, %v5053_v5  ;;  %v2150_v5 = vld [vmem:[%s6312_s11 + $0x10] sm:$0xff] }
0x1318   :  { %5054 = vrcp.f32 %v1778_v4 }
0x1319   :  { %5056 = vrcp.f32 %v1802_v6  ;;  %v2151_v6 = vld [vmem:[%s6312_s11 + $0x18] sm:$0xff] }
0x1322   :  { %v5055_v7 = vpop.eup %5054 }
0x1323   :  { %v5057_v13 = vpop.eup %5056  ;;  %v1782_v17 = vmul.f32 %v5055_v7, %v1584_v42 }
0x1324   :  { %v1806_v20 = vmul.f32 %v5057_v13, %v1608_v46 }
0x137f   :  { %v1785_v9 = vpop.permute.xlu1 %1784 }
0x1380   :  { %v1787_v10 = vmul.f32 %v5055_v7, %v1785_v9  ;;  %v4828_v9 = vpack.c.bf16 %v2151_v6, %v2150_v5 }
0x1382   :  { %1789 = vrot.lane.b32.xlu1 %v1787_v10, %s5382_s7  ;;  %v2063_v10 = vld [vmem:[%s6309_s8 + $0x20] sm:$0xff] }
0x1387   :  { %v1809_v14 = vpop.permute.xlu0 %1808 }
0x1388   :  { %v1811_v16 = vmul.f32 %v5057_v13, %v1809_v14  ;;  %v2152_v14 = vld [vmem:[%s6312_s11 + $0x20] sm:$0xff] }
0x138a   :  { %1813 = vrot.lane.b32.xlu0 %v1811_v16, %s5382_s7 }
0x13f4   :  { %v1790_v18 = vpop.permute.xlu1 %1789 }
0x13f5   :  { %v1792_v19 = vadd.f32 %v1790_v18, %v1782_v17  ;;  %v2153_v17 = vld [vmem:[%s6312_s11 + $0x28] sm:$0xff] }
0x13f7   :  { %5058 = vtanh.f32 %v1792_v19 }
0x13fc   :  { %v1814_v21 = vpop.permute.xlu0 %1813 }
0x13fd   :  { %v1816_v22 = vadd.f32 %v1814_v21, %v1806_v20  ;;  %v2065_v21 = vld [vmem:[%s6309_s8 + $0x30] sm:$0xff] }
0x13ff   :  { %5060 = vtanh.f32 %v1816_v22 }
0x1401   :  { %v5059_v23 = vpop.eup %5058 }
0x1402   :  { %1795 = vrot.lane.b32.xlu1 %v5059_v23, %s5381_s4  ;;  %v2154_v23 = vld [vmem:[%s6312_s11 + $0x30] sm:$0xff] }
0x1409   :  { %v5061_v24 = vpop.eup %5060 }
0x140a   :  { %1819 = vrot.lane.b32.xlu0 %v5061_v24, %s5381_s4 }
0x1474   :  { %v1796_v25 = vpop.permute.xlu1 %1795 }
0x1475   :  { %v1798_v26 = vmul.f32 %v5055_v7, %v1796_v25  ;;  %v2155_v25 = vld [vmem:[%s6312_s11 + $0x38] sm:$0xff] }
0x1477   :  { %1824 = vrot.lane.b32.xlu1 %v1798_v26, %s5382_s7 }
0x147c   :  { %v1820_v27 = vpop.permute.xlu0 %1819 }
0x147d   :  { %v1822_v28 = vmul.f32 %v5057_v13, %v1820_v27  ;;  %v2064_v13 = vld [vmem:[%s6309_s8 + $0x28] sm:$0xff]  ;;  %v4834_v27 = vpack.c.bf16 %v2155_v25, %v2154_v23 }
0x147e   :  { %v4819_v16 = vpack.c.bf16 %v2064_v13, %v2063_v10 }
0x147f   :  { %1908 = vrot.lane.b32.xlu0 %v1822_v28, %s5382_s7 }
0x14e9   :  { %v5871_v29 = vpop.permute.xlu1 %1824 }
0x14ea   :  { %4453 = vmatmul.mubr.msk.f32.vlgmr.msra.gmra.mrb[14].mxu0 %vm214_vm2, %v5871_v29 }
0x14eb   :  { %4482 = vmatprep.mubr.msk.f32.mxu0 %vm5378_vm0, %v5379_v8 }
0x14f1   :  { %v1909_v30 = vpop.permute.xlu0 %1908 }
0x14f2   :  { %4464 = vmatmul.mubr.msk.f32.vlgmr.msra.gmra.mrb[20].mxu1 %vm214_vm2, %v1909_v30 }
0x14f3   :  { %4501 = vmatprep.mubr.msk.f32.mxu1 %vm5378_vm0, %v5379_v8 }
0x15bd   :  { %v1902_v33 = vpop.f32.mrb[14].mxu0 }
0x15be   :  { %v1906_v34 = vadd.f32 %v1902_v33, %v1833_v32  ;;  %v4454_v35 = vpop.f32.mrb[15].mxu0 }
0x15c0   :  { %5062 = vtanh.f32 %v1906_v34  ;;  %v3992_v45 = vmul.f32 -1.442695, %v1906_v34 }
0x15c5   :  { %v1978_v38 = vpop.f32.mrb[20].mxu1 }
0x15c6   :  { %v1982_v39 = vadd.f32 %v1978_v38, %v1907_v36  ;;  %v4465_v41 = vpop.f32.mrb[21].mxu1 }
0x15c7   :  { %v2238_v41 = vld [vmem:[#allocation10 + $0x8] sm:$0xff] }
0x15c8   :  { %5064 = vtanh.f32 %v1982_v39  ;;  %v3993_v46 = vmul.f32 -1.442695, %v1982_v39 }
0x15c9   :  { %5066 = vpow2.f32 %v3992_v45 }
0x15ca   :  { %v5063_v42 = vpop.eup %5062  ;;  %5068 = vpow2.f32 %v3993_v46  ;;  %v2239_v46 = vld [vmem:[#allocation10 + $0x10] sm:$0xff] }
0x15cb   :  { %1992 = vrot.lane.b32.xlu1 %v5063_v42, %s5381_s4  ;;  %v2233_v42 = vld [vmem:[%s6310_s9] sm:$0xff] }
0x15d2   :  { %v5065_v44 = vpop.eup %5064 }
0x15d3   :  { %2016 = vrot.lane.b32.xlu0 %v5065_v44, %s5381_s4  ;;  %v5067_v47 = vpop.eup %5066 }
0x15d4   :  { %v1986_v48 = vadd.f32 1.0, %v5067_v47  ;;  %v5069_v49 = vpop.eup %5068  ;;  %v2240_v47 = vld [vmem:[#allocation10 + $0x18] sm:$0xff] }
0x15d5   :  { %v2010_v50 = vadd.f32 1.0, %v5069_v49  ;;  %v2236_v49 = vld [vmem:[%s6310_s9 + $0x18] sm:$0xff] }
0x15d6   :  { %5070 = vrcp.f32 %v1986_v48  ;;  %v2235_v48 = vld [vmem:[%s6310_s9 + $0x10] sm:$0xff] }
0x15d7   :  { %5072 = vrcp.f32 %v2010_v50 }
0x15e0   :  { %v5071_v51 = vpop.eup %5070 }
0x15e1   :  { %v5883_v58 = vpop.eup %5072  ;;  %v1990_v60 = vmul.f32 %v5071_v51, %v1792_v19  ;;  %v4831_v19 = vpack.c.bf16 %v2153_v17, %v2152_v14 }
0x15e2   :  { %v2014_v63 = vmul.f32 %v5883_v58, %v1816_v22  ;;  %v2066_v22 = vld [vmem:[%s6309_s8 + $0x38] sm:$0xff] }
0x15e3   :  { %v4822_v24 = vpack.c.bf16 %v2066_v22, %v2065_v21 }
0x163d   :  { %v1993_v56 = vpop.permute.xlu1 %1992 }
0x163e   :  { %v1995_v40 = vmul.f32 %v5071_v51, %v1993_v56  ;;  %v6007_v56 = vpack.c.bf16 %v2236_v49, %v2235_v48 }
0x1640   :  { %1997 = vrot.lane.b32.xlu1 %v1995_v40, %s5382_s7  ;;  %v3994_v40 = vld [vmem:[%s6311_s10] ss:$0 sm:$0xff]  ;;  %s5383_s10 = smov 96  }
0x1645   :  { %v2017_v59 = vpop.permute.xlu0 %2016 }
0x1646   :  { %v2019_v43 = vmul.f32 %v5883_v58, %v2017_v59 }
0x1648   :  { %2021 = vrot.lane.b32.xlu0 %v2019_v43, %s5382_s7 }
0x16b2   :  { %v1998_v61 = vpop.permute.xlu1 %1997 }
0x16b3   :  { %v5887_v62 = vadd.f32 %v1998_v61, %v1990_v60 }
0x16b5   :  { %5074 = vtanh.f32 %v5887_v62 }
0x16ba   :  { %v2022_v54 = vpop.permute.xlu0 %2021 }
0x16bb   :  { %v5891_v0 = vadd.f32 %v2022_v54, %v2014_v63 }
0x16bd   :  { %5076 = vtanh.f32 %v5891_v0 }
0x16bf   :  { %v5075_v2 = vpop.eup %5074 }
0x16c0   :  { %2003 = vrot.lane.b32.xlu1 %v5075_v2, %s5381_s4 }
0x16c4   :  { %580 = vrot.lane.b32.xlu1 %v5684_v37, %s5381_s4  ;;  %v2059_v37 = vld [vmem:[%s6309_s8] sm:$0xff] }
0x16c7   :  { %v5077_v57 = vpop.eup %5076 }
0x16c8   :  { %2027 = vrot.lane.b32.xlu0 %v5077_v57, %s5381_s4  ;;  %997 = vrot.lane.b32.xlu1 %v5752_v55, %s5381_s4  ;;  %v2060_v55 = vld [vmem:[%s6309_s8 + $0x8] sm:$0xff] }
0x16cc   :  { %789 = vrot.lane.b32.xlu0 %v5718_v15, %s5381_s4  ;;  %1413 = vrot.lane.b32.xlu1 %v5814_v11, %s5381_s4  ;;  %v2148_v15 = vld [vmem:[%s6312_s11] sm:$0xff]  ;;  %v4813_v11 = vpack.c.bf16 %v2060_v55, %v2059_v37 }
0x16ce   :  { %4814 = vmatpush3.bf16.msra.mxu0 %v4813_v11 }
0x16cf   :  { %4815 = vmatprep.subr.bf16.mxu0 %v5377_v1 }
0x16d0   :  { %1205 = vrot.lane.b32.xlu0 %v5786_v31, %s5381_s4  ;;  %1829 = vrot.lane.b32.xlu1 %v1822_v28, %s5381_s4  ;;  %v2149_v31 = vld [vmem:[%s6312_s11 + $0x8] sm:$0xff] }
0x16d1   :  { %v4825_v4 = vpack.c.bf16 %v2149_v31, %v2148_v15 }
0x16d3   :  { %4826 = vmatpush3.bf16.msra.mxu1 %v4825_v4 }
0x16d4   :  { %1621 = vrot.lane.b32.xlu0 %v5842_v52, %s5381_s4  ;;  %v2061_v52 = vld [vmem:[%s6309_s8 + $0x10] sm:$0xff]  ;;  %4827 = vmatprep.subr.bf16.mxu1 %v5377_v1 }
0x16d5   :  { %v4816_v7 = vpack.c.bf16 %v2062_v3, %v2061_v52 }
0x16d7   :  { %4817 = vmatpush3.bf16.msra.mxu0 %v4816_v7  ;;  %4829 = vmatpush3.bf16.msra.mxu1 %v4828_v9 }
0x16d8   :  { %4818 = vmatprep.subr.bf16.mxu0 %v5377_v1  ;;  %4830 = vmatprep.subr.bf16.mxu1 %v5377_v1 }
0x16db   :  { %4820 = vmatpush3.bf16.msra.mxu0 %v4819_v16  ;;  %4832 = vmatpush3.bf16.msra.mxu1 %v4831_v19 }
0x16dc   :  { %4821 = vmatprep.subr.bf16.mxu0 %v5377_v1  ;;  %4833 = vmatprep.subr.bf16.mxu1 %v5377_v1 }
0x16df   :  { %4823 = vmatpush3.bf16.msra.mxu0 %v4822_v24  ;;  %4835 = vmatpush3.bf16.msra.mxu1 %v4834_v27 }
0x16e0   :  { %4836 = vmatprep.subr.bf16.mxu0 %v5377_v1  ;;  %4842 = vmatprep.subr.bf16.mxu1 %v5377_v1 }
0x1732   :  { %v2004_v18 = vpop.permute.xlu1 %2003 }
0x1733   :  { %v2006_v20 = vmul.f32 %v5071_v51, %v2004_v18  ;;  %v6005_v51 = vpack.c.bf16 %v2240_v47, %v2239_v46 }
0x1735   :  { %2032 = vrot.lane.b32.xlu0 %v2006_v20, %s5382_s7 }
0x1736   :  { %v581_v26 = vpop.permute.xlu1 %580 }
0x1737   :  { %584 = vst.msk [vmem:[#allocation12 + $0x7] sm:$0x1] %vm583_vm4, %v581_v26 }
0x173a   :  { %v2028_v28 = vpop.permute.xlu0 %2027  ;;  %v998_v30 = vpop.permute.xlu1 %997 }
0x173b   :  { %v5968_v32 = vmul.f32 %v5883_v58, %v2028_v28  ;;  %1000 = vst.msk [vmem:[#allocation12 + $0x5] sm:$0x1] %vm583_vm4, %v998_v30  ;;  %v3996_v58 = vld [vmem:[%s6314_s13] ss:$0 sm:$0xff]  ;;  %s5384_s13 = smov [#allocation13]  }
0x173c   :  { %1619 = vst.msk [vmem:[#allocation12 + $0x5] sm:$0x1] %vm577_vm3, %v5846_v53 }
0x173d   :  { %2037 = vrot.lane.b32.xlu1 %v5968_v32, %s5381_s4 }
0x173e   :  { %v790_v33 = vpop.permute.xlu0 %789  ;;  %v1414_v34 = vpop.permute.xlu1 %1413 }
0x173f   :  { %792 = vst.msk [vmem:[#allocation12 + $0x6] sm:$0x1] %vm583_vm4, %v790_v33  ;;  %1416 = vst.msk [vmem:[#allocation12 + $0x3] sm:$0x1] %vm583_vm4, %v1414_v34 }
0x1740   :  { %1827 = vst.msk [vmem:[#allocation12 + $0x6] sm:$0x1] %vm577_vm3, %v5871_v29  ;;  %v2237_v29 = vld [vmem:[#allocation10] sm:$0xff] }
0x1741   :  { %v5993_v44 = vpack.c.bf16 %v2238_v41, %v2237_v29 }
0x1742   :  { %v1206_v35 = vpop.permute.xlu0 %1205  ;;  %v1830_v36 = vpop.permute.xlu1 %1829 }
0x1743   :  { %1208 = vst.msk [vmem:[#allocation12 + $0x4] sm:$0x1] %vm583_vm4, %v1206_v35  ;;  %1832 = vst.msk [vmem:[#allocation12 + $0x1] sm:$0x1] %vm583_vm4, %v1830_v36 }
0x1744   :  { %1411 = vst.msk [vmem:[#allocation12 + $0x4] sm:$0x1] %vm577_vm3, %v5818_v12  ;;  %v2234_v12 = vld [vmem:[%s6310_s9 + $0x8] sm:$0xff] }
0x1745   :  { %v5995_v45 = vpack.c.bf16 %v2234_v12, %v2233_v42 }
0x1746   :  { %v1622_v53 = vpop.permute.xlu0 %1621 }
0x1747   :  { %1624 = vst.msk [vmem:[#allocation12 + $0x2] sm:$0x1] %vm583_vm4, %v1622_v53 }
0x17a7   :  { %v2033_v38 = vpop.permute.xlu0 %2032 }
0x17a8   :  { %2035 = vst.msk [vmem:[#allocation12 + $0x7] sm:$0x1] %vm577_vm3, %v2033_v38  ;;  %2041 = vst.msk [vmem:[#allocation13] sm:$0x1] %vm577_vm3, %v2033_v38 }
0x17af   :  { %v2038_v39 = vpop.permute.xlu1 %2037 }
0x17b0   :  { %2040 = vst.msk [vmem:[#allocation12] sm:$0x1] %vm583_vm4, %v2038_v39 }
0x17b7   :  { %v2058_v50 = vld [vmem:[#allocation12] sm:$0xff] }
0x17b8   :  { %4483 = vmatmul.mubr.msk.f32.vlgmr.msra.gmra.mrb[16].mxu0 %vm2073_vm5, %v2058_v50  ;;  %4502 = vmatmul.mubr.msk.f32.vlgmr.msra.gmra.mrb[22].mxu1 %vm2073_vm5, %v2058_v50 }
0x17b9   :  { %4844 = vmatpush3.bf16.msra.mxu1 %v5993_v44  ;;  %4838 = vmatpush3.bf16.msra.mxu0 %v5995_v45 }
0x17ba   :  { %4845 = vmatprep.subr.bf16.mxu1 %v5377_v1  ;;  %4839 = vmatprep.subr.bf16.mxu0 %v5377_v1 }
0x17bb   :  { %4523 = vmatprep.mubr.msk.f32.mxu1 %vm5378_vm0, %v5379_v8  ;;  %4512 = vmatprep.mubr.msk.f32.mxu0 %vm5378_vm0, %v5379_v8 }
0x17bd   :  { %4847 = vmatpush3.bf16.msra.mxu1 %v6005_v51  ;;  %4841 = vmatpush3.bf16.msra.mxu0 %v6007_v56 }
0x17be   :  { %4848 = vmatprep.subr.bf16.mxu0 %v5377_v1  ;;  %4854 = vmatprep.subr.bf16.mxu1 %v5377_v1 }
0x17c0   :  { %4524 = vmatmul.mubr.f32.vlgmr.msra.gmra.mrb[24].mxu1 %v5379_v8  ;;  %4513 = vmatmul.mubr.f32.vlgmr.msra.gmra.mrb[18].mxu0 %v5379_v8 }
0x17c1   :  { %4850 = vmatpush3.bf16.msra.mxu0 %v5995_v45  ;;  %4856 = vmatpush3.bf16.msra.mxu1 %v5993_v44 }
0x17c2   :  { %4851 = vmatprep.subr.bf16.mxu0 %v5377_v1  ;;  %4857 = vmatprep.subr.bf16.mxu1 %v5377_v1 }
0x17c3   :  { %4545 = vmatprep.mubr.msk.f32.mxu1 %vm5378_vm0, %v5379_v8  ;;  %4534 = vmatprep.mubr.msk.f32.mxu0 %vm5378_vm0, %v5379_v8 }
0x17c5   :  { %4853 = vmatpush3.bf16.msra.mxu0 %v6007_v56  ;;  %4859 = vmatpush3.bf16.msra.mxu1 %v6005_v51 }
0x17c6   :  { %4860 = vmatprep.subr.bf16.mxu0 %v5377_v1  ;;  %4866 = vmatprep.subr.bf16.mxu1 %v5377_v1 }
0x188b   :  { %v2143_v59 = vpop.f32.mrb[16].mxu0  ;;  %v2228_v43 = vpop.f32.mrb[22].mxu1 }
0x188c   :  { %v2144_v60 = vadd.f32 %v3994_v40, %v2143_v59  ;;  %v2229_v61 = vadd.f32 %v3996_v58, %v2228_v43  ;;  %v4484_v63 = vpop.f32.mrb[17].mxu0  ;;  %v4503_v54 = vpop.f32.mrb[23].mxu1 }
0x188e   :  { %2147 = vst [vmem:[#allocation2] sm:$0xff] %v2144_v60  ;;  %2232 = vst [vmem:[#allocation3] sm:$0xff] %v2229_v61 }
0x1893   :  { %v2380_v2 = vpop.f32.mrb[24].mxu1  ;;  %v2308_v57 = vpop.f32.mrb[18].mxu0 }
0x1894   :  { %v4525_v37 = vpop.f32.mrb[25].mxu1  ;;  %v4514_v55 = vpop.f32.mrb[19].mxu0 }
0x1895   :  { %v2313_v15 = vld [vmem:[#allocation3 + $0x7] sm:$0x1]  ;;  %v2241_v11 = vld [vmem:[#allocation2] sm:$0x1]  ;;  %v2517_v38 = vld [vmem:[#allocation3 + $0x6] sm:$0x1] }
0x1896   :  { %v2384_v31 = vadd.f32 %v2380_v2, %v2313_v15  ;;  %v2312_v52 = vadd.f32 %v2308_v57, %v2241_v11  ;;  %v2443_v29 = vld [vmem:[#allocation2 + $0x1] sm:$0x1] }
0x1898   :  { %5078 = vtanh.f32 %v2384_v31  ;;  %v3999_v5 = vmul.f32 -1.442695, %v2384_v31  ;;  %v3998_v6 = vmul.f32 -1.442695, %v2312_v52 }
0x1899   :  { %5080 = vtanh.f32 %v2312_v52 }
0x189a   :  { %5082 = vpow2.f32 %v3999_v5 }
0x189b   :  { %5084 = vpow2.f32 %v3998_v6 }
0x18a2   :  { %v5079_v3 = vpop.eup %5078 }
0x18a3   :  { %v5081_v4 = vpop.eup %5080  ;;  %2418 = vrot.lane.b32.xlu1 %v5079_v3, %s5381_s4 }
0x18a4   :  { %2394 = vrot.lane.b32.xlu0 %v5081_v4, %s5381_s4  ;;  %v5083_v7 = vpop.eup %5082 }
0x18a5   :  { %v5085_v9 = vpop.eup %5084  ;;  %v2412_v10 = vadd.f32 1.0, %v5083_v7 }
0x18a6   :  { %v2388_v13 = vadd.f32 1.0, %v5085_v9 }
0x18a7   :  { %5086 = vrcp.f32 %v2412_v10 }
0x18a8   :  { %5088 = vrcp.f32 %v2388_v13 }
0x18b1   :  { %v5087_v14 = vpop.eup %5086 }
0x18b2   :  { %v5089_v17 = vpop.eup %5088  ;;  %v2416_v21 = vmul.f32 0.0, %v5087_v14 }
0x18b3   :  { %v2392_v23 = vmul.f32 0.0, %v5089_v17 }
0x1915   :  { %v2419_v16 = vpop.permute.xlu1 %2418 }
0x1916   :  { %v2421_v18 = vmul.f32 %v5087_v14, %v2419_v16  ;;  %v2395_v19 = vpop.permute.xlu0 %2394  ;;  %v2725_v16 = vld [vmem:[#allocation3 + $0x5] sm:$0x1] }
0x1917   :  { %v2397_v20 = vmul.f32 %v5089_v17, %v2395_v19 }
0x1918   :  { %2423 = vrot.lane.b32.xlu1 %v2421_v18, %s5382_s7  ;;  %v2651_v18 = vld [vmem:[#allocation2 + $0x2] sm:$0x1] }
0x1919   :  { %2399 = vrot.lane.b32.xlu0 %v2397_v20, %s5382_s7 }
0x198a   :  { %v2424_v22 = vpop.permute.xlu1 %2423 }
0x198b   :  { %v2426_v24 = vadd.f32 %v2424_v22, %v2416_v21  ;;  %v2400_v25 = vpop.permute.xlu0 %2399 }
0x198c   :  { %v2402_v26 = vadd.f32 %v2400_v25, %v2392_v23 }
0x198d   :  { %5090 = vtanh.f32 %v2426_v24 }
0x198e   :  { %5092 = vtanh.f32 %v2402_v26 }
0x1997   :  { %v5091_v27 = vpop.eup %5090 }
0x1998   :  { %v5093_v28 = vpop.eup %5092  ;;  %2429 = vrot.lane.b32.xlu1 %v5091_v27, %s5381_s4 }
0x1999   :  { %2405 = vrot.lane.b32.xlu0 %v5093_v28, %s5381_s4 }
0x1a0a   :  { %v2430_v30 = vpop.permute.xlu1 %2429 }
0x1a0b   :  { %v6045_v33 = vmul.f32 %v5087_v14, %v2430_v30  ;;  %v2406_v34 = vpop.permute.xlu0 %2405 }
0x1a0c   :  { %v2408_v35 = vmul.f32 %v5089_v17, %v2406_v34 }
0x1a0d   :  { %2518 = vrot.lane.b32.xlu1 %v6045_v33, %s5382_s7 }
0x1a0e   :  { %2434 = vrot.lane.b32.xlu0 %v2408_v35, %s5382_s7 }
0x1a7f   :  { %v2519_v36 = vpop.permute.xlu1 %2518 }
0x1a80   :  { %v2435_v53 = vpop.permute.xlu0 %2434  ;;  %4546 = vmatmul.mubr.msk.f32.vlgmr.msra.gmra.mrb[26].mxu1 %vm214_vm2, %v2519_v36 }
0x1a81   :  { %2437 = vst.msk [vmem:[#allocation12] sm:$0x1] %vm577_vm3, %v2435_v53  ;;  %4535 = vmatmul.mubr.msk.f32.vlgmr.msra.gmra.mrb[20].mxu0 %vm214_vm2, %v2435_v53  ;;  %4868 = vmatpush3.bf16.msra.mxu1 %v5993_v44 }
0x1a82   :  { %4862 = vmatpush3.bf16.msra.mxu0 %v5995_v45  ;;  %4869 = vmatprep.subr.bf16.mxu1 %v5377_v1 }
0x1a83   :  { %4863 = vmatprep.subr.bf16.mxu0 %v5377_v1  ;;  %4567 = vmatprep.mubr.msk.f32.mxu1 %vm5378_vm0, %v5379_v8 }
0x1a84   :  { %4556 = vmatprep.mubr.msk.f32.mxu0 %vm5378_vm0, %v5379_v8 }
0x1a85   :  { %4871 = vmatpush3.bf16.msra.mxu1 %v6005_v51 }
0x1a86   :  { %4865 = vmatpush3.bf16.msra.mxu0 %v6007_v56  ;;  %4878 = vmatprep.subr.bf16.mxu1 %v5377_v1 }
0x1a87   :  { %4872 = vmatprep.subr.bf16.mxu0 %v5377_v1 }
0x1b53   :  { %v2588_v39 = vpop.f32.mrb[26].mxu1 }
0x1b54   :  { %v2512_v41 = vpop.f32.mrb[20].mxu0  ;;  %v2592_v42 = vadd.f32 %v2588_v39, %v2517_v38  ;;  %v4547_v12 = vpop.f32.mrb[27].mxu1 }
0x1b55   :  { %v2516_v46 = vadd.f32 %v2512_v41, %v2443_v29  ;;  %v4536_v47 = vpop.f32.mrb[21].mxu0 }
0x1b56   :  { %5094 = vtanh.f32 %v2592_v42  ;;  %v4003_v50 = vmul.f32 -1.442695, %v2592_v42 }
0x1b57   :  { %5096 = vtanh.f32 %v2516_v46  ;;  %v4002_v40 = vmul.f32 -1.442695, %v2516_v46 }
0x1b58   :  { %5098 = vpow2.f32 %v4003_v50 }
0x1b59   :  { %5100 = vpow2.f32 %v4002_v40 }
0x1b60   :  { %v5095_v48 = vpop.eup %5094 }
0x1b61   :  { %v5097_v49 = vpop.eup %5096  ;;  %2626 = vrot.lane.b32.xlu1 %v5095_v48, %s5381_s4 }
0x1b62   :  { %2602 = vrot.lane.b32.xlu0 %v5097_v49, %s5381_s4  ;;  %v5099_v58 = vpop.eup %5098 }
0x1b63   :  { %v5101_v59 = vpop.eup %5100  ;;  %v2620_v43 = vadd.f32 1.0, %v5099_v58 }
0x1b64   :  { %v2596_v60 = vadd.f32 1.0, %v5101_v59 }
0x1b65   :  { %5102 = vrcp.f32 %v2620_v43 }
0x1b66   :  { %5104 = vrcp.f32 %v2596_v60 }
0x1b6f   :  { %v5103_v61 = vpop.eup %5102 }
0x1b70   :  { %v5105_v54 = vpop.eup %5104  ;;  %v2624_v55 = vmul.f32 %v5103_v61, %v2426_v24 }
0x1b71   :  { %v2600_v11 = vmul.f32 %v5105_v54, %v2402_v26 }
0x1bd3   :  { %v2627_v63 = vpop.permute.xlu1 %2626 }
0x1bd4   :  { %v2629_v2 = vmul.f32 %v5103_v61, %v2627_v63  ;;  %v2603_v57 = vpop.permute.xlu0 %2602 }
0x1bd5   :  { %v2605_v37 = vmul.f32 %v5105_v54, %v2603_v57  ;;  %v2859_v57 = vld [vmem:[#allocation2 + $0x3] sm:$0x1] }
0x1bd6   :  { %2631 = vrot.lane.b32.xlu1 %v2629_v2, %s5382_s7 }
0x1bd7   :  { %2607 = vrot.lane.b32.xlu0 %v2605_v37, %s5382_s7 }
0x1c48   :  { %v2632_v15 = vpop.permute.xlu1 %2631 }
0x1c49   :  { %v2634_v31 = vadd.f32 %v2632_v15, %v2624_v55  ;;  %v2608_v52 = vpop.permute.xlu0 %2607 }
0x1c4a   :  { %v2610_v3 = vadd.f32 %v2608_v52, %v2600_v11 }
0x1c4b   :  { %5106 = vtanh.f32 %v2634_v31 }
0x1c4c   :  { %5108 = vtanh.f32 %v2610_v3 }
0x1c55   :  { %v5107_v4 = vpop.eup %5106 }
0x1c56   :  { %v5109_v5 = vpop.eup %5108  ;;  %2637 = vrot.lane.b32.xlu1 %v5107_v4, %s5381_s4 }
0x1c57   :  { %2613 = vrot.lane.b32.xlu0 %v5109_v5, %s5381_s4 }
0x1cc8   :  { %v2638_v6 = vpop.permute.xlu1 %2637 }
0x1cc9   :  { %v6071_v7 = vmul.f32 %v5103_v61, %v2638_v6  ;;  %v2614_v9 = vpop.permute.xlu0 %2613 }
0x1cca   :  { %v2616_v10 = vmul.f32 %v5105_v54, %v2614_v9  ;;  %v2933_v54 = vld [vmem:[#allocation3 + $0x4] sm:$0x1] }
0x1ccb   :  { %2726 = vrot.lane.b32.xlu1 %v6071_v7, %s5382_s7 }
0x1ccc   :  { %2642 = vrot.lane.b32.xlu0 %v2616_v10, %s5382_s7 }
0x1d3d   :  { %v2727_v13 = vpop.permute.xlu1 %2726 }
0x1d3e   :  { %v2643_v14 = vpop.permute.xlu0 %2642  ;;  %4568 = vmatmul.mubr.msk.f32.vlgmr.msra.gmra.mrb[28].mxu1 %vm214_vm2, %v2727_v13 }
0x1d3f   :  { %2645 = vst.msk [vmem:[#allocation12 + $0x1] sm:$0x1] %vm577_vm3, %v2643_v14  ;;  %4557 = vmatmul.mubr.msk.f32.vlgmr.msra.gmra.mrb[22].mxu0 %vm214_vm2, %v2643_v14  ;;  %4880 = vmatpush3.bf16.msra.mxu1 %v5993_v44 }
0x1d40   :  { %4874 = vmatpush3.bf16.msra.mxu0 %v5995_v45  ;;  %4881 = vmatprep.subr.bf16.mxu1 %v5377_v1 }
0x1d41   :  { %4875 = vmatprep.subr.bf16.mxu0 %v5377_v1  ;;  %4589 = vmatprep.mubr.msk.f32.mxu1 %vm5378_vm0, %v5379_v8 }
0x1d42   :  { %4578 = vmatprep.mubr.msk.f32.mxu0 %vm5378_vm0, %v5379_v8 }
0x1d43   :  { %4883 = vmatpush3.bf16.msra.mxu1 %v6005_v51 }
0x1d44   :  { %4877 = vmatpush3.bf16.msra.mxu0 %v6007_v56  ;;  %4890 = vmatprep.subr.bf16.mxu1 %v5377_v1 }
0x1d45   :  { %4884 = vmatprep.subr.bf16.mxu0 %v5377_v1 }
0x1e11   :  { %v2796_v17 = vpop.f32.mrb[28].mxu1 }
0x1e12   :  { %v2720_v19 = vpop.f32.mrb[22].mxu0  ;;  %v2800_v20 = vadd.f32 %v2796_v17, %v2725_v16  ;;  %v4569_v21 = vpop.f32.mrb[29].mxu1 }
0x1e13   :  { %v2724_v22 = vadd.f32 %v2720_v19, %v2651_v18  ;;  %v4558_v23 = vpop.f32.mrb[23].mxu0 }
0x1e14   :  { %5110 = vtanh.f32 %v2800_v20  ;;  %v4007_v26 = vmul.f32 -1.442695, %v2800_v20 }
0x1e15   :  { %5112 = vtanh.f32 %v2724_v22  ;;  %v4006_v27 = vmul.f32 -1.442695, %v2724_v22 }
0x1e16   :  { %5114 = vpow2.f32 %v4007_v26 }
0x1e17   :  { %5116 = vpow2.f32 %v4006_v27 }
0x1e1e   :  { %v5111_v24 = vpop.eup %5110 }
0x1e1f   :  { %v5113_v25 = vpop.eup %5112  ;;  %2834 = vrot.lane.b32.xlu1 %v5111_v24, %s5381_s4 }
0x1e20   :  { %2810 = vrot.lane.b32.xlu0 %v5113_v25, %s5381_s4  ;;  %v5115_v28 = vpop.eup %5114 }
0x1e21   :  { %v5117_v30 = vpop.eup %5116  ;;  %v2828_v34 = vadd.f32 1.0, %v5115_v28 }
0x1e22   :  { %v2804_v35 = vadd.f32 1.0, %v5117_v30 }
0x1e23   :  { %5118 = vrcp.f32 %v2828_v34 }
0x1e24   :  { %5120 = vrcp.f32 %v2804_v35 }
0x1e2d   :  { %v5119_v36 = vpop.eup %5118 }
0x1e2e   :  { %v5121_v38 = vpop.eup %5120  ;;  %v2832_v42 = vmul.f32 %v5119_v36, %v2634_v31 }
0x1e2f   :  { %v2808_v46 = vmul.f32 %v5121_v38, %v2610_v3 }
0x1e91   :  { %v2835_v53 = vpop.permute.xlu1 %2834 }
0x1e92   :  { %v2837_v39 = vmul.f32 %v5119_v36, %v2835_v53  ;;  %v2811_v29 = vpop.permute.xlu0 %2810 }
0x1e93   :  { %v2813_v41 = vmul.f32 %v5121_v38, %v2811_v29 }
0x1e94   :  { %2839 = vrot.lane.b32.xlu1 %v2837_v39, %s5382_s7  ;;  %v3141_v39 = vld [vmem:[#allocation3 + $0x3] sm:$0x1] }
0x1e95   :  { %2815 = vrot.lane.b32.xlu0 %v2813_v41, %s5382_s7  ;;  %v3067_v41 = vld [vmem:[#allocation2 + $0x4] sm:$0x1] }
0x1f06   :  { %v2840_v12 = vpop.permute.xlu1 %2839 }
0x1f07   :  { %v2842_v47 = vadd.f32 %v2840_v12, %v2832_v42  ;;  %v2816_v48 = vpop.permute.xlu0 %2815 }
0x1f08   :  { %v2818_v49 = vadd.f32 %v2816_v48, %v2808_v46 }
0x1f09   :  { %5122 = vtanh.f32 %v2842_v47 }
0x1f0a   :  { %5124 = vtanh.f32 %v2818_v49 }
0x1f13   :  { %v5123_v50 = vpop.eup %5122 }
0x1f14   :  { %v5125_v40 = vpop.eup %5124  ;;  %2845 = vrot.lane.b32.xlu1 %v5123_v50, %s5381_s4 }
0x1f15   :  { %2821 = vrot.lane.b32.xlu0 %v5125_v40, %s5381_s4 }
0x1f86   :  { %v2846_v58 = vpop.permute.xlu1 %2845 }
0x1f87   :  { %v6097_v59 = vmul.f32 %v5119_v36, %v2846_v58  ;;  %v2822_v43 = vpop.permute.xlu0 %2821 }
0x1f88   :  { %v2824_v60 = vmul.f32 %v5121_v38, %v2822_v43 }
0x1f89   :  { %2934 = vrot.lane.b32.xlu1 %v6097_v59, %s5382_s7 }
0x1f8a   :  { %2850 = vrot.lane.b32.xlu0 %v2824_v60, %s5382_s7 }
0x1ffb   :  { %v2935_v61 = vpop.permute.xlu1 %2934 }
0x1ffc   :  { %v2851_v63 = vpop.permute.xlu0 %2850  ;;  %4590 = vmatmul.mubr.msk.f32.vlgmr.msra.gmra.mrb[30].mxu1 %vm214_vm2, %v2935_v61 }
0x1ffd   :  { %2853 = vst.msk [vmem:[#allocation12 + $0x2] sm:$0x1] %vm577_vm3, %v2851_v63  ;;  %4579 = vmatmul.mubr.msk.f32.vlgmr.msra.gmra.mrb[24].mxu0 %vm214_vm2, %v2851_v63  ;;  %4892 = vmatpush3.bf16.msra.mxu1 %v5993_v44 }
0x1ffe   :  { %4886 = vmatpush3.bf16.msra.mxu0 %v5995_v45  ;;  %4893 = vmatprep.subr.bf16.mxu1 %v5377_v1 }
0x1fff   :  { %4887 = vmatprep.subr.bf16.mxu0 %v5377_v1  ;;  %4611 = vmatprep.mubr.msk.f32.mxu1 %vm5378_vm0, %v5379_v8 }
0x2000   :  { %4600 = vmatprep.mubr.msk.f32.mxu0 %vm5378_vm0, %v5379_v8 }
0x2001   :  { %4895 = vmatpush3.bf16.msra.mxu1 %v6005_v51 }
0x2002   :  { %4889 = vmatpush3.bf16.msra.mxu0 %v6007_v56  ;;  %4902 = vmatprep.subr.bf16.mxu1 %v5377_v1 }
0x2003   :  { %4896 = vmatprep.subr.bf16.mxu0 %v5377_v1 }
0x20cf   :  { %v3004_v2 = vpop.f32.mrb[30].mxu1 }
0x20d0   :  { %v2928_v37 = vpop.f32.mrb[24].mxu0  ;;  %v3008_v55 = vadd.f32 %v3004_v2, %v2933_v54  ;;  %v4591_v15 = vpop.f32.mrb[31].mxu1 }
0x20d1   :  { %v2932_v11 = vadd.f32 %v2928_v37, %v2859_v57  ;;  %v4580_v31 = vpop.f32.mrb[25].mxu0 }
0x20d2   :  { %5126 = vtanh.f32 %v3008_v55  ;;  %v4011_v4 = vmul.f32 -1.442695, %v3008_v55 }
0x20d3   :  { %5128 = vtanh.f32 %v2932_v11  ;;  %v4010_v5 = vmul.f32 -1.442695, %v2932_v11 }
0x20d4   :  { %5130 = vpow2.f32 %v4011_v4 }
0x20d5   :  { %5132 = vpow2.f32 %v4010_v5 }
0x20dc   :  { %v5127_v52 = vpop.eup %5126 }
0x20dd   :  { %v5129_v3 = vpop.eup %5128  ;;  %3042 = vrot.lane.b32.xlu1 %v5127_v52, %s5381_s4 }
0x20de   :  { %3018 = vrot.lane.b32.xlu0 %v5129_v3, %s5381_s4  ;;  %v5131_v6 = vpop.eup %5130 }
0x20df   :  { %v5133_v9 = vpop.eup %5132  ;;  %v3036_v10 = vadd.f32 1.0, %v5131_v6 }
0x20e0   :  { %v3012_v13 = vadd.f32 1.0, %v5133_v9 }
0x20e1   :  { %5134 = vrcp.f32 %v3036_v10 }
0x20e2   :  { %5136 = vrcp.f32 %v3012_v13 }
0x20eb   :  { %v5135_v14 = vpop.eup %5134 }
0x20ec   :  { %v5137_v17 = vpop.eup %5136  ;;  %v3040_v21 = vmul.f32 %v5135_v14, %v2842_v47 }
0x20ed   :  { %v3016_v23 = vmul.f32 %v5137_v17, %v2818_v49 }
0x214f   :  { %v3043_v16 = vpop.permute.xlu1 %3042 }
0x2150   :  { %v3045_v18 = vmul.f32 %v5135_v14, %v3043_v16  ;;  %v3019_v19 = vpop.permute.xlu0 %3018 }
0x2151   :  { %v3021_v20 = vmul.f32 %v5137_v17, %v3019_v19  ;;  %v3349_v19 = vld [vmem:[#allocation3 + $0x2] sm:$0x1] }
0x2152   :  { %3047 = vrot.lane.b32.xlu1 %v3045_v18, %s5382_s7 }
0x2153   :  { %3023 = vrot.lane.b32.xlu0 %v3021_v20, %s5382_s7 }
0x21c4   :  { %v3048_v22 = vpop.permute.xlu1 %3047 }
0x21c5   :  { %v3050_v24 = vadd.f32 %v3048_v22, %v3040_v21  ;;  %v3024_v25 = vpop.permute.xlu0 %3023  ;;  %v3275_v21 = vld [vmem:[#allocation2 + $0x5] sm:$0x1] }
0x21c6   :  { %v3026_v26 = vadd.f32 %v3024_v25, %v3016_v23 }
0x21c7   :  { %5138 = vtanh.f32 %v3050_v24 }
0x21c8   :  { %5140 = vtanh.f32 %v3026_v26 }
0x21d1   :  { %v5139_v27 = vpop.eup %5138 }
0x21d2   :  { %v5141_v28 = vpop.eup %5140  ;;  %3053 = vrot.lane.b32.xlu1 %v5139_v27, %s5381_s4 }
0x21d3   :  { %3029 = vrot.lane.b32.xlu0 %v5141_v28, %s5381_s4 }
0x2244   :  { %v3054_v30 = vpop.permute.xlu1 %3053 }
0x2245   :  { %v6123_v34 = vmul.f32 %v5135_v14, %v3054_v30  ;;  %v3030_v35 = vpop.permute.xlu0 %3029 }
0x2246   :  { %v3032_v36 = vmul.f32 %v5137_v17, %v3030_v35 }
0x2247   :  { %3142 = vrot.lane.b32.xlu1 %v6123_v34, %s5382_s7 }
0x2248   :  { %3058 = vrot.lane.b32.xlu0 %v3032_v36, %s5382_s7 }
0x22b9   :  { %v3143_v53 = vpop.permute.xlu1 %3142 }
0x22ba   :  { %v3059_v38 = vpop.permute.xlu0 %3058  ;;  %4612 = vmatmul.mubr.msk.f32.vlgmr.msra.gmra.mrb[32].mxu1 %vm214_vm2, %v3143_v53 }
0x22bb   :  { %3061 = vst.msk [vmem:[#allocation12 + $0x3] sm:$0x1] %vm577_vm3, %v3059_v38  ;;  %4601 = vmatmul.mubr.msk.f32.vlgmr.msra.gmra.mrb[26].mxu0 %vm214_vm2, %v3059_v38  ;;  %4904 = vmatpush3.bf16.msra.mxu1 %v5993_v44 }
0x22bc   :  { %4898 = vmatpush3.bf16.msra.mxu0 %v5995_v45  ;;  %4905 = vmatprep.subr.bf16.mxu1 %v5377_v1 }
0x22bd   :  { %4899 = vmatprep.subr.bf16.mxu0 %v5377_v1  ;;  %4633 = vmatprep.mubr.msk.f32.mxu1 %vm5378_vm0, %v5379_v8 }
0x22be   :  { %4622 = vmatprep.mubr.msk.f32.mxu0 %vm5378_vm0, %v5379_v8 }
0x22bf   :  { %4907 = vmatpush3.bf16.msra.mxu1 %v6005_v51 }
0x22c0   :  { %4901 = vmatpush3.bf16.msra.mxu0 %v6007_v56  ;;  %4914 = vmatprep.subr.bf16.mxu1 %v5377_v1 }
0x22c1   :  { %4908 = vmatprep.subr.bf16.mxu0 %v5377_v1 }
0x238d   :  { %v3212_v29 = vpop.f32.mrb[32].mxu1 }
0x238e   :  { %v3136_v42 = vpop.f32.mrb[26].mxu0  ;;  %v3216_v12 = vadd.f32 %v3212_v29, %v3141_v39  ;;  %v4613_v46 = vpop.f32.mrb[33].mxu1 }
0x238f   :  { %v3140_v47 = vadd.f32 %v3136_v42, %v3067_v41  ;;  %v4602_v48 = vpop.f32.mrb[27].mxu0 }
0x2390   :  { %5142 = vtanh.f32 %v3216_v12  ;;  %v4015_v40 = vmul.f32 -1.442695, %v3216_v12 }
0x2391   :  { %5144 = vtanh.f32 %v3140_v47  ;;  %v4014_v58 = vmul.f32 -1.442695, %v3140_v47 }
0x2392   :  { %5146 = vpow2.f32 %v4015_v40 }
0x2393   :  { %5148 = vpow2.f32 %v4014_v58 }
0x239a   :  { %v5143_v49 = vpop.eup %5142 }
0x239b   :  { %v5145_v50 = vpop.eup %5144  ;;  %3250 = vrot.lane.b32.xlu1 %v5143_v49, %s5381_s4 }
0x239c   :  { %3226 = vrot.lane.b32.xlu0 %v5145_v50, %s5381_s4  ;;  %v5147_v43 = vpop.eup %5146 }
0x239d   :  { %v5149_v60 = vpop.eup %5148  ;;  %v3244_v61 = vadd.f32 1.0, %v5147_v43 }
0x239e   :  { %v3220_v63 = vadd.f32 1.0, %v5149_v60 }
0x239f   :  { %5150 = vrcp.f32 %v3244_v61 }
0x23a0   :  { %5152 = vrcp.f32 %v3220_v63 }
0x23a9   :  { %v5151_v54 = vpop.eup %5150 }
0x23aa   :  { %v5153_v57 = vpop.eup %5152  ;;  %v3248_v11 = vmul.f32 %v5151_v54, %v3050_v24 }
0x23ab   :  { %v3224_v52 = vmul.f32 %v5153_v57, %v3026_v26 }
0x240d   :  { %v3251_v2 = vpop.permute.xlu1 %3250 }
0x240e   :  { %v3253_v37 = vmul.f32 %v5151_v54, %v3251_v2  ;;  %v3227_v55 = vpop.permute.xlu0 %3226 }
0x240f   :  { %v3229_v15 = vmul.f32 %v5153_v57, %v3227_v55 }
0x2410   :  { %3255 = vrot.lane.b32.xlu1 %v3253_v37, %s5382_s7 }
0x2411   :  { %3231 = vrot.lane.b32.xlu0 %v3229_v15, %s5382_s7  ;;  %v3557_v15 = vld [vmem:[#allocation3 + $0x1] sm:$0x1] }
0x2482   :  { %v3256_v31 = vpop.permute.xlu1 %3255 }
0x2483   :  { %v3258_v3 = vadd.f32 %v3256_v31, %v3248_v11  ;;  %v3232_v4 = vpop.permute.xlu0 %3231  ;;  %v3483_v31 = vld [vmem:[#allocation2 + $0x6] sm:$0x1] }
0x2484   :  { %v3234_v5 = vadd.f32 %v3232_v4, %v3224_v52 }
0x2485   :  { %5154 = vtanh.f32 %v3258_v3 }
0x2486   :  { %5156 = vtanh.f32 %v3234_v5 }
0x248f   :  { %v5155_v6 = vpop.eup %5154 }
0x2490   :  { %v5157_v9 = vpop.eup %5156  ;;  %3261 = vrot.lane.b32.xlu1 %v5155_v6, %s5381_s4 }
0x2491   :  { %3237 = vrot.lane.b32.xlu0 %v5157_v9, %s5381_s4 }
0x2502   :  { %v3262_v10 = vpop.permute.xlu1 %3261 }
0x2503   :  { %v6149_v13 = vmul.f32 %v5151_v54, %v3262_v10  ;;  %v3238_v14 = vpop.permute.xlu0 %3237 }
0x2504   :  { %v3240_v16 = vmul.f32 %v5153_v57, %v3238_v14 }
0x2505   :  { %3350 = vrot.lane.b32.xlu1 %v6149_v13, %s5382_s7 }
0x2506   :  { %3266 = vrot.lane.b32.xlu0 %v3240_v16, %s5382_s7 }
0x2577   :  { %v3351_v17 = vpop.permute.xlu1 %3350 }
0x2578   :  { %v6154_v18 = vpop.permute.xlu0 %3266  ;;  %4634 = vmatmul.mubr.msk.f32.vlgmr.msra.gmra.mrb[34].mxu1 %vm214_vm2, %v3351_v17 }
0x2579   :  { %4623 = vmatmul.mubr.msk.f32.vlgmr.msra.gmra.mrb[28].mxu0 %vm214_vm2, %v6154_v18  ;;  %4916 = vmatpush3.bf16.msra.mxu1 %v5993_v44 }
0x257a   :  { %4910 = vmatpush3.bf16.msra.mxu0 %v5995_v45  ;;  %4917 = vmatprep.subr.bf16.mxu1 %v5377_v1 }
0x257b   :  { %4911 = vmatprep.subr.bf16.mxu0 %v5377_v1  ;;  %4655 = vmatprep.mubr.msk.f32.mxu1 %vm5378_vm0, %v5379_v8 }
0x257c   :  { %4644 = vmatprep.mubr.msk.f32.mxu0 %vm5378_vm0, %v5379_v8 }
0x257d   :  { %4919 = vmatpush3.bf16.msra.mxu1 %v6005_v51 }
0x257e   :  { %4913 = vmatpush3.bf16.msra.mxu0 %v6007_v56  ;;  %4926 = vmatprep.subr.bf16.mxu1 %v5377_v1 }
0x257f   :  { %4920 = vmatprep.subr.bf16.mxu0 %v5377_v1 }
0x264b   :  { %v3420_v20 = vpop.f32.mrb[34].mxu1 }
0x264c   :  { %v3344_v22 = vpop.f32.mrb[28].mxu0  ;;  %v3424_v23 = vadd.f32 %v3420_v20, %v3349_v19  ;;  %v4635_v24 = vpop.f32.mrb[35].mxu1 }
0x264d   :  { %v3348_v25 = vadd.f32 %v3344_v22, %v3275_v21  ;;  %v4624_v26 = vpop.f32.mrb[29].mxu0 }
0x264e   :  { %5158 = vtanh.f32 %v3424_v23  ;;  %v4019_v30 = vmul.f32 -1.442695, %v3424_v23 }
0x264f   :  { %5160 = vtanh.f32 %v3348_v25  ;;  %v4018_v35 = vmul.f32 -1.442695, %v3348_v25 }
0x2650   :  { %5162 = vpow2.f32 %v4019_v30 }
0x2651   :  { %5164 = vpow2.f32 %v4018_v35 }
0x2658   :  { %v5159_v27 = vpop.eup %5158 }
0x2659   :  { %v5161_v28 = vpop.eup %5160  ;;  %3458 = vrot.lane.b32.xlu1 %v5159_v27, %s5381_s4 }
0x265a   :  { %3434 = vrot.lane.b32.xlu0 %v5161_v28, %s5381_s4  ;;  %v5163_v36 = vpop.eup %5162 }
0x265b   :  { %v5165_v53 = vpop.eup %5164  ;;  %v3452_v38 = vadd.f32 1.0, %v5163_v36 }
0x265c   :  { %v3428_v39 = vadd.f32 1.0, %v5165_v53 }
0x265d   :  { %5166 = vrcp.f32 %v3452_v38 }
0x265e   :  { %5168 = vrcp.f32 %v3428_v39 }
0x2667   :  { %v5167_v29 = vpop.eup %5166 }
0x2668   :  { %v5169_v42 = vpop.eup %5168  ;;  %v3456_v48 = vmul.f32 %v5167_v29, %v3258_v3 }
0x2669   :  { %v3432_v50 = vmul.f32 %v5169_v42, %v3234_v5 }
0x26cb   :  { %v3459_v41 = vpop.permute.xlu1 %3458 }
0x26cc   :  { %v3461_v12 = vmul.f32 %v5167_v29, %v3459_v41  ;;  %v3435_v46 = vpop.permute.xlu0 %3434  ;;  %v3765_v41 = vld [vmem:[#allocation3] sm:$0x1] }
0x26cd   :  { %v3437_v47 = vmul.f32 %v5169_v42, %v3435_v46 }
0x26ce   :  { %3463 = vrot.lane.b32.xlu1 %v3461_v12, %s5382_s7  ;;  %v3691_v12 = vld [vmem:[#allocation2 + $0x7] sm:$0x1] }
0x26cf   :  { %3439 = vrot.lane.b32.xlu0 %v3437_v47, %s5382_s7 }
0x2740   :  { %v3464_v49 = vpop.permute.xlu1 %3463 }
0x2741   :  { %v3466_v40 = vadd.f32 %v3464_v49, %v3456_v48  ;;  %v3440_v58 = vpop.permute.xlu0 %3439 }
0x2742   :  { %v3442_v43 = vadd.f32 %v3440_v58, %v3432_v50 }
0x2743   :  { %5170 = vtanh.f32 %v3466_v40 }
0x2744   :  { %5172 = vtanh.f32 %v3442_v43 }
0x274d   :  { %v5171_v60 = vpop.eup %5170 }
0x274e   :  { %v5173_v61 = vpop.eup %5172  ;;  %3469 = vrot.lane.b32.xlu1 %v5171_v60, %s5381_s4 }
0x274f   :  { %3445 = vrot.lane.b32.xlu0 %v5173_v61, %s5381_s4 }
0x27c0   :  { %v3470_v63 = vpop.permute.xlu1 %3469 }
0x27c1   :  { %v6177_v54 = vmul.f32 %v5167_v29, %v3470_v63  ;;  %v3446_v2 = vpop.permute.xlu0 %3445 }
0x27c2   :  { %v3448_v57 = vmul.f32 %v5169_v42, %v3446_v2 }
0x27c3   :  { %3558 = vrot.lane.b32.xlu1 %v6177_v54, %s5382_s7 }
0x27c4   :  { %3474 = vrot.lane.b32.xlu0 %v3448_v57, %s5382_s7 }
0x2835   :  { %v3559_v37 = vpop.permute.xlu1 %3558 }
0x2836   :  { %v6182_v55 = vpop.permute.xlu0 %3474  ;;  %4656 = vmatmul.mubr.msk.f32.vlgmr.msra.gmra.mrb[36].mxu1 %vm214_vm2, %v3559_v37 }
0x2837   :  { %4645 = vmatmul.mubr.msk.f32.vlgmr.msra.gmra.mrb[30].mxu0 %vm214_vm2, %v6182_v55  ;;  %4928 = vmatpush3.bf16.msra.mxu1 %v5993_v44 }
0x2838   :  { %4922 = vmatpush3.bf16.msra.mxu0 %v5995_v45  ;;  %4929 = vmatprep.subr.bf16.mxu1 %v5377_v1 }
0x2839   :  { %4923 = vmatprep.subr.bf16.mxu0 %v5377_v1  ;;  %4677 = vmatprep.mubr.msk.f32.mxu1 %vm5378_vm0, %v5379_v8 }
0x283a   :  { %4666 = vmatprep.mubr.msk.f32.mxu0 %vm5378_vm0, %v5379_v8 }
0x283b   :  { %4931 = vmatpush3.bf16.msra.mxu1 %v6005_v51 }
0x283c   :  { %4925 = vmatpush3.bf16.msra.mxu0 %v6007_v56 }
0x2909   :  { %v3628_v11 = vpop.f32.mrb[36].mxu1 }
0x290a   :  { %v3552_v44 = vpop.f32.mrb[30].mxu0  ;;  %v3632_v52 = vadd.f32 %v3628_v11, %v3557_v15  ;;  %v4657_v45 = vpop.f32.mrb[37].mxu1 }
0x290b   :  { %v3556_v3 = vadd.f32 %v3552_v44, %v3483_v31  ;;  %v4646_v4 = vpop.f32.mrb[31].mxu0 }
0x290c   :  { %5174 = vtanh.f32 %v3632_v52  ;;  %v4023_v8 = vmul.f32 -1.442695, %v3632_v52 }
0x290d   :  { %5176 = vtanh.f32 %v3556_v3  ;;  %v4022_v51 = vmul.f32 -1.442695, %v3556_v3 }
0x290e   :  { %5178 = vpow2.f32 %v4023_v8 }
0x290f   :  { %5180 = vpow2.f32 %v4022_v51 }
0x2916   :  { %v5175_v1 = vpop.eup %5174 }
0x2917   :  { %v5177_v5 = vpop.eup %5176  ;;  %3666 = vrot.lane.b32.xlu1 %v5175_v1, %s5381_s4 }
0x2918   :  { %3642 = vrot.lane.b32.xlu0 %v5177_v5, %s5381_s4  ;;  %v5179_v56 = vpop.eup %5178 }
0x2919   :  { %v5181_v6 = vpop.eup %5180  ;;  %v3660_v9 = vadd.f32 1.0, %v5179_v56 }
0x291a   :  { %v3636_v10 = vadd.f32 1.0, %v5181_v6 }
0x291b   :  { %5182 = vrcp.f32 %v3660_v9 }
0x291c   :  { %5184 = vrcp.f32 %v3636_v10 }
0x2925   :  { %v5183_v14 = vpop.eup %5182 }
0x2926   :  { %v5185_v17 = vpop.eup %5184  ;;  %v3664_v22 = vmul.f32 %v5183_v14, %v3466_v40 }
0x2927   :  { %v3640_v24 = vmul.f32 %v5185_v17, %v3442_v43 }
0x2989   :  { %v3667_v16 = vpop.permute.xlu1 %3666 }
0x298a   :  { %v3669_v19 = vmul.f32 %v5183_v14, %v3667_v16  ;;  %v3643_v20 = vpop.permute.xlu0 %3642 }
0x298b   :  { %v3645_v21 = vmul.f32 %v5185_v17, %v3643_v20 }
0x298c   :  { %3671 = vrot.lane.b32.xlu1 %v3669_v19, %s5382_s7 }
0x298d   :  { %3647 = vrot.lane.b32.xlu0 %v3645_v21, %s5382_s7 }
0x29fe   :  { %v3672_v23 = vpop.permute.xlu1 %3671 }
0x29ff   :  { %v3674_v25 = vadd.f32 %v3672_v23, %v3664_v22  ;;  %v3648_v26 = vpop.permute.xlu0 %3647 }
0x2a00   :  { %v3650_v27 = vadd.f32 %v3648_v26, %v3640_v24 }
0x2a01   :  { %5186 = vtanh.f32 %v3674_v25 }
0x2a02   :  { %5188 = vtanh.f32 %v3650_v27 }
0x2a0b   :  { %v5187_v28 = vpop.eup %5186 }
0x2a0c   :  { %v5189_v30 = vpop.eup %5188  ;;  %3677 = vrot.lane.b32.xlu1 %v5187_v28, %s5381_s4 }
0x2a0d   :  { %3653 = vrot.lane.b32.xlu0 %v5189_v30, %s5381_s4 }
0x2a7e   :  { %v3678_v35 = vpop.permute.xlu1 %3677 }
0x2a7f   :  { %v3680_v36 = vmul.f32 %v5183_v14, %v3678_v35  ;;  %v3654_v53 = vpop.permute.xlu0 %3653 }
0x2a80   :  { %v3656_v38 = vmul.f32 %v5185_v17, %v3654_v53 }
0x2a81   :  { %3766 = vrot.lane.b32.xlu1 %v3680_v36, %s5382_s7 }
0x2a82   :  { %3682 = vrot.lane.b32.xlu0 %v3656_v38, %s5382_s7 }
0x2af3   :  { %v3767_v39 = vpop.permute.xlu1 %3766 }
0x2af4   :  { %v6205_v29 = vpop.permute.xlu0 %3682  ;;  %4678 = vmatmul.mubr.msk.f32.vlgmr.msra.gmra.mrb[38].mxu1 %vm214_vm2, %v3767_v39 }
0x2af5   :  { %4667 = vmatmul.mubr.msk.f32.vlgmr.msra.gmra.mrb[32].mxu0 %vm214_vm2, %v6205_v29 }
0x2bc7   :  { %v3836_v42 = vpop.f32.mrb[38].mxu1 }
0x2bc8   :  { %v3760_v46 = vpop.f32.mrb[32].mxu0  ;;  %v3840_v47 = vadd.f32 %v3836_v42, %v3765_v41  ;;  %v4679_v48 = vpop.f32.mrb[39].mxu1 }
0x2bc9   :  { %v3764_v49 = vadd.f32 %v3760_v46, %v3691_v12  ;;  %v4668_v50 = vpop.f32.mrb[33].mxu0 }
0x2bca   :  { %5190 = vtanh.f32 %v3840_v47  ;;  %v4027_v43 = vmul.f32 -1.442695, %v3840_v47 }
0x2bcb   :  { %5192 = vtanh.f32 %v3764_v49  ;;  %v4026_v60 = vmul.f32 -1.442695, %v3764_v49 }
0x2bcc   :  { %5194 = vpow2.f32 %v4027_v43 }
0x2bcd   :  { %5196 = vpow2.f32 %v4026_v60 }
0x2bd4   :  { %v5191_v40 = vpop.eup %5190 }
0x2bd5   :  { %v5193_v58 = vpop.eup %5192  ;;  %3874 = vrot.lane.b32.xlu1 %v5191_v40, %s5381_s4 }
0x2bd6   :  { %3850 = vrot.lane.b32.xlu0 %v5193_v58, %s5381_s4  ;;  %v5195_v61 = vpop.eup %5194 }
0x2bd7   :  { %v5197_v63 = vpop.eup %5196  ;;  %v3868_v2 = vadd.f32 1.0, %v5195_v61 }
0x2bd8   :  { %v3844_v57 = vadd.f32 1.0, %v5197_v63 }
0x2bd9   :  { %5198 = vrcp.f32 %v3868_v2 }
0x2bda   :  { %5200 = vrcp.f32 %v3844_v57 }
0x2be3   :  { %v5199_v37 = vpop.eup %5198 }
0x2be4   :  { %v5201_v11 = vpop.eup %5200  ;;  %v3872_v45 = vmul.f32 %v5199_v37, %v3674_v25 }
0x2be5   :  { %v3848_v4 = vmul.f32 %v5201_v11, %v3650_v27 }
0x2c47   :  { %v3875_v15 = vpop.permute.xlu1 %3874 }
0x2c48   :  { %v3877_v31 = vmul.f32 %v5199_v37, %v3875_v15  ;;  %v3851_v44 = vpop.permute.xlu0 %3850 }
0x2c49   :  { %v3853_v52 = vmul.f32 %v5201_v11, %v3851_v44 }
0x2c4a   :  { %3879 = vrot.lane.b32.xlu1 %v3877_v31, %s5382_s7 }
0x2c4b   :  { %3855 = vrot.lane.b32.xlu0 %v3853_v52, %s5382_s7 }
0x2cbc   :  { %v3880_v3 = vpop.permute.xlu1 %3879 }
0x2cbd   :  { %v3882_v1 = vadd.f32 %v3880_v3, %v3872_v45  ;;  %v3856_v5 = vpop.permute.xlu0 %3855 }
0x2cbe   :  { %v3858_v8 = vadd.f32 %v3856_v5, %v3848_v4 }
0x2cbf   :  { %5202 = vtanh.f32 %v3882_v1 }
0x2cc0   :  { %5204 = vtanh.f32 %v3858_v8 }
0x2cc9   :  { %v5203_v51 = vpop.eup %5202 }
0x2cca   :  { %v5205_v56 = vpop.eup %5204  ;;  %3885 = vrot.lane.b32.xlu1 %v5203_v51, %s5381_s4 }
0x2ccb   :  { %3861 = vrot.lane.b32.xlu0 %v5205_v56, %s5381_s4 }
0x2cce   :  { %2439 = vrot.lane.b32.xlu1 %v6045_v33, %s5381_s4 }
0x2ccf   :  { %2042 = vrot.lane.b32.xlu0 %v5968_v32, %s5382_s7 }
0x2cd2   :  { %2855 = vrot.lane.b32.xlu1 %v6097_v59, %s5381_s4 }
0x2cd3   :  { %2647 = vrot.lane.b32.xlu0 %v6071_v7, %s5381_s4 }
0x2cd6   :  { %2047 = vrot.lane.b32.xlu1 %v5887_v62, %s5383_s10 }
0x2cd7   :  { %3063 = vrot.lane.b32.xlu0 %v6123_v34, %s5381_s4 }
0x2cda   :  { %3271 = vrot.lane.b32.xlu1 %v6149_v13, %s5381_s4 }
0x2cdb   :  { %2052 = vrot.lane.b32.xlu0 %v5891_v0, %s5383_s10 }
0x2cde   :  { %3687 = vrot.lane.b32.xlu1 %v3680_v36, %s5381_s4 }
0x2cdf   :  { %3479 = vrot.lane.b32.xlu0 %v6177_v54, %s5381_s4 }
0x2d3c   :  { %v3886_v32 = vpop.permute.xlu1 %3885 }
0x2d3d   :  { %v3888_v33 = vmul.f32 %v5199_v37, %v3886_v32  ;;  %v3862_v59 = vpop.permute.xlu0 %3861 }
0x2d3e   :  { %v3864_v7 = vmul.f32 %v5201_v11, %v3862_v59 }
0x2d3f   :  { %3900 = vrot.lane.b32.xlu0 %v3888_v33, %s5382_s7 }
0x2d40   :  { %3890 = vrot.lane.b32.xlu1 %v3864_v7, %s5382_s7  ;;  %v2440_v62 = vpop.permute.xlu1 %2439  ;;  %s5385_s7 = smov [#allocation12]  }
0x2d41   :  { %2442 = vst.msk [vmem:[#allocation12 + $0x7] sm:$0x1] %vm583_vm4, %v2440_v62  ;;  %v2043_v34 = vpop.permute.xlu0 %2042  ;;  %s3920_s18 = sshll.u32 %s5385_s7, 4  ;;  %s6255_s18 = int_to_ptr.vmem [resolvable:$true] %s3920_s18 }
0x2d42   :  { %2045 = vst.msk [vmem:[#allocation13 + $0x1] sm:$0x1] %vm577_vm3, %v2043_v34 }
0x2d43   :  { %3895 = vrot.lane.b32.xlu0 %v3888_v33, %s5381_s4  ;;  %s3930_s4 = sshll.u32 %s5384_s13, 4  ;;  %s3931_s4 = int_to_ptr.vmem [resolvable:$true] %s3930_s4 }
0x2d44   :  { %3905 = vrot.lane.b32.xlu1 %v3858_v8, %s5383_s10  ;;  %v2856_v0 = vpop.permute.xlu1 %2855  ;;  %s5294_s19 = scalar_lea.vmem %s3931_s4, 64  ;;  %p5299_p5 = scmp.lt.s32.totalorder %s3931_s4, %s3931_s4 }
0x2d45   :  { %2858 = vst.msk [vmem:[#allocation12 + $0x5] sm:$0x1] %vm583_vm4, %v2856_v0  ;;  %v2648_v13 = vpop.permute.xlu0 %2647  ;;  %p5295_p4 = scmp.ne.s32.totalorder %s3931_s4, %s5294_s19  ;;  %p5300_p6 = scmp.lt.s32.totalorder %s5294_s19, %s5294_s19 }
0x2d46   :  { %3477 = vst.msk [vmem:[#allocation12 + $0x5] sm:$0x1] %vm577_vm3, %v6182_v55 }
0x2d47   :  { %2650 = vst.msk [vmem:[#allocation12 + $0x6] sm:$0x1] %vm583_vm4, %v2648_v13  ;;  %3910 = vrot.lane.b32.xlu0 %v3882_v1, %s5383_s10  ;;  %p5301_p7 = por %p5300_p6, %p5299_p5 }
0x2d48   :  { %3685 = vst.msk [vmem:[#allocation12 + $0x6] sm:$0x1] %vm577_vm3, %v6205_v29  ;;  %v2048_v54 = vpop.permute.xlu1 %2047 }
0x2d49   :  { %2050 = vst.msk [vmem:[#allocation15] sm:$0x1] %vm577_vm3, %v2048_v54  ;;  %v3064_v6 = vpop.permute.xlu0 %3063  ;;  %p5302_p8 = pnand %p5301_p7, %p5295_p4 }
0x2d4a   :  { %3066 = vst.msk [vmem:[#allocation12 + $0x4] sm:$0x1] %vm583_vm4, %v3064_v6 }
0x2d4b   :  { %3269 = vst.msk [vmem:[#allocation12 + $0x4] sm:$0x1] %vm577_vm3, %v6154_v18 }
0x2d4c   :  { %v3272_v9 = vpop.permute.xlu1 %3271 }
0x2d4d   :  { %3274 = vst.msk [vmem:[#allocation12 + $0x3] sm:$0x1] %vm583_vm4, %v3272_v9  ;;  %v2053_v10 = vpop.permute.xlu0 %2052 }
0x2d4e   :  { %2055 = vst.msk [vmem:[#allocation15 + $0x1] sm:$0x1] %vm577_vm3, %v2053_v10 }
0x2d50   :  { %v3688_v55 = vpop.permute.xlu1 %3687 }
0x2d51   :  { %3690 = vst.msk [vmem:[#allocation12 + $0x1] sm:$0x1] %vm583_vm4, %v3688_v55  ;;  %v3480_v14 = vpop.permute.xlu0 %3479 }
0x2d52   :  { %3482 = vst.msk [vmem:[#allocation12 + $0x2] sm:$0x1] %vm583_vm4, %v3480_v14 }
0x2db1   :  { %v3901_v16 = vpop.permute.xlu0 %3900 }
0x2db2   :  { %v3891_v17 = vpop.permute.xlu1 %3890  ;;  %3903 = vst.msk [vmem:[#allocation13 + $0x3] sm:$0x1] %vm577_vm3, %v3901_v16 }
0x2db3   :  { %3893 = vst.msk [vmem:[#allocation12 + $0x7] sm:$0x1] %vm577_vm3, %v3891_v17  ;;  %3899 = vst.msk [vmem:[#allocation13 + $0x2] sm:$0x1] %vm577_vm3, %v3891_v17 }
0x2db4   :  { %5305 = shalt.err (!%p5302_p8)
}
0x2db5   :  { %s5306_s22 = scalar_lea.hbm %s6316_s15, 64 }
0x2db6   :  { %p5307_p9 = scmp.ne.s32.totalorder %s6316_s15, %s5306_s22  ;;  %p5310_p10 = scmp.lt.u32.totalorder %s5306_s22, %s6316_s15 }
0x2db8   :  { %p5312_p11 = pnand %p5310_p10, %p5307_p9 }
0x2dba   :  { %5315 = shalt.err (!%p5312_p11)
}
0x2dbb   :  { %3933 = dma.vmem_to_hbm [thread:$0]  %s3931_s4, 64, %s6316_s15, [#allocation14]   ;;  %v3896_v18 = vpop.permute.xlu0 %3895  ;;  %v3906_v19 = vpop.permute.xlu1 %3905 }
0x2dbc   :  { %s5386_s29 = smov [#allocation15]   ;;  %3898 = vst.msk [vmem:[#allocation12] sm:$0x1] %vm583_vm4, %v3896_v18  ;;  %s5316_s11 = scalar_lea.vmem %s6255_s18, 128 }
0x2dbd   :  { %s3940_s8 = sshll.u32 %s5386_s29, 4  ;;  %3908 = vst.msk [vmem:[#allocation15 + $0x2] sm:$0x1] %vm577_vm3, %v3906_v19  ;;  %p5317_p12 = scmp.ne.s32.totalorder %s6255_s18, %s5316_s11  ;;  %s3941_s8 = int_to_ptr.vmem [resolvable:$true] %s3940_s8 }
0x2dbe   :  { %p5321_p13 = scmp.lt.s32.totalorder %s6255_s18, %s6255_s18  ;;  %p5322_p0 = scmp.lt.s32.totalorder %s5316_s11, %s5316_s11 }
0x2dc0   :  { %p5323_p1 = por %p5322_p0, %p5321_p13 }
0x2dc2   :  { %p5324_p2 = pnand %p5323_p1, %p5317_p12 }
0x2dc4   :  { %5327 = shalt.err (!%p5324_p2)
}
0x2dc5   :  { %s5328_s15 = scalar_lea.hbm %s6315_s14, 128 }
0x2dc6   :  { %p5329_p3 = scmp.ne.s32.totalorder %s6315_s14, %s5328_s15  ;;  %p5332_p4 = scmp.lt.u32.totalorder %s5328_s15, %s6315_s14 }
0x2dc8   :  { %p5334_p5 = pnand %p5332_p4, %p5329_p3 }
0x2dca   :  { %5337 = shalt.err (!%p5334_p5)
}
0x2dcb   :  { %3923 = dma.vmem_to_hbm [thread:$0]  %s6255_s18, 128, %s6315_s14, [#allocation6]   ;;  %v3911_v20 = vpop.permute.xlu0 %3910 }
0x2dcc   :  { %3913 = vst.msk [vmem:[#allocation15 + $0x3] sm:$0x1] %vm577_vm3, %v3911_v20  ;;  %s5338_s5 = scalar_lea.vmem %s3941_s8, 64  ;;  %p5343_p7 = scmp.lt.s32.totalorder %s3941_s8, %s3941_s8 }
0x2dcd   :  { %p5339_p6 = scmp.ne.s32.totalorder %s3941_s8, %s5338_s5  ;;  %p5344_p8 = scmp.lt.s32.totalorder %s5338_s5, %s5338_s5 }
0x2dcf   :  { %p5345_p9 = por %p5344_p8, %p5343_p7 }
0x2dd1   :  { %p5346_p10 = pnand %p5345_p9, %p5339_p6 }
0x2dd3   :  { %5349 = shalt.err (!%p5346_p10)
}
0x2dd4   :  { %s5350_s13 = scalar_lea.hbm %s6317_s16, 64 }
0x2dd5   :  { %p5351_p11 = scmp.ne.s32.totalorder %s6317_s16, %s5350_s13  ;;  %p5354_p12 = scmp.lt.u32.totalorder %s5350_s13, %s6317_s16 }
0x2dd7   :  { %p5356_p13 = pnand %p5354_p12, %p5351_p11 }
0x2dd9   :  { %5359 = shalt.err (!%p5356_p13)
}
0x2dda   :  { %3943 = dma.vmem_to_hbm [thread:$0]  %s3941_s8, 64, %s6317_s16, [#allocation14]  }
0x2ddb   :  { %5366 = dma.done.wait [#allocation6], 128  }
0x2ddc   :  { %5367 = vsyncadd [#allocation6], 4294967168 }
0x2ddd   :  { %5368 = dma.done.wait [#allocation14], 128  }
0x2dde   :  { %5369 = vsyncadd [#allocation14], 4294967168 }
0x2ddf   :  { %3953 = vsyncpa [#allocation5], 1 }
0x2de0   :  { %3954 = vsyncpa [#allocation8], 1 }
0x2de1   :  { %3955 = vsyncpa [#allocation11], 1 }
0x2de2   :  { %3956 = vsyncpa [#allocation6], 1 }
0x2de3   :  { %3957 = vsyncpa [#allocation14], 1 }

</bundles_post_ra>
